<compile_context>
chip_gen: v7x
topology: tpu7x:2x2x1
jax: 0.10.0
libtpu: 0.0.40
codegen_flags: <defaults>
</compile_context>

<pallas_src>
import functools

import jax
import jax.numpy as jnp
from jax.experimental import pallas as pl
from jax.experimental.pallas import tpu as pltpu


def _round_up(x, m):
    return ((x + m - 1) // m) * m


@functools.lru_cache(maxsize=1)
def _vmem_limit_bytes():
    # v5e/v6e: 128 MiB physical VMEM; v7x: 64 MiB. Derive per chip, fall back safely.
    try:
        cap = getattr(pltpu.get_tpu_info(), "vmem_capacity_bytes", None)
        if cap:
            return int(min(cap // 2, 64 * 1024 * 1024))
    except Exception:
        pass
    return 32 * 1024 * 1024


# ---------------------------------------------------------------------------
# Pallas kernel: single-K-step multi-branch fused matmul + bias (+ReLU)
#   out(M, N) = act( sum_b lhs_b(M, K_b) @ rhs_b(K_b, N)  +  bias(M, 1) )
# Every K_b fits in one block (K <= 288 in this model) -> no K grid axis, no scratch,
# no pl.when. Grid: (M tiles, N tiles), both "parallel".
# The multi-branch form fuses channel concats (ASPP / decoder) into the matmul.
# ---------------------------------------------------------------------------
def _mm_fused_kernel(*refs, n_branches, relu):
    lhs = refs[:n_branches]
    rhs = refs[n_branches:2 * n_branches]
    bias_ref = refs[2 * n_branches]
    o_ref = refs[2 * n_branches + 1]

    acc = jnp.dot(lhs[0][...], rhs[0][...], preferred_element_type=jnp.float32)
    for b in range(1, n_branches):
        acc = acc + jnp.dot(lhs[b][...], rhs[b][...], preferred_element_type=jnp.float32)
    r = acc + bias_ref[...]
    if relu:
        r = jnp.maximum(r, 0.0)
    o_ref[...] = r.astype(o_ref.dtype)


def _pick_col_tile(n):
    """Lane (column) tile: prefer >=2 tiles (v7x megacore), avoid padding when possible."""
    cands = (2048, 1024, 512, 256, 128)
    for c in cands:
        if n % c == 0 and n // c >= 2:
            return c, n
    for c in cands:
        if n % c == 0:
            return c, n
    if n <= 2048:
        return n, n          # full-width single tile, no pad
    np_ = _round_up(n, 512)  # fallback only
    return 512, np_


def mm_bias_act(lhs_list, rhs_list, bias, relu=False, out_dtype=jnp.bfloat16,
                operand_dtype=jnp.bfloat16):
    """out = act(sum_b lhs_b @ rhs_b + bias); bias broadcast along columns (per out row)."""
    n_branches = len(lhs_list)
    M = lhs_list[0].shape[0]
    N = rhs_list[0].shape[1]

    sub = 16 if operand_dtype == jnp.bfloat16 else 8  # sublane packing granularity
    TM = min(256, _round_up(M, sub))
    Mp = _round_up(M, TM)
    TN, Np = _pick_col_tile(N)

    lhs_p, rhs_p = [], []
    for lhs_b, rhs_b in zip(lhs_list, rhs_list):
        kb = lhs_b.shape[1]
        assert rhs_b.shape[0] == kb and rhs_b.shape[1] == N
        lb = lhs_b.astype(operand_dtype)
        rb = rhs_b.astype(operand_dtype)
        if Mp > M:
            lb = jnp.pad(lb, ((0, Mp - M), (0, 0)))
        if Np > N:
            rb = jnp.pad(rb, ((0, 0), (0, Np - N)))
        lhs_p.append(lb)
        rhs_p.append(rb)

    bias = jnp.broadcast_to(jnp.asarray(bias, jnp.float32).reshape(-1, 1), (M, 1))
    if Mp > M:
        bias = jnp.pad(bias, ((0, Mp - M), (0, 0)))

    in_specs = (
        [pl.BlockSpec((TM, l.shape[1]), lambda i, j: (i, 0)) for l in lhs_p]
        + [pl.BlockSpec((r.shape[0], TN), lambda i, j: (0, j)) for r in rhs_p]
        + [pl.BlockSpec((TM, 1), lambda i, j: (i, 0))]
    )

    out = pl.pallas_call(
        functools.partial(_mm_fused_kernel, n_branches=n_branches, relu=relu),
        grid=(Mp // TM, Np // TN),
        in_specs=in_specs,
        out_specs=pl.BlockSpec((TM, TN), lambda i, j: (i, j)),
        out_shape=jax.ShapeDtypeStruct((Mp, Np), out_dtype),
        compiler_params=pltpu.CompilerParams(
            dimension_semantics=("parallel", "parallel"),
            vmem_limit_bytes=_vmem_limit_bytes(),
        ),
    )(*lhs_p, *rhs_p, bias)

    if Mp > M or Np > N:
        out = out[:M, :N]
    return out


# ---------------------------------------------------------------------------
# Conv2d = tap gather (JAX glue, bf16) + fused Pallas matmul (folded-BN scale in weights,
# bias + ReLU in the epilogue). Feature maps are (C, N, H, W); matmul output is
# (Cout, N*OH*OW) -> large lane axis. `xs` may be a LIST of tensors: the channel concat
# is fused into the matmul as extra K-reduction branches (no HBM concat).
# ---------------------------------------------------------------------------
def _gather_taps(x, kh, kw, stride, dilation, padding):
    c, n, h, w = x.shape
    if padding:
        x = jnp.pad(x, ((0, 0), (0, 0), (padding, padding), (padding, padding)))
    hp, wp = h + 2 * padding, w + 2 * padding
    oh = (hp - (dilation * (kh - 1) + 1)) // stride + 1
    ow = (wp - (dilation * (kw - 1) + 1)) // stride + 1
    if kh == 1 and kw == 1 and stride == 1:
        return x.reshape(c, n * oh * ow), oh, ow
    taps = []
    for i in range(kh):
        for j in range(kw):
            taps.append(
                x[:, :,
                  i * dilation: i * dilation + (oh - 1) * stride + 1: stride,
                  j * dilation: j * dilation + (ow - 1) * stride + 1: stride])
    rhs = jnp.concatenate(taps, axis=0).reshape(kh * kw * c, n * oh * ow)
    return rhs, oh, ow


def conv2d_cf(xs, w, scale, bias, stride=1, dilation=1, padding=0, relu=True,
              out_dtype=jnp.bfloat16):
    if not isinstance(xs, (list, tuple)):
        xs = [xs]
    cout, cin, kh, kw = w.shape
    assert sum(x.shape[0] for x in xs) == cin
    n = xs[0].shape[1]

    # Fold the BN scale into the weight rows in f32, keep only bias (+ReLU) epilogue.
    w = w.astype(jnp.float32) * jnp.asarray(scale, jnp.float32).reshape(-1, 1, 1, 1)

    lhs_list, rhs_list = [], []
    coff = 0
    oh = ow = None
    for x in xs:
        cb = x.shape[0]
        rhs, oh, ow = _gather_taps(x.astype(jnp.bfloat16), kh, kw, stride, dilation, padding)
        wb = w[:, coff:coff + cb]
        lhs_list.append(jnp.transpose(wb, (0, 2, 3, 1)).reshape(cout, kh * kw * cb))
        rhs_list.append(rhs)
        coff += cb

    out = mm_bias_act(lhs_list, rhs_list, bias, relu=relu, out_dtype=out_dtype)
    return out.reshape(cout, n, oh, ow)


# ---------------------------------------------------------------------------
# Fused separable bilinear resize (align_corners=True), exact match of F.interpolate.
# ONE Pallas kernel: per feature map, A_h @ X @ A_w^T (two tiny MXU matmuls in f32).
# ---------------------------------------------------------------------------
def _interp_matrix(out_size, in_size):
    if in_size == 1:
        return jnp.ones((out_size, 1), jnp.float32)
    if out_size == 1:
        # TODO(synk): align_corners=True with out_size==1 is ill-defined in torch; use src=0.
        src = jnp.zeros((1,), jnp.float32)
    else:
        src = jnp.arange(out_size, dtype=jnp.float32) * (in_size - 1) / (out_size - 1)
    i0 = jnp.clip(jnp.floor(src).astype(jnp.int32), 0, in_size - 2)
    frac = src - i0.astype(jnp.float32)
    m = jnp.zeros((out_size, in_size), jnp.float32)
    rows = jnp.arange(out_size)
    m = m.at[rows, i0].set(1.0 - frac)
    m = m.at[rows, i0 + 1].add(frac)
    return m


def _bilinear_kernel(x_ref, ah_ref, awt_ref, o_ref, *, tb):
    for b in range(tb):  # static unrolled loop over the maps in this block
        t = jnp.dot(ah_ref[...], x_ref[b].astype(jnp.float32),
                    preferred_element_type=jnp.float32)                 # (OH, IW)
        o_ref[b, :, :] = jnp.dot(t, awt_ref[...],
                                 preferred_element_type=jnp.float32).astype(o_ref.dtype)


def bilinear_resize_cf(x, out_h, out_w, out_dtype=None):
    # x: (C, N, IH, IW) -> (C, N, out_h, out_w); interp math kept in f32.
    c, n, ih, iw = x.shape
    out_dtype = out_dtype or x.dtype
    if ih == out_h and iw == out_w:
        return x.astype(out_dtype)
    if ih == 1 and iw == 1:
        # upsampling a 1x1 map is a pure broadcast
        return jnp.broadcast_to(x, (c, n, out_h, out_w)).astype(out_dtype)

    ah = _interp_matrix(out_h, ih)        # (OH, IH)
    awt = _interp_matrix(out_w, iw).T     # (IW, OW)

    cn = c * n
    tb = min(8, cn)
    if cn >= 2 and pl.cdiv(cn, tb) < 2:
        tb = max(1, -(-cn // 2))          # ensure >= 2 grid steps (v7x: 2 TensorCores)
    cnp = _round_up(cn, tb)
    xf = x.reshape(cn, ih, iw)
    if cnp > cn:
        xf = jnp.pad(xf, ((0, cnp - cn), (0, 0), (0, 0)))

    out = pl.pallas_call(
        functools.partial(_bilinear_kernel, tb=tb),
        grid=(cnp // tb,),
        in_specs=[pl.BlockSpec((tb, ih, iw), lambda i: (i, 0, 0)),
                  pl.BlockSpec((out_h, ih), lambda i: (0, 0)),
                  pl.BlockSpec((iw, out_w), lambda i: (0, 0))],
        out_specs=pl.BlockSpec((tb, out_h, out_w), lambda i: (i, 0, 0)),
        out_shape=jax.ShapeDtypeStruct((cnp, out_h, out_w), out_dtype),
        compiler_params=pltpu.CompilerParams(
            dimension_semantics=("parallel",),
            vmem_limit_bytes=_vmem_limit_bytes(),
        ),
    )(xf, ah, awt)
    return out[:cn].reshape(c, n, out_h, out_w)


def global_avg_pool_cf(x):
    # Plain XLA mean: a dedicated pallas_call here is pure launch overhead at these sizes.
    return jnp.mean(x.astype(jnp.float32), axis=(2, 3), keepdims=True)


# ---------------------------------------------------------------------------
# Deterministic parameter initialization (synthetic, no checkpoint loading)
# ---------------------------------------------------------------------------
def _init_conv(key, cout, cin, kh, kw):
    fan_in = cin * kh * kw
    return jax.random.normal(key, (cout, cin, kh, kw), jnp.float32) / jnp.sqrt(
        jnp.float32(fan_in))


def _init_folded_bn(key, c, eps=1e-5):
    k1, k2, k3, k4 = jax.random.split(key, 4)
    gamma = 1.0 + 0.1 * jax.random.normal(k1, (c,), jnp.float32)
    beta = 0.1 * jax.random.normal(k2, (c,), jnp.float32)
    mean = 0.05 * jax.random.normal(k3, (c,), jnp.float32)
    var = 1.0 + 0.1 * jnp.abs(jax.random.normal(k4, (c,), jnp.float32))
    scale = gamma / jnp.sqrt(var + eps)
    return scale, beta - mean * scale


def init_params(key):
    def conv_bn(k, cout, cin, ksz):
        kw_, kb_ = jax.random.split(k)
        w = _init_conv(kw_, cout, cin, ksz, ksz)
        scale, bias = _init_folded_bn(kb_, cout)
        return (w, scale, bias)

    keys = jax.random.split(key, 16)
    p = {}
    # toy ResNet-style backbone, output_stride = 16
    p["b1"] = conv_bn(keys[0], 8, 3, 3)
    p["b2"] = conv_bn(keys[1], 16, 8, 3)    # -> low_level_feat
    p["b3"] = conv_bn(keys[2], 32, 16, 3)
    p["b4"] = conv_bn(keys[3], 32, 32, 3)   # -> high-level x
    # ASPP (dilations 1, 6, 12, 18 for output_stride=16)
    p["aspp1"] = conv_bn(keys[4], 16, 32, 1)
    p["aspp2"] = conv_bn(keys[5], 16, 32, 3)
    p["aspp3"] = conv_bn(keys[6], 16, 32, 3)
    p["aspp4"] = conv_bn(keys[7], 16, 32, 3)
    p["aspp_pool"] = conv_bn(keys[8], 16, 32, 1)
    p["aspp_proj"] = conv_bn(keys[9], 16, 80, 1)
    # decoder (num_classes = 2)
    p["dec_low"] = conv_bn(keys[10], 8, 16, 1)
    p["dec_conv1"] = conv_bn(keys[11], 16, 24, 3)
    p["dec_conv2"] = conv_bn(keys[12], 16, 16, 3)
    w_cls = _init_conv(keys[13], 2, 16, 1, 1)
    b_cls = 0.01 * jax.random.normal(keys[14], (2,), jnp.float32)
    p["dec_cls"] = (w_cls, jnp.ones((2,), jnp.float32), b_cls)
    return p


# ---------------------------------------------------------------------------
# DeepLab.forward
# ---------------------------------------------------------------------------
def deeplab_forward(params, x_nchw):
    x = jnp.transpose(x_nchw, (1, 0, 2, 3))  # NCHW -> (C, N, H, W): spatial on lanes
    in_h, in_w = x.shape[2], x.shape[3]

    # --- backbone: x, low_level_feat, boundary ---
    h = conv2d_cf(x, *params["b1"], stride=2, padding=1)
    h = conv2d_cf(h, *params["b2"], stride=2, padding=1)
    low_level = h          # `boundary` in the reference is this same feature; unused downstream
    h = conv2d_cf(h, *params["b3"], stride=2, padding=1)
    h = conv2d_cf(h, *params["b4"], stride=2, padding=1)

    # --- ASPP ---
    a1 = conv2d_cf(h, *params["aspp1"])
    a2 = conv2d_cf(h, *params["aspp2"], dilation=6, padding=6)
    a3 = conv2d_cf(h, *params["aspp3"], dilation=12, padding=12)
    a4 = conv2d_cf(h, *params["aspp4"], dilation=18, padding=18)
    gp = global_avg_pool_cf(h)                          # (32, N, 1, 1), plain jnp.mean
    gp = conv2d_cf(gp, *params["aspp_pool"])            # 1x1 conv through fused matmul
    gp = jnp.broadcast_to(gp, (gp.shape[0], gp.shape[1], h.shape[2], h.shape[3]))
    # 5-way channel concat fused into the 1x1 projection matmul (no HBM concat round trip)
    h = conv2d_cf([a1, a2, a3, a4, gp], *params["aspp_proj"])

    # --- decoder ---
    ll = conv2d_cf(low_level, *params["dec_low"])
    h = bilinear_resize_cf(h, ll.shape[2], ll.shape[3], out_dtype=jnp.bfloat16)
    # concat(h, low_level) fused into dec_conv1's K-reduction
    h = conv2d_cf([h, ll], *params["dec_conv1"], padding=1)
    h = conv2d_cf(h, *params["dec_conv2"], padding=1)
    h = conv2d_cf(h, *params["dec_cls"], relu=False, out_dtype=jnp.float32)  # classifier

    # --- final upsample to the input spatial size (f32 throughout) ---
    h = bilinear_resize_cf(h, in_h, in_w, out_dtype=jnp.float32)
    return jnp.transpose(h, (1, 0, 2, 3))  # back to NCHW


if __name__ == "__main__":
    key = jax.random.PRNGKey(0)
    kx, kp = jax.random.split(key)
    x = jax.random.normal(kx, (2, 3, 32, 32), jnp.float32)  # NCHW, like the torch module
    params = init_params(kp)

    fwd = jax.jit(deeplab_forward)
    out = fwd(params, x)
    out = jax.block_until_ready(out)

    assert out.shape == (2, 2, 32, 32), out.shape  # (N, num_classes, H, W)
    assert out.dtype == jnp.float32
    assert bool(jnp.all(jnp.isfinite(out)))
    print("KERNEL_OK")
</pallas_src>

<mosaic_0001>
module attributes {stable_mosaic.version = 11 : i64} {
  func.func private @main(%arg0: i32) attributes {dimension_semantics = [#tpu.dimension_semantics<core_parallel>], iteration_bounds = array<i64: 2>, tpu.core_type = #tpu.core_type<sc_scalar_subcore>, window_params = []} {
    return
  }
}

module attributes {stable_mosaic.version = 11 : i64} {
  func.func private @main(%arg0: i32) attributes {dimension_semantics = [#tpu.dimension_semantics<core_parallel>], iteration_bounds = array<i64: 2>, tpu.core_type = #tpu.core_type<sc_scalar_subcore>, window_params = []} {
    return
  }
}

module attributes {stable_mosaic.version = 11 : i64} {
  func.func @_mm_fused_kernel(%arg0: i32, %arg1: i32, %arg2: memref<16x27xbf16, #tpu.memory_space<vmem>>, %arg3: memref<27x256xbf16, #tpu.memory_space<vmem>>, %arg4: memref<16x1xf32, #tpu.memory_space<vmem>>, %arg5: memref<16x256xbf16, #tpu.memory_space<vmem>>) attributes {dimension_semantics = [#tpu.dimension_semantics<parallel>, #tpu.dimension_semantics<parallel>], iteration_bounds = array<i64: 1, 2>, scalar_prefetch = 0 : i64, scratch_operands = 0 : i64, tpu.core_type = #tpu.core_type<tc>, window_params = [{transform_indices = @transform_0, window_bounds = array<i64: 16, 27>}, {transform_indices = @transform_1, window_bounds = array<i64: 27, 256>}, {transform_indices = @transform_2, window_bounds = array<i64: 16, 1>}, {transform_indices = @transform_3, window_bounds = array<i64: 16, 256>}]} {
    %c0 = arith.constant 0 : index
    %c0_0 = arith.constant 0 : index
    %0 = vector.load %arg2[%c0, %c0_0] : memref<16x27xbf16, #tpu.memory_space<vmem>>, vector<16x27xbf16>
    %c0_1 = arith.constant 0 : index
    %c0_2 = arith.constant 0 : index
    %1 = vector.load %arg3[%c0_1, %c0_2] : memref<27x256xbf16, #tpu.memory_space<vmem>>, vector<27x256xbf16>
    %cst = arith.constant dense<0.000000e+00> : vector<16x256xf32>
    %2 = tpu.matmul %0, %1, %cst {dimension_numbers = #tpu.dot_dimension_numbers<[1], [0], [0], [1], [0, 0, 1, 1], [], []>} : vector<16x27xbf16>, vector<27x256xbf16>, vector<16x256xf32> -> vector<16x256xf32>
    %c0_3 = arith.constant 0 : index
    %c0_4 = arith.constant 0 : index
    %3 = vector.load %arg4[%c0_3, %c0_4] : memref<16x1xf32, #tpu.memory_space<vmem>>, vector<16x1xf32>
    %4 = vector.broadcast %3 : vector<16x1xf32> to vector<16x256xf32>
    %5 = arith.addf %2, %4 : vector<16x256xf32>
    %cst_5 = arith.constant 0.000000e+00 : f32
    %6 = vector.broadcast %cst_5 : f32 to vector<16x256xf32>
    %7 = arith.maximumf %5, %6 : vector<16x256xf32>
    %8 = arith.truncf %7 : vector<16x256xf32> to vector<16x256xbf16>
    %c0_6 = arith.constant 0 : index
    %c0_7 = arith.constant 0 : index
    %9 = vector.load %arg5[%c0_6, %c0_7] : memref<16x256xbf16, #tpu.memory_space<vmem>>, vector<16x256xbf16>
    tpu.vector_store %arg5[%c0_6, %c0_7], %8 {strides = array<i32>} : memref<16x256xbf16, #tpu.memory_space<vmem>>, vector<16x256xbf16>,
    return
  }
  func.func @transform_0(%arg0: i32, %arg1: i32) -> (i32, i32) {
    %c0_i32 = arith.constant 0 : i32
    %c0_i32_0 = arith.constant 0 : i32
    return %arg0, %c0_i32 : i32, i32
  }
  func.func @transform_1(%arg0: i32, %arg1: i32) -> (i32, i32) {
    %c0_i32 = arith.constant 0 : i32
    %c0_i32_0 = arith.constant 0 : i32
    return %c0_i32, %arg1 : i32, i32
  }
  func.func @transform_2(%arg0: i32, %arg1: i32) -> (i32, i32) {
    %c0_i32 = arith.constant 0 : i32
    %c0_i32_0 = arith.constant 0 : i32
    return %arg0, %c0_i32 : i32, i32
  }
  func.func @transform_3(%arg0: i32, %arg1: i32) -> (i32, i32) {
    %c0_i32 = arith.constant 0 : i32
    return %arg0, %arg1 : i32, i32
  }
}

module attributes {stable_mosaic.version = 11 : i64} {
  func.func @_mm_fused_kernel(%arg0: i32, %arg1: i32, %arg2: memref<16x72xbf16, #tpu.memory_space<vmem>>, %arg3: memref<72x128xbf16, #tpu.memory_space<vmem>>, %arg4: memref<16x1xf32, #tpu.memory_space<vmem>>, %arg5: memref<16x128xbf16, #tpu.memory_space<vmem>>) attributes {dimension_semantics = [#tpu.dimension_semantics<parallel>, #tpu.dimension_semantics<parallel>], iteration_bounds = array<i64: 1, 1>, scalar_prefetch = 0 : i64, scratch_operands = 0 : i64, tpu.core_type = #tpu.core_type<tc>, window_params = [{transform_indices = @transform_0, window_bounds = array<i64: 16, 72>}, {transform_indices = @transform_1, window_bounds = array<i64: 72, 128>}, {transform_indices = @transform_2, window_bounds = array<i64: 16, 1>}, {transform_indices = @transform_3, window_bounds = array<i64: 16, 128>}]} {
    %c0 = arith.constant 0 : index
    %c0_0 = arith.constant 0 : index
    %0 = vector.load %arg2[%c0, %c0_0] : memref<16x72xbf16, #tpu.memory_space<vmem>>, vector<16x72xbf16>
    %c0_1 = arith.constant 0 : index
    %c0_2 = arith.constant 0 : index
    %1 = vector.load %arg3[%c0_1, %c0_2] : memref<72x128xbf16, #tpu.memory_space<vmem>>, vector<72x128xbf16>
    %cst = arith.constant dense<0.000000e+00> : vector<16x128xf32>
    %2 = tpu.matmul %0, %1, %cst {dimension_numbers = #tpu.dot_dimension_numbers<[1], [0], [0], [1], [0, 0, 1, 1], [], []>} : vector<16x72xbf16>, vector<72x128xbf16>, vector<16x128xf32> -> vector<16x128xf32>
    %c0_3 = arith.constant 0 : index
    %c0_4 = arith.constant 0 : index
    %3 = vector.load %arg4[%c0_3, %c0_4] : memref<16x1xf32, #tpu.memory_space<vmem>>, vector<16x1xf32>
    %4 = vector.broadcast %3 : vector<16x1xf32> to vector<16x128xf32>
    %5 = arith.addf %2, %4 : vector<16x128xf32>
    %cst_5 = arith.constant 0.000000e+00 : f32
    %6 = vector.broadcast %cst_5 : f32 to vector<16x128xf32>
    %7 = arith.maximumf %5, %6 : vector<16x128xf32>
    %8 = arith.truncf %7 : vector<16x128xf32> to vector<16x128xbf16>
    %c0_6 = arith.constant 0 : index
    %c0_7 = arith.constant 0 : index
    %9 = vector.load %arg5[%c0_6, %c0_7] : memref<16x128xbf16, #tpu.memory_space<vmem>>, vector<16x128xbf16>
    tpu.vector_store %arg5[%c0_6, %c0_7], %8 {strides = array<i32>} : memref<16x128xbf16, #tpu.memory_space<vmem>>, vector<16x128xbf16>,
    return
  }
  func.func @transform_0(%arg0: i32, %arg1: i32) -> (i32, i32) {
    %c0_i32 = arith.constant 0 : i32
    %c0_i32_0 = arith.constant 0 : i32
    return %arg0, %c0_i32 : i32, i32
  }
  func.func @transform_1(%arg0: i32, %arg1: i32) -> (i32, i32) {
    %c0_i32 = arith.constant 0 : i32
    %c0_i32_0 = arith.constant 0 : i32
    return %c0_i32, %arg1 : i32, i32
  }
  func.func @transform_2(%arg0: i32, %arg1: i32) -> (i32, i32) {
    %c0_i32 = arith.constant 0 : i32
    %c0_i32_0 = arith.constant 0 : i32
    return %arg0, %c0_i32 : i32, i32
  }
  func.func @transform_3(%arg0: i32, %arg1: i32) -> (i32, i32) {
    %c0_i32 = arith.constant 0 : i32
    return %arg0, %arg1 : i32, i32
  }
}

module attributes {stable_mosaic.version = 11 : i64} {
  func.func @_mm_fused_kernel(%arg0: i32, %arg1: i32, %arg2: memref<32x144xbf16, #tpu.memory_space<vmem>>, %arg3: memref<144x32xbf16, #tpu.memory_space<vmem>>, %arg4: memref<32x1xf32, #tpu.memory_space<vmem>>, %arg5: memref<32x32xbf16, #tpu.memory_space<vmem>>) attributes {dimension_semantics = [#tpu.dimension_semantics<parallel>, #tpu.dimension_semantics<parallel>], iteration_bounds = array<i64: 1, 1>, scalar_prefetch = 0 : i64, scratch_operands = 0 : i64, tpu.core_type = #tpu.core_type<tc>, window_params = [{transform_indices = @transform_0, window_bounds = array<i64: 32, 144>}, {transform_indices = @transform_1, window_bounds = array<i64: 144, 32>}, {transform_indices = @transform_2, window_bounds = array<i64: 32, 1>}, {transform_indices = @transform_3, window_bounds = array<i64: 32, 32>}]} {
    %c0 = arith.constant 0 : index
    %c0_0 = arith.constant 0 : index
    %0 = vector.load %arg2[%c0, %c0_0] : memref<32x144xbf16, #tpu.memory_space<vmem>>, vector<32x144xbf16>
    %c0_1 = arith.constant 0 : index
    %c0_2 = arith.constant 0 : index
    %1 = vector.load %arg3[%c0_1, %c0_2] : memref<144x32xbf16, #tpu.memory_space<vmem>>, vector<144x32xbf16>
    %cst = arith.constant dense<0.000000e+00> : vector<32x32xf32>
    %2 = tpu.matmul %0, %1, %cst {dimension_numbers = #tpu.dot_dimension_numbers<[1], [0], [0], [1], [0, 0, 1, 1], [], []>} : vector<32x144xbf16>, vector<144x32xbf16>, vector<32x32xf32> -> vector<32x32xf32>
    %c0_3 = arith.constant 0 : index
    %c0_4 = arith.constant 0 : index
    %3 = vector.load %arg4[%c0_3, %c0_4] : memref<32x1xf32, #tpu.memory_space<vmem>>, vector<32x1xf32>
    %4 = vector.broadcast %3 : vector<32x1xf32> to vector<32x32xf32>
    %5 = arith.addf %2, %4 : vector<32x32xf32>
    %cst_5 = arith.constant 0.000000e+00 : f32
    %6 = vector.broadcast %cst_5 : f32 to vector<32x32xf32>
    %7 = arith.maximumf %5, %6 : vector<32x32xf32>
    %8 = arith.truncf %7 : vector<32x32xf32> to vector<32x32xbf16>
    %c0_6 = arith.constant 0 : index
    %c0_7 = arith.constant 0 : index
    %9 = vector.load %arg5[%c0_6, %c0_7] : memref<32x32xbf16, #tpu.memory_space<vmem>>, vector<32x32xbf16>
    tpu.vector_store %arg5[%c0_6, %c0_7], %8 {strides = array<i32>} : memref<32x32xbf16, #tpu.memory_space<vmem>>, vector<32x32xbf16>,
    return
  }
  func.func @transform_0(%arg0: i32, %arg1: i32) -> (i32, i32) {
    %c0_i32 = arith.constant 0 : i32
    %c0_i32_0 = arith.constant 0 : i32
    return %arg0, %c0_i32 : i32, i32
  }
  func.func @transform_1(%arg0: i32, %arg1: i32) -> (i32, i32) {
    %c0_i32 = arith.constant 0 : i32
    %c0_i32_0 = arith.constant 0 : i32
    return %c0_i32, %arg1 : i32, i32
  }
  func.func @transform_2(%arg0: i32, %arg1: i32) -> (i32, i32) {
    %c0_i32 = arith.constant 0 : i32
    %c0_i32_0 = arith.constant 0 : i32
    return %arg0, %c0_i32 : i32, i32
  }
  func.func @transform_3(%arg0: i32, %arg1: i32) -> (i32, i32) {
    %c0_i32 = arith.constant 0 : i32
    return %arg0, %arg1 : i32, i32
  }
}

module attributes {stable_mosaic.version = 11 : i64} {
  func.func @_mm_fused_kernel(%arg0: i32, %arg1: i32, %arg2: memref<16x16xbf16, #tpu.memory_space<vmem>>, %arg3: memref<16x128xbf16, #tpu.memory_space<vmem>>, %arg4: memref<16x1xf32, #tpu.memory_space<vmem>>, %arg5: memref<16x128xbf16, #tpu.memory_space<vmem>>) attributes {dimension_semantics = [#tpu.dimension_semantics<parallel>, #tpu.dimension_semantics<parallel>], iteration_bounds = array<i64: 1, 1>, scalar_prefetch = 0 : i64, scratch_operands = 0 : i64, tpu.core_type = #tpu.core_type<tc>, window_params = [{transform_indices = @transform_0, window_bounds = array<i64: 16, 16>}, {transform_indices = @transform_1, window_bounds = array<i64: 16, 128>}, {transform_indices = @transform_2, window_bounds = array<i64: 16, 1>}, {transform_indices = @transform_3, window_bounds = array<i64: 16, 128>}]} {
    %c0 = arith.constant 0 : index
    %c0_0 = arith.constant 0 : index
    %0 = vector.load %arg2[%c0, %c0_0] : memref<16x16xbf16, #tpu.memory_space<vmem>>, vector<16x16xbf16>
    %c0_1 = arith.constant 0 : index
    %c0_2 = arith.constant 0 : index
    %1 = vector.load %arg3[%c0_1, %c0_2] : memref<16x128xbf16, #tpu.memory_space<vmem>>, vector<16x128xbf16>
    %cst = arith.constant dense<0.000000e+00> : vector<16x128xf32>
    %2 = tpu.matmul %0, %1, %cst {dimension_numbers = #tpu.dot_dimension_numbers<[1], [0], [0], [1], [0, 0, 1, 1], [], []>} : vector<16x16xbf16>, vector<16x128xbf16>, vector<16x128xf32> -> vector<16x128xf32>
    %c0_3 = arith.constant 0 : index
    %c0_4 = arith.constant 0 : index
    %3 = vector.load %arg4[%c0_3, %c0_4] : memref<16x1xf32, #tpu.memory_space<vmem>>, vector<16x1xf32>
    %4 = vector.broadcast %3 : vector<16x1xf32> to vector<16x128xf32>
    %5 = arith.addf %2, %4 : vector<16x128xf32>
    %cst_5 = arith.constant 0.000000e+00 : f32
    %6 = vector.broadcast %cst_5 : f32 to vector<16x128xf32>
    %7 = arith.maximumf %5, %6 : vector<16x128xf32>
    %8 = arith.truncf %7 : vector<16x128xf32> to vector<16x128xbf16>
    %c0_6 = arith.constant 0 : index
    %c0_7 = arith.constant 0 : index
    %9 = vector.load %arg5[%c0_6, %c0_7] : memref<16x128xbf16, #tpu.memory_space<vmem>>, vector<16x128xbf16>
    tpu.vector_store %arg5[%c0_6, %c0_7], %8 {strides = array<i32>} : memref<16x128xbf16, #tpu.memory_space<vmem>>, vector<16x128xbf16>,
    return
  }
  func.func @transform_0(%arg0: i32, %arg1: i32) -> (i32, i32) {
    %c0_i32 = arith.constant 0 : i32
    %c0_i32_0 = arith.constant 0 : i32
    return %arg0, %c0_i32 : i32, i32
  }
  func.func @transform_1(%arg0: i32, %arg1: i32) -> (i32, i32) {
    %c0_i32 = arith.constant 0 : i32
    %c0_i32_0 = arith.constant 0 : i32
    return %c0_i32, %arg1 : i32, i32
  }
  func.func @transform_2(%arg0: i32, %arg1: i32) -> (i32, i32) {
    %c0_i32 = arith.constant 0 : i32
    %c0_i32_0 = arith.constant 0 : i32
    return %arg0, %c0_i32 : i32, i32
  }
  func.func @transform_3(%arg0: i32, %arg1: i32) -> (i32, i32) {
    %c0_i32 = arith.constant 0 : i32
    return %arg0, %arg1 : i32, i32
  }
}

module attributes {stable_mosaic.version = 11 : i64} {
  func.func @_mm_fused_kernel(%arg0: i32, %arg1: i32, %arg2: memref<32x288xbf16, #tpu.memory_space<vmem>>, %arg3: memref<288x8xbf16, #tpu.memory_space<vmem>>, %arg4: memref<32x1xf32, #tpu.memory_space<vmem>>, %arg5: memref<32x8xbf16, #tpu.memory_space<vmem>>) attributes {dimension_semantics = [#tpu.dimension_semantics<parallel>, #tpu.dimension_semantics<parallel>], iteration_bounds = array<i64: 1, 1>, scalar_prefetch = 0 : i64, scratch_operands = 0 : i64, tpu.core_type = #tpu.core_type<tc>, window_params = [{transform_indices = @transform_0, window_bounds = array<i64: 32, 288>}, {transform_indices = @transform_1, window_bounds = array<i64: 288, 8>}, {transform_indices = @transform_2, window_bounds = array<i64: 32, 1>}, {transform_indices = @transform_3, window_bounds = array<i64: 32, 8>}]} {
    %c0 = arith.constant 0 : index
    %c0_0 = arith.constant 0 : index
    %0 = vector.load %arg2[%c0, %c0_0] : memref<32x288xbf16, #tpu.memory_space<vmem>>, vector<32x288xbf16>
    %c0_1 = arith.constant 0 : index
    %c0_2 = arith.constant 0 : index
    %1 = vector.load %arg3[%c0_1, %c0_2] : memref<288x8xbf16, #tpu.memory_space<vmem>>, vector<288x8xbf16>
    %cst = arith.constant dense<0.000000e+00> : vector<32x8xf32>
    %2 = tpu.matmul %0, %1, %cst {dimension_numbers = #tpu.dot_dimension_numbers<[1], [0], [0], [1], [0, 0, 1, 1], [], []>} : vector<32x288xbf16>, vector<288x8xbf16>, vector<32x8xf32> -> vector<32x8xf32>
    %c0_3 = arith.constant 0 : index
    %c0_4 = arith.constant 0 : index
    %3 = vector.load %arg4[%c0_3, %c0_4] : memref<32x1xf32, #tpu.memory_space<vmem>>, vector<32x1xf32>
    %4 = vector.broadcast %3 : vector<32x1xf32> to vector<32x8xf32>
    %5 = arith.addf %2, %4 : vector<32x8xf32>
    %cst_5 = arith.constant 0.000000e+00 : f32
    %6 = vector.broadcast %cst_5 : f32 to vector<32x8xf32>
    %7 = arith.maximumf %5, %6 : vector<32x8xf32>
    %8 = arith.truncf %7 : vector<32x8xf32> to vector<32x8xbf16>
    %c0_6 = arith.constant 0 : index
    %c0_7 = arith.constant 0 : index
    %9 = vector.load %arg5[%c0_6, %c0_7] : memref<32x8xbf16, #tpu.memory_space<vmem>>, vector<32x8xbf16>
    tpu.vector_store %arg5[%c0_6, %c0_7], %8 {strides = array<i32>} : memref<32x8xbf16, #tpu.memory_space<vmem>>, vector<32x8xbf16>,
    return
  }
  func.func @transform_0(%arg0: i32, %arg1: i32) -> (i32, i32) {
    %c0_i32 = arith.constant 0 : i32
    %c0_i32_0 = arith.constant 0 : i32
    return %arg0, %c0_i32 : i32, i32
  }
  func.func @transform_1(%arg0: i32, %arg1: i32) -> (i32, i32) {
    %c0_i32 = arith.constant 0 : i32
    %c0_i32_0 = arith.constant 0 : i32
    return %c0_i32, %arg1 : i32, i32
  }
  func.func @transform_2(%arg0: i32, %arg1: i32) -> (i32, i32) {
    %c0_i32 = arith.constant 0 : i32
    %c0_i32_0 = arith.constant 0 : i32
    return %arg0, %c0_i32 : i32, i32
  }
  func.func @transform_3(%arg0: i32, %arg1: i32) -> (i32, i32) {
    %c0_i32 = arith.constant 0 : i32
    return %arg0, %arg1 : i32, i32
  }
}

module attributes {stable_mosaic.version = 11 : i64} {
  func.func @_mm_fused_kernel(%arg0: i32, %arg1: i32, %arg2: memref<16x32xbf16, #tpu.memory_space<vmem>>, %arg3: memref<32x2xbf16, #tpu.memory_space<vmem>>, %arg4: memref<16x1xf32, #tpu.memory_space<vmem>>, %arg5: memref<16x2xbf16, #tpu.memory_space<vmem>>) attributes {dimension_semantics = [#tpu.dimension_semantics<parallel>, #tpu.dimension_semantics<parallel>], iteration_bounds = array<i64: 1, 1>, scalar_prefetch = 0 : i64, scratch_operands = 0 : i64, tpu.core_type = #tpu.core_type<tc>, window_params = [{transform_indices = @transform_0, window_bounds = array<i64: 16, 32>}, {transform_indices = @transform_1, window_bounds = array<i64: 32, 2>}, {transform_indices = @transform_2, window_bounds = array<i64: 16, 1>}, {transform_indices = @transform_3, window_bounds = array<i64: 16, 2>}]} {
    %c0 = arith.constant 0 : index
    %c0_0 = arith.constant 0 : index
    %0 = vector.load %arg2[%c0, %c0_0] : memref<16x32xbf16, #tpu.memory_space<vmem>>, vector<16x32xbf16>
    %c0_1 = arith.constant 0 : index
    %c0_2 = arith.constant 0 : index
    %1 = vector.load %arg3[%c0_1, %c0_2] : memref<32x2xbf16, #tpu.memory_space<vmem>>, vector<32x2xbf16>
    %cst = arith.constant dense<0.000000e+00> : vector<16x2xf32>
    %2 = tpu.matmul %0, %1, %cst {dimension_numbers = #tpu.dot_dimension_numbers<[1], [0], [0], [1], [0, 0, 1, 1], [], []>} : vector<16x32xbf16>, vector<32x2xbf16>, vector<16x2xf32> -> vector<16x2xf32>
    %c0_3 = arith.constant 0 : index
    %c0_4 = arith.constant 0 : index
    %3 = vector.load %arg4[%c0_3, %c0_4] : memref<16x1xf32, #tpu.memory_space<vmem>>, vector<16x1xf32>
    %4 = vector.broadcast %3 : vector<16x1xf32> to vector<16x2xf32>
    %5 = arith.addf %2, %4 : vector<16x2xf32>
    %cst_5 = arith.constant 0.000000e+00 : f32
    %6 = vector.broadcast %cst_5 : f32 to vector<16x2xf32>
    %7 = arith.maximumf %5, %6 : vector<16x2xf32>
    %8 = arith.truncf %7 : vector<16x2xf32> to vector<16x2xbf16>
    %c0_6 = arith.constant 0 : index
    %c0_7 = arith.constant 0 : index
    %9 = vector.load %arg5[%c0_6, %c0_7] : memref<16x2xbf16, #tpu.memory_space<vmem>>, vector<16x2xbf16>
    tpu.vector_store %arg5[%c0_6, %c0_7], %8 {strides = array<i32>} : memref<16x2xbf16, #tpu.memory_space<vmem>>, vector<16x2xbf16>,
    return
  }
  func.func @transform_0(%arg0: i32, %arg1: i32) -> (i32, i32) {
    %c0_i32 = arith.constant 0 : i32
    %c0_i32_0 = arith.constant 0 : i32
    return %arg0, %c0_i32 : i32, i32
  }
  func.func @transform_1(%arg0: i32, %arg1: i32) -> (i32, i32) {
    %c0_i32 = arith.constant 0 : i32
    %c0_i32_0 = arith.constant 0 : i32
    return %c0_i32, %arg1 : i32, i32
  }
  func.func @transform_2(%arg0: i32, %arg1: i32) -> (i32, i32) {
    %c0_i32 = arith.constant 0 : i32
    %c0_i32_0 = arith.constant 0 : i32
    return %arg0, %c0_i32 : i32, i32
  }
  func.func @transform_3(%arg0: i32, %arg1: i32) -> (i32, i32) {
    %c0_i32 = arith.constant 0 : i32
    return %arg0, %arg1 : i32, i32
  }
}

module attributes {stable_mosaic.version = 11 : i64} {
  func.func @_mm_fused_kernel(%arg0: i32, %arg1: i32, %arg2: memref<16x16xbf16, #tpu.memory_space<vmem>>, %arg3: memref<16x16xbf16, #tpu.memory_space<vmem>>, %arg4: memref<16x16xbf16, #tpu.memory_space<vmem>>, %arg5: memref<16x16xbf16, #tpu.memory_space<vmem>>, %arg6: memref<16x16xbf16, #tpu.memory_space<vmem>>, %arg7: memref<16x8xbf16, #tpu.memory_space<vmem>>, %arg8: memref<16x8xbf16, #tpu.memory_space<vmem>>, %arg9: memref<16x8xbf16, #tpu.memory_space<vmem>>, %arg10: memref<16x8xbf16, #tpu.memory_space<vmem>>, %arg11: memref<16x8xbf16, #tpu.memory_space<vmem>>, %arg12: memref<16x1xf32, #tpu.memory_space<vmem>>, %arg13: memref<16x8xbf16, #tpu.memory_space<vmem>>) attributes {dimension_semantics = [#tpu.dimension_semantics<parallel>, #tpu.dimension_semantics<parallel>], iteration_bounds = array<i64: 1, 1>, scalar_prefetch = 0 : i64, scratch_operands = 0 : i64, tpu.core_type = #tpu.core_type<tc>, window_params = [{transform_indices = @transform_0, window_bounds = array<i64: 16, 16>}, {transform_indices = @transform_1, window_bounds = array<i64: 16, 16>}, {transform_indices = @transform_2, window_bounds = array<i64: 16, 16>}, {transform_indices = @transform_3, window_bounds = array<i64: 16, 16>}, {transform_indices = @transform_4, window_bounds = array<i64: 16, 16>}, {transform_indices = @transform_5, window_bounds = array<i64: 16, 8>}, {transform_indices = @transform_6, window_bounds = array<i64: 16, 8>}, {transform_indices = @transform_7, window_bounds = array<i64: 16, 8>}, {transform_indices = @transform_8, window_bounds = array<i64: 16, 8>}, {transform_indices = @transform_9, window_bounds = array<i64: 16, 8>}, {transform_indices = @transform_10, window_bounds = array<i64: 16, 1>}, {transform_indices = @transform_11, window_bounds = array<i64: 16, 8>}]} {
    %c0 = arith.constant 0 : index
    %c0_0 = arith.constant 0 : index
    %0 = vector.load %arg2[%c0, %c0_0] : memref<16x16xbf16, #tpu.memory_space<vmem>>, vector<16x16xbf16>
    %c0_1 = arith.constant 0 : index
    %c0_2 = arith.constant 0 : index
    %1 = vector.load %arg7[%c0_1, %c0_2] : memref<16x8xbf16, #tpu.memory_space<vmem>>, vector<16x8xbf16>
    %cst = arith.constant dense<0.000000e+00> : vector<16x8xf32>
    %2 = tpu.matmul %0, %1, %cst {dimension_numbers = #tpu.dot_dimension_numbers<[1], [0], [0], [1], [0, 0, 1, 1], [], []>} : vector<16x16xbf16>, vector<16x8xbf16>, vector<16x8xf32> -> vector<16x8xf32>
    %c0_3 = arith.constant 0 : index
    %c0_4 = arith.constant 0 : index
    %3 = vector.load %arg3[%c0_3, %c0_4] : memref<16x16xbf16, #tpu.memory_space<vmem>>, vector<16x16xbf16>
    %c0_5 = arith.constant 0 : index
    %c0_6 = arith.constant 0 : index
    %4 = vector.load %arg8[%c0_5, %c0_6] : memref<16x8xbf16, #tpu.memory_space<vmem>>, vector<16x8xbf16>
    %cst_7 = arith.constant dense<0.000000e+00> : vector<16x8xf32>
    %5 = tpu.matmul %3, %4, %cst_7 {dimension_numbers = #tpu.dot_dimension_numbers<[1], [0], [0], [1], [0, 0, 1, 1], [], []>} : vector<16x16xbf16>, vector<16x8xbf16>, vector<16x8xf32> -> vector<16x8xf32>
    %6 = arith.addf %2, %5 : vector<16x8xf32>
    %c0_8 = arith.constant 0 : index
    %c0_9 = arith.constant 0 : index
    %7 = vector.load %arg4[%c0_8, %c0_9] : memref<16x16xbf16, #tpu.memory_space<vmem>>, vector<16x16xbf16>
    %c0_10 = arith.constant 0 : index
    %c0_11 = arith.constant 0 : index
    %8 = vector.load %arg9[%c0_10, %c0_11] : memref<16x8xbf16, #tpu.memory_space<vmem>>, vector<16x8xbf16>
    %cst_12 = arith.constant dense<0.000000e+00> : vector<16x8xf32>
    %9 = tpu.matmul %7, %8, %cst_12 {dimension_numbers = #tpu.dot_dimension_numbers<[1], [0], [0], [1], [0, 0, 1, 1], [], []>} : vector<16x16xbf16>, vector<16x8xbf16>, vector<16x8xf32> -> vector<16x8xf32>
    %10 = arith.addf %6, %9 : vector<16x8xf32>
    %c0_13 = arith.constant 0 : index
    %c0_14 = arith.constant 0 : index
    %11 = vector.load %arg5[%c0_13, %c0_14] : memref<16x16xbf16, #tpu.memory_space<vmem>>, vector<16x16xbf16>
    %c0_15 = arith.constant 0 : index
    %c0_16 = arith.constant 0 : index
    %12 = vector.load %arg10[%c0_15, %c0_16] : memref<16x8xbf16, #tpu.memory_space<vmem>>, vector<16x8xbf16>
    %cst_17 = arith.constant dense<0.000000e+00> : vector<16x8xf32>
    %13 = tpu.matmul %11, %12, %cst_17 {dimension_numbers = #tpu.dot_dimension_numbers<[1], [0], [0], [1], [0, 0, 1, 1], [], []>} : vector<16x16xbf16>, vector<16x8xbf16>, vector<16x8xf32> -> vector<16x8xf32>
    %14 = arith.addf %10, %13 : vector<16x8xf32>
    %c0_18 = arith.constant 0 : index
    %c0_19 = arith.constant 0 : index
    %15 = vector.load %arg6[%c0_18, %c0_19] : memref<16x16xbf16, #tpu.memory_space<vmem>>, vector<16x16xbf16>
    %c0_20 = arith.constant 0 : index
    %c0_21 = arith.constant 0 : index
    %16 = vector.load %arg11[%c0_20, %c0_21] : memref<16x8xbf16, #tpu.memory_space<vmem>>, vector<16x8xbf16>
    %cst_22 = arith.constant dense<0.000000e+00> : vector<16x8xf32>
    %17 = tpu.matmul %15, %16, %cst_22 {dimension_numbers = #tpu.dot_dimension_numbers<[1], [0], [0], [1], [0, 0, 1, 1], [], []>} : vector<16x16xbf16>, vector<16x8xbf16>, vector<16x8xf32> -> vector<16x8xf32>
    %18 = arith.addf %14, %17 : vector<16x8xf32>
    %c0_23 = arith.constant 0 : index
    %c0_24 = arith.constant 0 : index
    %19 = vector.load %arg12[%c0_23, %c0_24] : memref<16x1xf32, #tpu.memory_space<vmem>>, vector<16x1xf32>
    %20 = vector.broadcast %19 : vector<16x1xf32> to vector<16x8xf32>
    %21 = arith.addf %18, %20 : vector<16x8xf32>
    %cst_25 = arith.constant 0.000000e+00 : f32
    %22 = vector.broadcast %cst_25 : f32 to vector<16x8xf32>
    %23 = arith.maximumf %21, %22 : vector<16x8xf32>
    %24 = arith.truncf %23 : vector<16x8xf32> to vector<16x8xbf16>
    %c0_26 = arith.constant 0 : index
    %c0_27 = arith.constant 0 : index
    %25 = vector.load %arg13[%c0_26, %c0_27] : memref<16x8xbf16, #tpu.memory_space<vmem>>, vector<16x8xbf16>
    tpu.vector_store %arg13[%c0_26, %c0_27], %24 {strides = array<i32>} : memref<16x8xbf16, #tpu.memory_space<vmem>>, vector<16x8xbf16>,
    return
  }
  func.func @transform_0(%arg0: i32, %arg1: i32) -> (i32, i32) {
    %c0_i32 = arith.constant 0 : i32
    %c0_i32_0 = arith.constant 0 : i32
    return %arg0, %c0_i32 : i32, i32
  }
  func.func @transform_1(%arg0: i32, %arg1: i32) -> (i32, i32) {
    %c0_i32 = arith.constant 0 : i32
    %c0_i32_0 = arith.constant 0 : i32
    return %arg0, %c0_i32 : i32, i32
  }
  func.func @transform_2(%arg0: i32, %arg1: i32) -> (i32, i32) {
    %c0_i32 = arith.constant 0 : i32
    %c0_i32_0 = arith.constant 0 : i32
    return %arg0, %c0_i32 : i32, i32
  }
  func.func @transform_3(%arg0: i32, %arg1: i32) -> (i32, i32) {
    %c0_i32 = arith.constant 0 : i32
    %c0_i32_0 = arith.constant 0 : i32
    return %arg0, %c0_i32 : i32, i32
  }
  func.func @transform_4(%arg0: i32, %arg1: i32) -> (i32, i32) {
    %c0_i32 = arith.constant 0 : i32
    %c0_i32_0 = arith.constant 0 : i32
    return %arg0, %c0_i32 : i32, i32
  }
  func.func @transform_5(%arg0: i32, %arg1: i32) -> (i32, i32) {
    %c0_i32 = arith.constant 0 : i32
    %c0_i32_0 = arith.constant 0 : i32
    return %c0_i32, %arg1 : i32, i32
  }
  func.func @transform_6(%arg0: i32, %arg1: i32) -> (i32, i32) {
    %c0_i32 = arith.constant 0 : i32
    %c0_i32_0 = arith.constant 0 : i32
    return %c0_i32, %arg1 : i32, i32
  }
  func.func @transform_7(%arg0: i32, %arg1: i32) -> (i32, i32) {
    %c0_i32 = arith.constant 0 : i32
    %c0_i32_0 = arith.constant 0 : i32
    return %c0_i32, %arg1 : i32, i32
  }
  func.func @transform_8(%arg0: i32, %arg1: i32) -> (i32, i32) {
    %c0_i32 = arith.constant 0 : i32
    %c0_i32_0 = arith.constant 0 : i32
    return %c0_i32, %arg1 : i32, i32
  }
  func.func @transform_9(%arg0: i32, %arg1: i32) -> (i32, i32) {
    %c0_i32 = arith.constant 0 : i32
    %c0_i32_0 = arith.constant 0 : i32
    return %c0_i32, %arg1 : i32, i32
  }
  func.func @transform_10(%arg0: i32, %arg1: i32) -> (i32, i32) {
    %c0_i32 = arith.constant 0 : i32
    %c0_i32_0 = arith.constant 0 : i32
    return %arg0, %c0_i32 : i32, i32
  }
  func.func @transform_11(%arg0: i32, %arg1: i32) -> (i32, i32) {
    %c0_i32 = arith.constant 0 : i32
    return %arg0, %arg1 : i32, i32
  }
}

module attributes {stable_mosaic.version = 11 : i64} {
  func.func @_mm_fused_kernel(%arg0: i32, %arg1: i32, %arg2: memref<16x288xbf16, #tpu.memory_space<vmem>>, %arg3: memref<288x8xbf16, #tpu.memory_space<vmem>>, %arg4: memref<16x1xf32, #tpu.memory_space<vmem>>, %arg5: memref<16x8xbf16, #tpu.memory_space<vmem>>) attributes {dimension_semantics = [#tpu.dimension_semantics<parallel>, #tpu.dimension_semantics<parallel>], iteration_bounds = array<i64: 1, 1>, scalar_prefetch = 0 : i64, scratch_operands = 0 : i64, tpu.core_type = #tpu.core_type<tc>, window_params = [{transform_indices = @transform_0, window_bounds = array<i64: 16, 288>}, {transform_indices = @transform_1, window_bounds = array<i64: 288, 8>}, {transform_indices = @transform_2, window_bounds = array<i64: 16, 1>}, {transform_indices = @transform_3, window_bounds = array<i64: 16, 8>}]} {
    %c0 = arith.constant 0 : index
    %c0_0 = arith.constant 0 : index
    %0 = vector.load %arg2[%c0, %c0_0] : memref<16x288xbf16, #tpu.memory_space<vmem>>, vector<16x288xbf16>
    %c0_1 = arith.constant 0 : index
    %c0_2 = arith.constant 0 : index
    %1 = vector.load %arg3[%c0_1, %c0_2] : memref<288x8xbf16, #tpu.memory_space<vmem>>, vector<288x8xbf16>
    %cst = arith.constant dense<0.000000e+00> : vector<16x8xf32>
    %2 = tpu.matmul %0, %1, %cst {dimension_numbers = #tpu.dot_dimension_numbers<[1], [0], [0], [1], [0, 0, 1, 1], [], []>} : vector<16x288xbf16>, vector<288x8xbf16>, vector<16x8xf32> -> vector<16x8xf32>
    %c0_3 = arith.constant 0 : index
    %c0_4 = arith.constant 0 : index
    %3 = vector.load %arg4[%c0_3, %c0_4] : memref<16x1xf32, #tpu.memory_space<vmem>>, vector<16x1xf32>
    %4 = vector.broadcast %3 : vector<16x1xf32> to vector<16x8xf32>
    %5 = arith.addf %2, %4 : vector<16x8xf32>
    %cst_5 = arith.constant 0.000000e+00 : f32
    %6 = vector.broadcast %cst_5 : f32 to vector<16x8xf32>
    %7 = arith.maximumf %5, %6 : vector<16x8xf32>
    %8 = arith.truncf %7 : vector<16x8xf32> to vector<16x8xbf16>
    %c0_6 = arith.constant 0 : index
    %c0_7 = arith.constant 0 : index
    %9 = vector.load %arg5[%c0_6, %c0_7] : memref<16x8xbf16, #tpu.memory_space<vmem>>, vector<16x8xbf16>
    tpu.vector_store %arg5[%c0_6, %c0_7], %8 {strides = array<i32>} : memref<16x8xbf16, #tpu.memory_space<vmem>>, vector<16x8xbf16>,
    return
  }
  func.func @transform_0(%arg0: i32, %arg1: i32) -> (i32, i32) {
    %c0_i32 = arith.constant 0 : i32
    %c0_i32_0 = arith.constant 0 : i32
    return %arg0, %c0_i32 : i32, i32
  }
  func.func @transform_1(%arg0: i32, %arg1: i32) -> (i32, i32) {
    %c0_i32 = arith.constant 0 : i32
    %c0_i32_0 = arith.constant 0 : i32
    return %c0_i32, %arg1 : i32, i32
  }
  func.func @transform_2(%arg0: i32, %arg1: i32) -> (i32, i32) {
    %c0_i32 = arith.constant 0 : i32
    %c0_i32_0 = arith.constant 0 : i32
    return %arg0, %c0_i32 : i32, i32
  }
  func.func @transform_3(%arg0: i32, %arg1: i32) -> (i32, i32) {
    %c0_i32 = arith.constant 0 : i32
    return %arg0, %arg1 : i32, i32
  }
}

module attributes {stable_mosaic.version = 11 : i64} {
  func.func @_mm_fused_kernel(%arg0: i32, %arg1: i32, %arg2: memref<16x32xbf16, #tpu.memory_space<vmem>>, %arg3: memref<32x8xbf16, #tpu.memory_space<vmem>>, %arg4: memref<16x1xf32, #tpu.memory_space<vmem>>, %arg5: memref<16x8xbf16, #tpu.memory_space<vmem>>) attributes {dimension_semantics = [#tpu.dimension_semantics<parallel>, #tpu.dimension_semantics<parallel>], iteration_bounds = array<i64: 1, 1>, scalar_prefetch = 0 : i64, scratch_operands = 0 : i64, tpu.core_type = #tpu.core_type<tc>, window_params = [{transform_indices = @transform_0, window_bounds = array<i64: 16, 32>}, {transform_indices = @transform_1, window_bounds = array<i64: 32, 8>}, {transform_indices = @transform_2, window_bounds = array<i64: 16, 1>}, {transform_indices = @transform_3, window_bounds = array<i64: 16, 8>}]} {
    %c0 = arith.constant 0 : index
    %c0_0 = arith.constant 0 : index
    %0 = vector.load %arg2[%c0, %c0_0] : memref<16x32xbf16, #tpu.memory_space<vmem>>, vector<16x32xbf16>
    %c0_1 = arith.constant 0 : index
    %c0_2 = arith.constant 0 : index
    %1 = vector.load %arg3[%c0_1, %c0_2] : memref<32x8xbf16, #tpu.memory_space<vmem>>, vector<32x8xbf16>
    %cst = arith.constant dense<0.000000e+00> : vector<16x8xf32>
    %2 = tpu.matmul %0, %1, %cst {dimension_numbers = #tpu.dot_dimension_numbers<[1], [0], [0], [1], [0, 0, 1, 1], [], []>} : vector<16x32xbf16>, vector<32x8xbf16>, vector<16x8xf32> -> vector<16x8xf32>
    %c0_3 = arith.constant 0 : index
    %c0_4 = arith.constant 0 : index
    %3 = vector.load %arg4[%c0_3, %c0_4] : memref<16x1xf32, #tpu.memory_space<vmem>>, vector<16x1xf32>
    %4 = vector.broadcast %3 : vector<16x1xf32> to vector<16x8xf32>
    %5 = arith.addf %2, %4 : vector<16x8xf32>
    %cst_5 = arith.constant 0.000000e+00 : f32
    %6 = vector.broadcast %cst_5 : f32 to vector<16x8xf32>
    %7 = arith.maximumf %5, %6 : vector<16x8xf32>
    %8 = arith.truncf %7 : vector<16x8xf32> to vector<16x8xbf16>
    %c0_6 = arith.constant 0 : index
    %c0_7 = arith.constant 0 : index
    %9 = vector.load %arg5[%c0_6, %c0_7] : memref<16x8xbf16, #tpu.memory_space<vmem>>, vector<16x8xbf16>
    tpu.vector_store %arg5[%c0_6, %c0_7], %8 {strides = array<i32>} : memref<16x8xbf16, #tpu.memory_space<vmem>>, vector<16x8xbf16>,
    return
  }
  func.func @transform_0(%arg0: i32, %arg1: i32) -> (i32, i32) {
    %c0_i32 = arith.constant 0 : i32
    %c0_i32_0 = arith.constant 0 : i32
    return %arg0, %c0_i32 : i32, i32
  }
  func.func @transform_1(%arg0: i32, %arg1: i32) -> (i32, i32) {
    %c0_i32 = arith.constant 0 : i32
    %c0_i32_0 = arith.constant 0 : i32
    return %c0_i32, %arg1 : i32, i32
  }
  func.func @transform_2(%arg0: i32, %arg1: i32) -> (i32, i32) {
    %c0_i32 = arith.constant 0 : i32
    %c0_i32_0 = arith.constant 0 : i32
    return %arg0, %c0_i32 : i32, i32
  }
  func.func @transform_3(%arg0: i32, %arg1: i32) -> (i32, i32) {
    %c0_i32 = arith.constant 0 : i32
    return %arg0, %arg1 : i32, i32
  }
}

module attributes {stable_mosaic.version = 11 : i64} {
  func.func @_bilinear_kernel(%arg0: i32, %arg1: memref<8x2x2xbf16, #tpu.memory_space<vmem>>, %arg2: memref<8x2xf32, #tpu.memory_space<vmem>>, %arg3: memref<2x8xf32, #tpu.memory_space<vmem>>, %arg4: memref<8x8x8xbf16, #tpu.memory_space<vmem>>) attributes {dimension_semantics = [#tpu.dimension_semantics<parallel>], iteration_bounds = array<i64: 4>, scalar_prefetch = 0 : i64, scratch_operands = 0 : i64, tpu.core_type = #tpu.core_type<tc>, window_params = [{transform_indices = @transform_0, window_bounds = array<i64: 8, 2, 2>}, {pipeline_mode = #tpu.pipeline_mode<synchronous>, transform_indices = @transform_1, window_bounds = array<i64: 8, 2>}, {pipeline_mode = #tpu.pipeline_mode<synchronous>, transform_indices = @transform_2, window_bounds = array<i64: 2, 8>}, {transform_indices = @transform_3, window_bounds = array<i64: 8, 8, 8>}]} {
    %c0 = arith.constant 0 : index
    %c0_0 = arith.constant 0 : index
    %0 = vector.load %arg2[%c0, %c0_0] : memref<8x2xf32, #tpu.memory_space<vmem>>, vector<8x2xf32>
    %c0_1 = arith.constant 0 : index
    %c0_2 = arith.constant 0 : index
    %c0_3 = arith.constant 0 : index
    %1 = vector.load %arg1[%c0_1, %c0_2, %c0_3] : memref<8x2x2xbf16, #tpu.memory_space<vmem>>, vector<1x2x2xbf16>
    %2 = vector.shape_cast %1 : vector<1x2x2xbf16> to vector<2x2xbf16>
    %3 = arith.extf %2 : vector<2x2xbf16> to vector<2x2xf32>
    %cst = arith.constant dense<0.000000e+00> : vector<8x2xf32>
    %4 = tpu.matmul %0, %3, %cst {dimension_numbers = #tpu.dot_dimension_numbers<[1], [0], [0], [1], [0, 0, 1, 1], [], []>} : vector<8x2xf32>, vector<2x2xf32>, vector<8x2xf32> -> vector<8x2xf32>
    %c0_4 = arith.constant 0 : index
    %c0_5 = arith.constant 0 : index
    %5 = vector.load %arg3[%c0_4, %c0_5] : memref<2x8xf32, #tpu.memory_space<vmem>>, vector<2x8xf32>
    %cst_6 = arith.constant dense<0.000000e+00> : vector<8x8xf32>
    %6 = tpu.matmul %4, %5, %cst_6 {dimension_numbers = #tpu.dot_dimension_numbers<[1], [0], [0], [1], [0, 0, 1, 1], [], []>} : vector<8x2xf32>, vector<2x8xf32>, vector<8x8xf32> -> vector<8x8xf32>
    %7 = arith.truncf %6 : vector<8x8xf32> to vector<8x8xbf16>
    %c0_7 = arith.constant 0 : index
    %c0_8 = arith.constant 0 : index
    %c0_9 = arith.constant 0 : index
    %8 = vector.load %arg4[%c0_7, %c0_8, %c0_9] : memref<8x8x8xbf16, #tpu.memory_space<vmem>>, vector<1x8x8xbf16>
    %9 = vector.shape_cast %8 : vector<1x8x8xbf16> to vector<8x8xbf16>
    %10 = vector.shape_cast %7 : vector<8x8xbf16> to vector<1x8x8xbf16>
    tpu.vector_store %arg4[%c0_7, %c0_8, %c0_9], %10 {strides = array<i32>} : memref<8x8x8xbf16, #tpu.memory_space<vmem>>, vector<1x8x8xbf16>,
    %c0_10 = arith.constant 0 : index
    %c0_11 = arith.constant 0 : index
    %11 = vector.load %arg2[%c0_10, %c0_11] : memref<8x2xf32, #tpu.memory_space<vmem>>, vector<8x2xf32>
    %c1 = arith.constant 1 : index
    %c0_12 = arith.constant 0 : index
    %c0_13 = arith.constant 0 : index
    %12 = vector.load %arg1[%c1, %c0_12, %c0_13] : memref<8x2x2xbf16, #tpu.memory_space<vmem>>, vector<1x2x2xbf16>
    %13 = vector.shape_cast %12 : vector<1x2x2xbf16> to vector<2x2xbf16>
    %14 = arith.extf %13 : vector<2x2xbf16> to vector<2x2xf32>
    %cst_14 = arith.constant dense<0.000000e+00> : vector<8x2xf32>
    %15 = tpu.matmul %11, %14, %cst_14 {dimension_numbers = #tpu.dot_dimension_numbers<[1], [0], [0], [1], [0, 0, 1, 1], [], []>} : vector<8x2xf32>, vector<2x2xf32>, vector<8x2xf32> -> vector<8x2xf32>
    %c0_15 = arith.constant 0 : index
    %c0_16 = arith.constant 0 : index
    %16 = vector.load %arg3[%c0_15, %c0_16] : memref<2x8xf32, #tpu.memory_space<vmem>>, vector<2x8xf32>
    %cst_17 = arith.constant dense<0.000000e+00> : vector<8x8xf32>
    %17 = tpu.matmul %15, %16, %cst_17 {dimension_numbers = #tpu.dot_dimension_numbers<[1], [0], [0], [1], [0, 0, 1, 1], [], []>} : vector<8x2xf32>, vector<2x8xf32>, vector<8x8xf32> -> vector<8x8xf32>
    %18 = arith.truncf %17 : vector<8x8xf32> to vector<8x8xbf16>
    %c1_18 = arith.constant 1 : index
    %c0_19 = arith.constant 0 : index
    %c0_20 = arith.constant 0 : index
    %19 = vector.load %arg4[%c1_18, %c0_19, %c0_20] : memref<8x8x8xbf16, #tpu.memory_space<vmem>>, vector<1x8x8xbf16>
    %20 = vector.shape_cast %19 : vector<1x8x8xbf16> to vector<8x8xbf16>
    %21 = vector.shape_cast %18 : vector<8x8xbf16> to vector<1x8x8xbf16>
    tpu.vector_store %arg4[%c1_18, %c0_19, %c0_20], %21 {strides = array<i32>} : memref<8x8x8xbf16, #tpu.memory_space<vmem>>, vector<1x8x8xbf16>,
    %c0_21 = arith.constant 0 : index
    %c0_22 = arith.constant 0 : index
    %22 = vector.load %arg2[%c0_21, %c0_22] : memref<8x2xf32, #tpu.memory_space<vmem>>, vector<8x2xf32>
    %c2 = arith.constant 2 : index
    %c0_23 = arith.constant 0 : index
    %c0_24 = arith.constant 0 : index
    %23 = vector.load %arg1[%c2, %c0_23, %c0_24] : memref<8x2x2xbf16, #tpu.memory_space<vmem>>, vector<1x2x2xbf16>
    %24 = vector.shape_cast %23 : vector<1x2x2xbf16> to vector<2x2xbf16>
    %25 = arith.extf %24 : vector<2x2xbf16> to vector<2x2xf32>
    %cst_25 = arith.constant dense<0.000000e+00> : vector<8x2xf32>
    %26 = tpu.matmul %22, %25, %cst_25 {dimension_numbers = #tpu.dot_dimension_numbers<[1], [0], [0], [1], [0, 0, 1, 1], [], []>} : vector<8x2xf32>, vector<2x2xf32>, vector<8x2xf32> -> vector<8x2xf32>
    %c0_26 = arith.constant 0 : index
    %c0_27 = arith.constant 0 : index
    %27 = vector.load %arg3[%c0_26, %c0_27] : memref<2x8xf32, #tpu.memory_space<vmem>>, vector<2x8xf32>
    %cst_28 = arith.constant dense<0.000000e+00> : vector<8x8xf32>
    %28 = tpu.matmul %26, %27, %cst_28 {dimension_numbers = #tpu.dot_dimension_numbers<[1], [0], [0], [1], [0, 0, 1, 1], [], []>} : vector<8x2xf32>, vector<2x8xf32>, vector<8x8xf32> -> vector<8x8xf32>
    %29 = arith.truncf %28 : vector<8x8xf32> to vector<8x8xbf16>
    %c2_29 = arith.constant 2 : index
    %c0_30 = arith.constant 0 : index
    %c0_31 = arith.constant 0 : index
    %30 = vector.load %arg4[%c2_29, %c0_30, %c0_31] : memref<8x8x8xbf16, #tpu.memory_space<vmem>>, vector<1x8x8xbf16>
    %31 = vector.shape_cast %30 : vector<1x8x8xbf16> to vector<8x8xbf16>
    %32 = vector.shape_cast %29 : vector<8x8xbf16> to vector<1x8x8xbf16>
    tpu.vector_store %arg4[%c2_29, %c0_30, %c0_31], %32 {strides = array<i32>} : memref<8x8x8xbf16, #tpu.memory_space<vmem>>, vector<1x8x8xbf16>,
    %c0_32 = arith.constant 0 : index
    %c0_33 = arith.constant 0 : index
    %33 = vector.load %arg2[%c0_32, %c0_33] : memref<8x2xf32, #tpu.memory_space<vmem>>, vector<8x2xf32>
    %c3 = arith.constant 3 : index
    %c0_34 = arith.constant 0 : index
    %c0_35 = arith.constant 0 : index
    %34 = vector.load %arg1[%c3, %c0_34, %c0_35] : memref<8x2x2xbf16, #tpu.memory_space<vmem>>, vector<1x2x2xbf16>
    %35 = vector.shape_cast %34 : vector<1x2x2xbf16> to vector<2x2xbf16>
    %36 = arith.extf %35 : vector<2x2xbf16> to vector<2x2xf32>
    %cst_36 = arith.constant dense<0.000000e+00> : vector<8x2xf32>
    %37 = tpu.matmul %33, %36, %cst_36 {dimension_numbers = #tpu.dot_dimension_numbers<[1], [0], [0], [1], [0, 0, 1, 1], [], []>} : vector<8x2xf32>, vector<2x2xf32>, vector<8x2xf32> -> vector<8x2xf32>
    %c0_37 = arith.constant 0 : index
    %c0_38 = arith.constant 0 : index
    %38 = vector.load %arg3[%c0_37, %c0_38] : memref<2x8xf32, #tpu.memory_space<vmem>>, vector<2x8xf32>
    %cst_39 = arith.constant dense<0.000000e+00> : vector<8x8xf32>
    %39 = tpu.matmul %37, %38, %cst_39 {dimension_numbers = #tpu.dot_dimension_numbers<[1], [0], [0], [1], [0, 0, 1, 1], [], []>} : vector<8x2xf32>, vector<2x8xf32>, vector<8x8xf32> -> vector<8x8xf32>
    %40 = arith.truncf %39 : vector<8x8xf32> to vector<8x8xbf16>
    %c3_40 = arith.constant 3 : index
    %c0_41 = arith.constant 0 : index
    %c0_42 = arith.constant 0 : index
    %41 = vector.load %arg4[%c3_40, %c0_41, %c0_42] : memref<8x8x8xbf16, #tpu.memory_space<vmem>>, vector<1x8x8xbf16>
    %42 = vector.shape_cast %41 : vector<1x8x8xbf16> to vector<8x8xbf16>
    %43 = vector.shape_cast %40 : vector<8x8xbf16> to vector<1x8x8xbf16>
    tpu.vector_store %arg4[%c3_40, %c0_41, %c0_42], %43 {strides = array<i32>} : memref<8x8x8xbf16, #tpu.memory_space<vmem>>, vector<1x8x8xbf16>,
    %c0_43 = arith.constant 0 : index
    %c0_44 = arith.constant 0 : index
    %44 = vector.load %arg2[%c0_43, %c0_44] : memref<8x2xf32, #tpu.memory_space<vmem>>, vector<8x2xf32>
    %c4 = arith.constant 4 : index
    %c0_45 = arith.constant 0 : index
    %c0_46 = arith.constant 0 : index
    %45 = vector.load %arg1[%c4, %c0_45, %c0_46] : memref<8x2x2xbf16, #tpu.memory_space<vmem>>, vector<1x2x2xbf16>
    %46 = vector.shape_cast %45 : vector<1x2x2xbf16> to vector<2x2xbf16>
    %47 = arith.extf %46 : vector<2x2xbf16> to vector<2x2xf32>
    %cst_47 = arith.constant dense<0.000000e+00> : vector<8x2xf32>
    %48 = tpu.matmul %44, %47, %cst_47 {dimension_numbers = #tpu.dot_dimension_numbers<[1], [0], [0], [1], [0, 0, 1, 1], [], []>} : vector<8x2xf32>, vector<2x2xf32>, vector<8x2xf32> -> vector<8x2xf32>
    %c0_48 = arith.constant 0 : index
    %c0_49 = arith.constant 0 : index
    %49 = vector.load %arg3[%c0_48, %c0_49] : memref<2x8xf32, #tpu.memory_space<vmem>>, vector<2x8xf32>
    %cst_50 = arith.constant dense<0.000000e+00> : vector<8x8xf32>
    %50 = tpu.matmul %48, %49, %cst_50 {dimension_numbers = #tpu.dot_dimension_numbers<[1], [0], [0], [1], [0, 0, 1, 1], [], []>} : vector<8x2xf32>, vector<2x8xf32>, vector<8x8xf32> -> vector<8x8xf32>
    %51 = arith.truncf %50 : vector<8x8xf32> to vector<8x8xbf16>
    %c4_51 = arith.constant 4 : index
    %c0_52 = arith.constant 0 : index
    %c0_53 = arith.constant 0 : index
    %52 = vector.load %arg4[%c4_51, %c0_52, %c0_53] : memref<8x8x8xbf16, #tpu.memory_space<vmem>>, vector<1x8x8xbf16>
    %53 = vector.shape_cast %52 : vector<1x8x8xbf16> to vector<8x8xbf16>
    %54 = vector.shape_cast %51 : vector<8x8xbf16> to vector<1x8x8xbf16>
    tpu.vector_store %arg4[%c4_51, %c0_52, %c0_53], %54 {strides = array<i32>} : memref<8x8x8xbf16, #tpu.memory_space<vmem>>, vector<1x8x8xbf16>,
    %c0_54 = arith.constant 0 : index
    %c0_55 = arith.constant 0 : index
    %55 = vector.load %arg2[%c0_54, %c0_55] : memref<8x2xf32, #tpu.memory_space<vmem>>, vector<8x2xf32>
    %c5 = arith.constant 5 : index
    %c0_56 = arith.constant 0 : index
    %c0_57 = arith.constant 0 : index
    %56 = vector.load %arg1[%c5, %c0_56, %c0_57] : memref<8x2x2xbf16, #tpu.memory_space<vmem>>, vector<1x2x2xbf16>
    %57 = vector.shape_cast %56 : vector<1x2x2xbf16> to vector<2x2xbf16>
    %58 = arith.extf %57 : vector<2x2xbf16> to vector<2x2xf32>
    %cst_58 = arith.constant dense<0.000000e+00> : vector<8x2xf32>
    %59 = tpu.matmul %55, %58, %cst_58 {dimension_numbers = #tpu.dot_dimension_numbers<[1], [0], [0], [1], [0, 0, 1, 1], [], []>} : vector<8x2xf32>, vector<2x2xf32>, vector<8x2xf32> -> vector<8x2xf32>
    %c0_59 = arith.constant 0 : index
    %c0_60 = arith.constant 0 : index
    %60 = vector.load %arg3[%c0_59, %c0_60] : memref<2x8xf32, #tpu.memory_space<vmem>>, vector<2x8xf32>
    %cst_61 = arith.constant dense<0.000000e+00> : vector<8x8xf32>
    %61 = tpu.matmul %59, %60, %cst_61 {dimension_numbers = #tpu.dot_dimension_numbers<[1], [0], [0], [1], [0, 0, 1, 1], [], []>} : vector<8x2xf32>, vector<2x8xf32>, vector<8x8xf32> -> vector<8x8xf32>
    %62 = arith.truncf %61 : vector<8x8xf32> to vector<8x8xbf16>
    %c5_62 = arith.constant 5 : index
    %c0_63 = arith.constant 0 : index
    %c0_64 = arith.constant 0 : index
    %63 = vector.load %arg4[%c5_62, %c0_63, %c0_64] : memref<8x8x8xbf16, #tpu.memory_space<vmem>>, vector<1x8x8xbf16>
    %64 = vector.shape_cast %63 : vector<1x8x8xbf16> to vector<8x8xbf16>
    %65 = vector.shape_cast %62 : vector<8x8xbf16> to vector<1x8x8xbf16>
    tpu.vector_store %arg4[%c5_62, %c0_63, %c0_64], %65 {strides = array<i32>} : memref<8x8x8xbf16, #tpu.memory_space<vmem>>, vector<1x8x8xbf16>,
    %c0_65 = arith.constant 0 : index
    %c0_66 = arith.constant 0 : index
    %66 = vector.load %arg2[%c0_65, %c0_66] : memref<8x2xf32, #tpu.memory_space<vmem>>, vector<8x2xf32>
    %c6 = arith.constant 6 : index
    %c0_67 = arith.constant 0 : index
    %c0_68 = arith.constant 0 : index
    %67 = vector.load %arg1[%c6, %c0_67, %c0_68] : memref<8x2x2xbf16, #tpu.memory_space<vmem>>, vector<1x2x2xbf16>
    %68 = vector.shape_cast %67 : vector<1x2x2xbf16> to vector<2x2xbf16>
    %69 = arith.extf %68 : vector<2x2xbf16> to vector<2x2xf32>
    %cst_69 = arith.constant dense<0.000000e+00> : vector<8x2xf32>
    %70 = tpu.matmul %66, %69, %cst_69 {dimension_numbers = #tpu.dot_dimension_numbers<[1], [0], [0], [1], [0, 0, 1, 1], [], []>} : vector<8x2xf32>, vector<2x2xf32>, vector<8x2xf32> -> vector<8x2xf32>
    %c0_70 = arith.constant 0 : index
    %c0_71 = arith.constant 0 : index
    %71 = vector.load %arg3[%c0_70, %c0_71] : memref<2x8xf32, #tpu.memory_space<vmem>>, vector<2x8xf32>
    %cst_72 = arith.constant dense<0.000000e+00> : vector<8x8xf32>
    %72 = tpu.matmul %70, %71, %cst_72 {dimension_numbers = #tpu.dot_dimension_numbers<[1], [0], [0], [1], [0, 0, 1, 1], [], []>} : vector<8x2xf32>, vector<2x8xf32>, vector<8x8xf32> -> vector<8x8xf32>
    %73 = arith.truncf %72 : vector<8x8xf32> to vector<8x8xbf16>
    %c6_73 = arith.constant 6 : index
    %c0_74 = arith.constant 0 : index
    %c0_75 = arith.constant 0 : index
    %74 = vector.load %arg4[%c6_73, %c0_74, %c0_75] : memref<8x8x8xbf16, #tpu.memory_space<vmem>>, vector<1x8x8xbf16>
    %75 = vector.shape_cast %74 : vector<1x8x8xbf16> to vector<8x8xbf16>
    %76 = vector.shape_cast %73 : vector<8x8xbf16> to vector<1x8x8xbf16>
    tpu.vector_store %arg4[%c6_73, %c0_74, %c0_75], %76 {strides = array<i32>} : memref<8x8x8xbf16, #tpu.memory_space<vmem>>, vector<1x8x8xbf16>,
    %c0_76 = arith.constant 0 : index
    %c0_77 = arith.constant 0 : index
    %77 = vector.load %arg2[%c0_76, %c0_77] : memref<8x2xf32, #tpu.memory_space<vmem>>, vector<8x2xf32>
    %c7 = arith.constant 7 : index
    %c0_78 = arith.constant 0 : index
    %c0_79 = arith.constant 0 : index
    %78 = vector.load %arg1[%c7, %c0_78, %c0_79] : memref<8x2x2xbf16, #tpu.memory_space<vmem>>, vector<1x2x2xbf16>
    %79 = vector.shape_cast %78 : vector<1x2x2xbf16> to vector<2x2xbf16>
    %80 = arith.extf %79 : vector<2x2xbf16> to vector<2x2xf32>
    %cst_80 = arith.constant dense<0.000000e+00> : vector<8x2xf32>
    %81 = tpu.matmul %77, %80, %cst_80 {dimension_numbers = #tpu.dot_dimension_numbers<[1], [0], [0], [1], [0, 0, 1, 1], [], []>} : vector<8x2xf32>, vector<2x2xf32>, vector<8x2xf32> -> vector<8x2xf32>
    %c0_81 = arith.constant 0 : index
    %c0_82 = arith.constant 0 : index
    %82 = vector.load %arg3[%c0_81, %c0_82] : memref<2x8xf32, #tpu.memory_space<vmem>>, vector<2x8xf32>
    %cst_83 = arith.constant dense<0.000000e+00> : vector<8x8xf32>
    %83 = tpu.matmul %81, %82, %cst_83 {dimension_numbers = #tpu.dot_dimension_numbers<[1], [0], [0], [1], [0, 0, 1, 1], [], []>} : vector<8x2xf32>, vector<2x8xf32>, vector<8x8xf32> -> vector<8x8xf32>
    %84 = arith.truncf %83 : vector<8x8xf32> to vector<8x8xbf16>
    %c7_84 = arith.constant 7 : index
    %c0_85 = arith.constant 0 : index
    %c0_86 = arith.constant 0 : index
    %85 = vector.load %arg4[%c7_84, %c0_85, %c0_86] : memref<8x8x8xbf16, #tpu.memory_space<vmem>>, vector<1x8x8xbf16>
    %86 = vector.shape_cast %85 : vector<1x8x8xbf16> to vector<8x8xbf16>
    %87 = vector.shape_cast %84 : vector<8x8xbf16> to vector<1x8x8xbf16>
    tpu.vector_store %arg4[%c7_84, %c0_85, %c0_86], %87 {strides = array<i32>} : memref<8x8x8xbf16, #tpu.memory_space<vmem>>, vector<1x8x8xbf16>,
    return
  }
  func.func @transform_0(%arg0: i32) -> (i32, i32, i32) {
    %c0_i32 = arith.constant 0 : i32
    %c0_i32_0 = arith.constant 0 : i32
    %c0_i32_1 = arith.constant 0 : i32
    return %arg0, %c0_i32, %c0_i32_0 : i32, i32, i32
  }
  func.func @transform_1(%arg0: i32) -> (i32, i32) {
    %c0_i32 = arith.constant 0 : i32
    %c0_i32_0 = arith.constant 0 : i32
    %c0_i32_1 = arith.constant 0 : i32
    return %c0_i32, %c0_i32_0 : i32, i32
  }
  func.func @transform_2(%arg0: i32) -> (i32, i32) {
    %c0_i32 = arith.constant 0 : i32
    %c0_i32_0 = arith.constant 0 : i32
    %c0_i32_1 = arith.constant 0 : i32
    return %c0_i32, %c0_i32_0 : i32, i32
  }
  func.func @transform_3(%arg0: i32) -> (i32, i32, i32) {
    %c0_i32 = arith.constant 0 : i32
    %c0_i32_0 = arith.constant 0 : i32
    %c0_i32_1 = arith.constant 0 : i32
    return %arg0, %c0_i32, %c0_i32_0 : i32, i32, i32
  }
}

module attributes {stable_mosaic.version = 11 : i64} {
  func.func @_mm_fused_kernel(%arg0: i32, %arg1: i32, %arg2: memref<16x16xbf16, #tpu.memory_space<vmem>>, %arg3: memref<16x128xbf16, #tpu.memory_space<vmem>>, %arg4: memref<16x1xf32, #tpu.memory_space<vmem>>, %arg5: memref<16x128xf32, #tpu.memory_space<vmem>>) attributes {dimension_semantics = [#tpu.dimension_semantics<parallel>, #tpu.dimension_semantics<parallel>], iteration_bounds = array<i64: 1, 1>, scalar_prefetch = 0 : i64, scratch_operands = 0 : i64, tpu.core_type = #tpu.core_type<tc>, window_params = [{transform_indices = @transform_0, window_bounds = array<i64: 16, 16>}, {transform_indices = @transform_1, window_bounds = array<i64: 16, 128>}, {transform_indices = @transform_2, window_bounds = array<i64: 16, 1>}, {transform_indices = @transform_3, window_bounds = array<i64: 16, 128>}]} {
    %c0 = arith.constant 0 : index
    %c0_0 = arith.constant 0 : index
    %0 = vector.load %arg2[%c0, %c0_0] : memref<16x16xbf16, #tpu.memory_space<vmem>>, vector<16x16xbf16>
    %c0_1 = arith.constant 0 : index
    %c0_2 = arith.constant 0 : index
    %1 = vector.load %arg3[%c0_1, %c0_2] : memref<16x128xbf16, #tpu.memory_space<vmem>>, vector<16x128xbf16>
    %cst = arith.constant dense<0.000000e+00> : vector<16x128xf32>
    %2 = tpu.matmul %0, %1, %cst {dimension_numbers = #tpu.dot_dimension_numbers<[1], [0], [0], [1], [0, 0, 1, 1], [], []>} : vector<16x16xbf16>, vector<16x128xbf16>, vector<16x128xf32> -> vector<16x128xf32>
    %c0_3 = arith.constant 0 : index
    %c0_4 = arith.constant 0 : index
    %3 = vector.load %arg4[%c0_3, %c0_4] : memref<16x1xf32, #tpu.memory_space<vmem>>, vector<16x1xf32>
    %4 = vector.broadcast %3 : vector<16x1xf32> to vector<16x128xf32>
    %5 = arith.addf %2, %4 : vector<16x128xf32>
    %c0_5 = arith.constant 0 : index
    %c0_6 = arith.constant 0 : index
    %6 = vector.load %arg5[%c0_5, %c0_6] : memref<16x128xf32, #tpu.memory_space<vmem>>, vector<16x128xf32>
    tpu.vector_store %arg5[%c0_5, %c0_6], %5 {strides = array<i32>} : memref<16x128xf32, #tpu.memory_space<vmem>>, vector<16x128xf32>,
    return
  }
  func.func @transform_0(%arg0: i32, %arg1: i32) -> (i32, i32) {
    %c0_i32 = arith.constant 0 : i32
    %c0_i32_0 = arith.constant 0 : i32
    return %arg0, %c0_i32 : i32, i32
  }
  func.func @transform_1(%arg0: i32, %arg1: i32) -> (i32, i32) {
    %c0_i32 = arith.constant 0 : i32
    %c0_i32_0 = arith.constant 0 : i32
    return %c0_i32, %arg1 : i32, i32
  }
  func.func @transform_2(%arg0: i32, %arg1: i32) -> (i32, i32) {
    %c0_i32 = arith.constant 0 : i32
    %c0_i32_0 = arith.constant 0 : i32
    return %arg0, %c0_i32 : i32, i32
  }
  func.func @transform_3(%arg0: i32, %arg1: i32) -> (i32, i32) {
    %c0_i32 = arith.constant 0 : i32
    return %arg0, %arg1 : i32, i32
  }
}

module attributes {stable_mosaic.version = 11 : i64} {
  func.func @_mm_fused_kernel(%arg0: i32, %arg1: i32, %arg2: memref<16x144xbf16, #tpu.memory_space<vmem>>, %arg3: memref<16x72xbf16, #tpu.memory_space<vmem>>, %arg4: memref<144x128xbf16, #tpu.memory_space<vmem>>, %arg5: memref<72x128xbf16, #tpu.memory_space<vmem>>, %arg6: memref<16x1xf32, #tpu.memory_space<vmem>>, %arg7: memref<16x128xbf16, #tpu.memory_space<vmem>>) attributes {dimension_semantics = [#tpu.dimension_semantics<parallel>, #tpu.dimension_semantics<parallel>], iteration_bounds = array<i64: 1, 1>, scalar_prefetch = 0 : i64, scratch_operands = 0 : i64, tpu.core_type = #tpu.core_type<tc>, window_params = [{transform_indices = @transform_0, window_bounds = array<i64: 16, 144>}, {transform_indices = @transform_1, window_bounds = array<i64: 16, 72>}, {transform_indices = @transform_2, window_bounds = array<i64: 144, 128>}, {transform_indices = @transform_3, window_bounds = array<i64: 72, 128>}, {transform_indices = @transform_4, window_bounds = array<i64: 16, 1>}, {transform_indices = @transform_5, window_bounds = array<i64: 16, 128>}]} {
    %c0 = arith.constant 0 : index
    %c0_0 = arith.constant 0 : index
    %0 = vector.load %arg2[%c0, %c0_0] : memref<16x144xbf16, #tpu.memory_space<vmem>>, vector<16x144xbf16>
    %c0_1 = arith.constant 0 : index
    %c0_2 = arith.constant 0 : index
    %1 = vector.load %arg4[%c0_1, %c0_2] : memref<144x128xbf16, #tpu.memory_space<vmem>>, vector<144x128xbf16>
    %cst = arith.constant dense<0.000000e+00> : vector<16x128xf32>
    %2 = tpu.matmul %0, %1, %cst {dimension_numbers = #tpu.dot_dimension_numbers<[1], [0], [0], [1], [0, 0, 1, 1], [], []>} : vector<16x144xbf16>, vector<144x128xbf16>, vector<16x128xf32> -> vector<16x128xf32>
    %c0_3 = arith.constant 0 : index
    %c0_4 = arith.constant 0 : index
    %3 = vector.load %arg3[%c0_3, %c0_4] : memref<16x72xbf16, #tpu.memory_space<vmem>>, vector<16x72xbf16>
    %c0_5 = arith.constant 0 : index
    %c0_6 = arith.constant 0 : index
    %4 = vector.load %arg5[%c0_5, %c0_6] : memref<72x128xbf16, #tpu.memory_space<vmem>>, vector<72x128xbf16>
    %cst_7 = arith.constant dense<0.000000e+00> : vector<16x128xf32>
    %5 = tpu.matmul %3, %4, %cst_7 {dimension_numbers = #tpu.dot_dimension_numbers<[1], [0], [0], [1], [0, 0, 1, 1], [], []>} : vector<16x72xbf16>, vector<72x128xbf16>, vector<16x128xf32> -> vector<16x128xf32>
    %6 = arith.addf %2, %5 : vector<16x128xf32>
    %c0_8 = arith.constant 0 : index
    %c0_9 = arith.constant 0 : index
    %7 = vector.load %arg6[%c0_8, %c0_9] : memref<16x1xf32, #tpu.memory_space<vmem>>, vector<16x1xf32>
    %8 = vector.broadcast %7 : vector<16x1xf32> to vector<16x128xf32>
    %9 = arith.addf %6, %8 : vector<16x128xf32>
    %cst_10 = arith.constant 0.000000e+00 : f32
    %10 = vector.broadcast %cst_10 : f32 to vector<16x128xf32>
    %11 = arith.maximumf %9, %10 : vector<16x128xf32>
    %12 = arith.truncf %11 : vector<16x128xf32> to vector<16x128xbf16>
    %c0_11 = arith.constant 0 : index
    %c0_12 = arith.constant 0 : index
    %13 = vector.load %arg7[%c0_11, %c0_12] : memref<16x128xbf16, #tpu.memory_space<vmem>>, vector<16x128xbf16>
    tpu.vector_store %arg7[%c0_11, %c0_12], %12 {strides = array<i32>} : memref<16x128xbf16, #tpu.memory_space<vmem>>, vector<16x128xbf16>,
    return
  }
  func.func @transform_0(%arg0: i32, %arg1: i32) -> (i32, i32) {
    %c0_i32 = arith.constant 0 : i32
    %c0_i32_0 = arith.constant 0 : i32
    return %arg0, %c0_i32 : i32, i32
  }
  func.func @transform_1(%arg0: i32, %arg1: i32) -> (i32, i32) {
    %c0_i32 = arith.constant 0 : i32
    %c0_i32_0 = arith.constant 0 : i32
    return %arg0, %c0_i32 : i32, i32
  }
  func.func @transform_2(%arg0: i32, %arg1: i32) -> (i32, i32) {
    %c0_i32 = arith.constant 0 : i32
    %c0_i32_0 = arith.constant 0 : i32
    return %c0_i32, %arg1 : i32, i32
  }
  func.func @transform_3(%arg0: i32, %arg1: i32) -> (i32, i32) {
    %c0_i32 = arith.constant 0 : i32
    %c0_i32_0 = arith.constant 0 : i32
    return %c0_i32, %arg1 : i32, i32
  }
  func.func @transform_4(%arg0: i32, %arg1: i32) -> (i32, i32) {
    %c0_i32 = arith.constant 0 : i32
    %c0_i32_0 = arith.constant 0 : i32
    return %arg0, %c0_i32 : i32, i32
  }
  func.func @transform_5(%arg0: i32, %arg1: i32) -> (i32, i32) {
    %c0_i32 = arith.constant 0 : i32
    return %arg0, %arg1 : i32, i32
  }
}

module attributes {stable_mosaic.version = 11 : i64} {
  func.func @_mm_fused_kernel(%arg0: i32, %arg1: i32, %arg2: memref<16x144xbf16, #tpu.memory_space<vmem>>, %arg3: memref<144x128xbf16, #tpu.memory_space<vmem>>, %arg4: memref<16x1xf32, #tpu.memory_space<vmem>>, %arg5: memref<16x128xbf16, #tpu.memory_space<vmem>>) attributes {dimension_semantics = [#tpu.dimension_semantics<parallel>, #tpu.dimension_semantics<parallel>], iteration_bounds = array<i64: 1, 1>, scalar_prefetch = 0 : i64, scratch_operands = 0 : i64, tpu.core_type = #tpu.core_type<tc>, window_params = [{transform_indices = @transform_0, window_bounds = array<i64: 16, 144>}, {transform_indices = @transform_1, window_bounds = array<i64: 144, 128>}, {transform_indices = @transform_2, window_bounds = array<i64: 16, 1>}, {transform_indices = @transform_3, window_bounds = array<i64: 16, 128>}]} {
    %c0 = arith.constant 0 : index
    %c0_0 = arith.constant 0 : index
    %0 = vector.load %arg2[%c0, %c0_0] : memref<16x144xbf16, #tpu.memory_space<vmem>>, vector<16x144xbf16>
    %c0_1 = arith.constant 0 : index
    %c0_2 = arith.constant 0 : index
    %1 = vector.load %arg3[%c0_1, %c0_2] : memref<144x128xbf16, #tpu.memory_space<vmem>>, vector<144x128xbf16>
    %cst = arith.constant dense<0.000000e+00> : vector<16x128xf32>
    %2 = tpu.matmul %0, %1, %cst {dimension_numbers = #tpu.dot_dimension_numbers<[1], [0], [0], [1], [0, 0, 1, 1], [], []>} : vector<16x144xbf16>, vector<144x128xbf16>, vector<16x128xf32> -> vector<16x128xf32>
    %c0_3 = arith.constant 0 : index
    %c0_4 = arith.constant 0 : index
    %3 = vector.load %arg4[%c0_3, %c0_4] : memref<16x1xf32, #tpu.memory_space<vmem>>, vector<16x1xf32>
    %4 = vector.broadcast %3 : vector<16x1xf32> to vector<16x128xf32>
    %5 = arith.addf %2, %4 : vector<16x128xf32>
    %cst_5 = arith.constant 0.000000e+00 : f32
    %6 = vector.broadcast %cst_5 : f32 to vector<16x128xf32>
    %7 = arith.maximumf %5, %6 : vector<16x128xf32>
    %8 = arith.truncf %7 : vector<16x128xf32> to vector<16x128xbf16>
    %c0_6 = arith.constant 0 : index
    %c0_7 = arith.constant 0 : index
    %9 = vector.load %arg5[%c0_6, %c0_7] : memref<16x128xbf16, #tpu.memory_space<vmem>>, vector<16x128xbf16>
    tpu.vector_store %arg5[%c0_6, %c0_7], %8 {strides = array<i32>} : memref<16x128xbf16, #tpu.memory_space<vmem>>, vector<16x128xbf16>,
    return
  }
  func.func @transform_0(%arg0: i32, %arg1: i32) -> (i32, i32) {
    %c0_i32 = arith.constant 0 : i32
    %c0_i32_0 = arith.constant 0 : i32
    return %arg0, %c0_i32 : i32, i32
  }
  func.func @transform_1(%arg0: i32, %arg1: i32) -> (i32, i32) {
    %c0_i32 = arith.constant 0 : i32
    %c0_i32_0 = arith.constant 0 : i32
    return %c0_i32, %arg1 : i32, i32
  }
  func.func @transform_2(%arg0: i32, %arg1: i32) -> (i32, i32) {
    %c0_i32 = arith.constant 0 : i32
    %c0_i32_0 = arith.constant 0 : i32
    return %arg0, %c0_i32 : i32, i32
  }
  func.func @transform_3(%arg0: i32, %arg1: i32) -> (i32, i32) {
    %c0_i32 = arith.constant 0 : i32
    return %arg0, %arg1 : i32, i32
  }
}

module attributes {stable_mosaic.version = 11 : i64} {
  func.func @_bilinear_kernel(%arg0: i32, %arg1: memref<2x8x8xf32, #tpu.memory_space<vmem>>, %arg2: memref<32x8xf32, #tpu.memory_space<vmem>>, %arg3: memref<8x32xf32, #tpu.memory_space<vmem>>, %arg4: memref<2x32x32xf32, #tpu.memory_space<vmem>>) attributes {dimension_semantics = [#tpu.dimension_semantics<parallel>], iteration_bounds = array<i64: 2>, scalar_prefetch = 0 : i64, scratch_operands = 0 : i64, tpu.core_type = #tpu.core_type<tc>, window_params = [{transform_indices = @transform_0, window_bounds = array<i64: 2, 8, 8>}, {pipeline_mode = #tpu.pipeline_mode<synchronous>, transform_indices = @transform_1, window_bounds = array<i64: 32, 8>}, {pipeline_mode = #tpu.pipeline_mode<synchronous>, transform_indices = @transform_2, window_bounds = array<i64: 8, 32>}, {transform_indices = @transform_3, window_bounds = array<i64: 2, 32, 32>}]} {
    %c0 = arith.constant 0 : index
    %c0_0 = arith.constant 0 : index
    %0 = vector.load %arg2[%c0, %c0_0] : memref<32x8xf32, #tpu.memory_space<vmem>>, vector<32x8xf32>
    %c0_1 = arith.constant 0 : index
    %c0_2 = arith.constant 0 : index
    %c0_3 = arith.constant 0 : index
    %1 = vector.load %arg1[%c0_1, %c0_2, %c0_3] : memref<2x8x8xf32, #tpu.memory_space<vmem>>, vector<1x8x8xf32>
    %2 = vector.shape_cast %1 : vector<1x8x8xf32> to vector<8x8xf32>
    %cst = arith.constant dense<0.000000e+00> : vector<32x8xf32>
    %3 = tpu.matmul %0, %2, %cst {dimension_numbers = #tpu.dot_dimension_numbers<[1], [0], [0], [1], [0, 0, 1, 1], [], []>} : vector<32x8xf32>, vector<8x8xf32>, vector<32x8xf32> -> vector<32x8xf32>
    %c0_4 = arith.constant 0 : index
    %c0_5 = arith.constant 0 : index
    %4 = vector.load %arg3[%c0_4, %c0_5] : memref<8x32xf32, #tpu.memory_space<vmem>>, vector<8x32xf32>
    %cst_6 = arith.constant dense<0.000000e+00> : vector<32x32xf32>
    %5 = tpu.matmul %3, %4, %cst_6 {dimension_numbers = #tpu.dot_dimension_numbers<[1], [0], [0], [1], [0, 0, 1, 1], [], []>} : vector<32x8xf32>, vector<8x32xf32>, vector<32x32xf32> -> vector<32x32xf32>
    %c0_7 = arith.constant 0 : index
    %c0_8 = arith.constant 0 : index
    %c0_9 = arith.constant 0 : index
    %6 = vector.load %arg4[%c0_7, %c0_8, %c0_9] : memref<2x32x32xf32, #tpu.memory_space<vmem>>, vector<1x32x32xf32>
    %7 = vector.shape_cast %6 : vector<1x32x32xf32> to vector<32x32xf32>
    %8 = vector.shape_cast %5 : vector<32x32xf32> to vector<1x32x32xf32>
    tpu.vector_store %arg4[%c0_7, %c0_8, %c0_9], %8 {strides = array<i32>} : memref<2x32x32xf32, #tpu.memory_space<vmem>>, vector<1x32x32xf32>,
    %c0_10 = arith.constant 0 : index
    %c0_11 = arith.constant 0 : index
    %9 = vector.load %arg2[%c0_10, %c0_11] : memref<32x8xf32, #tpu.memory_space<vmem>>, vector<32x8xf32>
    %c1 = arith.constant 1 : index
    %c0_12 = arith.constant 0 : index
    %c0_13 = arith.constant 0 : index
    %10 = vector.load %arg1[%c1, %c0_12, %c0_13] : memref<2x8x8xf32, #tpu.memory_space<vmem>>, vector<1x8x8xf32>
    %11 = vector.shape_cast %10 : vector<1x8x8xf32> to vector<8x8xf32>
    %cst_14 = arith.constant dense<0.000000e+00> : vector<32x8xf32>
    %12 = tpu.matmul %9, %11, %cst_14 {dimension_numbers = #tpu.dot_dimension_numbers<[1], [0], [0], [1], [0, 0, 1, 1], [], []>} : vector<32x8xf32>, vector<8x8xf32>, vector<32x8xf32> -> vector<32x8xf32>
    %c0_15 = arith.constant 0 : index
    %c0_16 = arith.constant 0 : index
    %13 = vector.load %arg3[%c0_15, %c0_16] : memref<8x32xf32, #tpu.memory_space<vmem>>, vector<8x32xf32>
    %cst_17 = arith.constant dense<0.000000e+00> : vector<32x32xf32>
    %14 = tpu.matmul %12, %13, %cst_17 {dimension_numbers = #tpu.dot_dimension_numbers<[1], [0], [0], [1], [0, 0, 1, 1], [], []>} : vector<32x8xf32>, vector<8x32xf32>, vector<32x32xf32> -> vector<32x32xf32>
    %c1_18 = arith.constant 1 : index
    %c0_19 = arith.constant 0 : index
    %c0_20 = arith.constant 0 : index
    %15 = vector.load %arg4[%c1_18, %c0_19, %c0_20] : memref<2x32x32xf32, #tpu.memory_space<vmem>>, vector<1x32x32xf32>
    %16 = vector.shape_cast %15 : vector<1x32x32xf32> to vector<32x32xf32>
    %17 = vector.shape_cast %14 : vector<32x32xf32> to vector<1x32x32xf32>
    tpu.vector_store %arg4[%c1_18, %c0_19, %c0_20], %17 {strides = array<i32>} : memref<2x32x32xf32, #tpu.memory_space<vmem>>, vector<1x32x32xf32>,
    return
  }
  func.func @transform_0(%arg0: i32) -> (i32, i32, i32) {
    %c0_i32 = arith.constant 0 : i32
    %c0_i32_0 = arith.constant 0 : i32
    %c0_i32_1 = arith.constant 0 : i32
    return %arg0, %c0_i32, %c0_i32_0 : i32, i32, i32
  }
  func.func @transform_1(%arg0: i32) -> (i32, i32) {
    %c0_i32 = arith.constant 0 : i32
    %c0_i32_0 = arith.constant 0 : i32
    %c0_i32_1 = arith.constant 0 : i32
    return %c0_i32, %c0_i32_0 : i32, i32
  }
  func.func @transform_2(%arg0: i32) -> (i32, i32) {
    %c0_i32 = arith.constant 0 : i32
    %c0_i32_0 = arith.constant 0 : i32
    %c0_i32_1 = arith.constant 0 : i32
    return %c0_i32, %c0_i32_0 : i32, i32
  }
  func.func @transform_3(%arg0: i32) -> (i32, i32, i32) {
    %c0_i32 = arith.constant 0 : i32
    %c0_i32_0 = arith.constant 0 : i32
    %c0_i32_1 = arith.constant 0 : i32
    return %arg0, %c0_i32, %c0_i32_0 : i32, i32, i32
  }
}

</mosaic_0001>

<bundles_post_ra>
// kernel: deeplab_forward.16
= control target key start
LH: loop header
LB: loop body
LE: loop exit
PB: predicated region body
PF: predicated region fallthrough
CT: control target
= control target key end

     0   :  { %s678_s12 = smov 0   ;;  %s680_s13 = smov 0   ;;  %s763_s0 = inlined_call_operand.vmem [shape: bf16[16,27], index: 0, kind: input, shape index: {}]   ;;  %s764_s1 = inlined_call_operand.vmem [shape: bf16[27,512], index: 1, kind: input, shape index: {}]   ;;  %s765_s2 = inlined_call_operand.vmem [shape: f32[16,1], index: 2, kind: input, shape index: {}]   ;;  %s766_s3 = inlined_call_operand.vmem [shape: bf16[16,512], index: 3, kind: output, shape index: {}]  }
   0x1   :  { %s682_s14 = smov 0   ;;  %s684_s15 = smov 0  }
   0x2   :  { %s686_s16 = smov 0  }
   0x3 LB: > { %s22_s17 = sadd.s32 1, %s650_s15  ;;  %s537_s18 = sadd.s32 4294967295, %s654_s16   ;;  %s654_s16 = sphi %s686_s16, %s13_s16   ;;  %s650_s15 = sphi %s684_s15, %s771_s15   ;;  %s646_s14 = sphi %s682_s14, %s770_s14   ;;  %s642_s13 = sphi %s680_s13, %s769_s13   ;;  %s638_s12 = sphi %s678_s12, %s768_s12  }
   0x4   : > { %p23_p0 = scmp.ge.s32.totalorder %s22_s17, 2  ;;  %p65_p1 = scmp.ne.s32.totalorder %s642_s13, %s638_s12 }
   0x5   : > { %p66_p2 = scmp.eq.s32.totalorder %s654_s16, 0  ;;  %p123_p4 = scmp.eq.s32.totalorder %s537_s18, 1 }
   0x6   : > { %s773_s17 = smov (%p23_p0, %s22_s17), 0  ;;  %s58_s20 = sadd.s32 1, %s642_s13 }
   0x7   : > { %p67_p3 = por %p66_p2, %p65_p1  ;;  %s55_s19 = ssub.s32 %s650_s15, %s773_s17 }
   0x8   : > { %p56_p5 = scmp.eq.s32.totalorder %s55_s19, 0  ;;  %p713_p6 = por %p123_p4, %p65_p1 }
   0x9   : > { %p542_p7 = scmp.ge.s32.totalorder %s654_s16, 2 }
   0xa   : > { %s718_s22 = scalar_select %p56_p5, %s642_s13, %s58_s20  }
   0xb   : > { %163 = sbr.rel (%p542_p7) target bundleno = 25 (0x19), region = 24 }
  0x12   : > { %166 = sbr.rel (!%p67_p3) target bundleno = 25 (0x19), region = 28  ;;  %s168_s23 = sand.u32 (%p67_p3), 1, %s642_s13  }
  0x13   : > { %s562_s24 = sshll.u32 (%p67_p3), %s650_s15, 3  ;;  %s543_s25 = sshll.u32 (%p67_p3), %s168_s23, 5 }
  0x14   : > { %s173_s28 = scalar_lea.vmem (%p67_p3), %s764_s1, %s562_s24  ;;  %s170_s29 = scalar_lea.vmem (%p67_p3), [#allocation2], %s543_s25 }
  0x15   : > { %v207_v0 = vld [vmem:[%s173_s28] sm:$0xff] (%p67_p3)  ;;  %v209_v1 = vld [vmem:[%s173_s28 + $0x10] sm:$0xff] (%p67_p3) }
  0x16   : > { %v211_v2 = vld [vmem:[%s173_s28 + $0x20] sm:$0xff] (%p67_p3)  ;;  %208 = vst [vmem:[%s170_s29] sm:$0xff] (%p67_p3), %v207_v0  ;;  %210 = vst [vmem:[%s170_s29 + $0x8] sm:$0xff] (%p67_p3), %v209_v1  ;;  %v213_v3 = vld [vmem:[%s173_s28 + $0x30] sm:$0xff] (%p67_p3) }
  0x17   : > { %212 = vst [vmem:[%s170_s29 + $0x10] sm:$0xff] (%p67_p3), %v211_v2  ;;  %214 = vst [vmem:[%s170_s29 + $0x18] sm:$0xff] (%p67_p3), %v213_v3 }
  0x19 PF: > { %p546_p8 = scmp.ge.s32.totalorder %s654_s16, 1  ;;  %p219_p9 = scmp.lt.s32.totalorder %s654_s16, 3 }
  0x1b   : > { %p220_p10 = pnand %p546_p8, %p219_p9 }
  0x1c   : > { %s226_s30 = sand.u32 (!%p220_p10), 1, %s638_s12   ;;  %vm319_vm0 = vcmask (!%p220_p10), 1044480   ;;  %vm320_vm1 = vcmask (!%p220_p10), 1045504   ;;  %v656_v4 = vmov (!%p220_p10), 65535   ;;  %v657_v6 = vmov (!%p220_p10), 0   ;;  %v280_v7 = vld [vmem:[%s765_s2] sm:$0xff] (!%p220_p10) }
  0x1d   : > { %223 = sbr.rel (%p220_p10) target bundleno = 270 (0x10e), region = 66  ;;  %s547_s4 = sshll.u32 (!%p220_p10), %s226_s30, 5  ;;  %v321_v5 = vsel (!%p220_p10), %vm319_vm0, 4294967295, %v656_v4  ;;  %361 = vmatprep.mubr.bf16.mxu0 (!%p220_p10), %v657_v6  ;;  %608 = vset.pattern.permute.xlu0 (!%p220_p10), %v657_v6  ;;  %v281_v8 = vld [vmem:[%s765_s2 + $0x8] sm:$0xff] (!%p220_p10)  ;;  %v615_v16 = vld [vmem:[%s763_s0] sm:$0xff] (!%p220_p10)   ;;  %vm315_vm2 = vcmask (!%p220_p10), 220160  }
  0x1e   : > { %s228_s9 = scalar_lea.vmem (!%p220_p10), [#allocation2], %s547_s4  ;;  %284 = vperm.xlu0 (!%p220_p10), %608, %v280_v7   ;;  %v322_v11 = vsel (!%p220_p10), %vm320_vm1, %v321_v5, 0  ;;  %s548_s18 = sshll.u32 (!%p220_p10), %s226_s30, 4 }
  0x1f   : > { %v609_v9 = vld [vmem:[%s228_s9 + $0x4] ss:$8 sps:$4 sm:$0xff] (!%p220_p10)   ;;  %v611_v10 = vld [vmem:[%s228_s9] ss:$8 sps:$4 sm:$0xff] (!%p220_p10)   ;;  %s257_s19 = scalar_lea.vmem (!%p220_p10), [#allocation3], %s548_s18 }
  0x20   : > { %329 = vmatprep.subr.bf16.mxu0 (!%p220_p10), %v609_v9  ;;  %v612_v12 = vld [vmem:[%s228_s9 + $0x14] ss:$8 sps:$4 sm:$0x3f] (!%p220_p10)   ;;  %v614_v13 = vld [vmem:[%s228_s9 + $0x10] ss:$8 sps:$4 sm:$0x3f] (!%p220_p10)  }
  0x21   : > { %330 = vmatpush1.bf16.msra.mxu0 (!%p220_p10), %v611_v10  ;;  %v327_v14 = vand.u32 (!%p220_p10), %v612_v12, %v322_v11  ;;  %v324_v15 = vand.u32 (!%p220_p10), %v614_v13, %v322_v11 }
  0x22   : > { %289 = vperm.xlu0 (!%p220_p10), %608, %v281_v8  }
  0x23   : > { %331 = vmatprep.subr.bf16.mxu0 (!%p220_p10), %v327_v14 }
  0x24   : > { %s565_s12 = sshll.u32 (%p713_p6), %s646_s14, 3 }
  0x25   : > { %332 = vmatpush1.bf16.msra.mxu0 %v324_v15  ;;  %s402_s24 = scalar_lea.vmem (%p713_p6), %s766_s3, %s565_s12 }
  0x28   : > { %554 = vmatmul.mubr.msk.bf16.vlgmr.msra.gmra.mrb[0].mxu0 %vm315_vm2, %v615_v16 }
  0x9d   : > { %v285_v17 = vpop.permute.xlu0 %284 }
  0xa1   : > { %v290_v21 = vpop.permute.xlu0 %289 }
  0xfb   : > { %v363_v18 = vpop.f32.mrb[0].mxu0 }
  0xfc   : > { %v364_v19 = vadd.f32 %v363_v18, %v285_v17  ;;  %v365_v20 = vpop.f32.mrb[1].mxu0 }
  0xfd   : > { %v366_v22 = vadd.f32 %v365_v20, %v285_v17  ;;  %v367_v23 = vpop.f32.mrb[2].mxu0 }
  0xfe   : > { %v372_v24 = vmax.f32 %v364_v19, 0.0  ;;  %v368_v25 = vadd.f32 %v367_v23, %v290_v21  ;;  %v369_v26 = vpop.f32.mrb[3].mxu0 }
  0xff   : > { %v373_v27 = vmax.f32 %v366_v22, 0.0  ;;  %v370_v28 = vadd.f32 %v369_v26, %v290_v21  ;;  %396 = sbr.rel (!%p713_p6) target bundleno = 270 (0x10e), region = 74 }
 0x100   : > { %v374_v29 = vmax.f32 %v368_v25, 0.0 }
 0x101   : > { %v563_v30 = vpack.c.bf16 %v373_v27, %v372_v24  ;;  %v375_v31 = vmax.f32 %v370_v28, 0.0 }
 0x103   : > { %388 = vst [vmem:[%s257_s19] sm:$0xff] %v563_v30  ;;  %v564_v32 = vpack.c.bf16 %v375_v31, %v374_v29 }
 0x105   : > { %389 = vst [vmem:[%s257_s19 + $0x8] sm:$0xff] %v564_v32 }
 0x10a   : > { %v432_v33 = vld [vmem:[%s257_s19] sm:$0xff] }
 0x10b   : > { %433 = vst [vmem:[%s402_s24] sm:$0xff] %v432_v33 }
 0x10c   : > { %v434_v34 = vld [vmem:[%s257_s19 + $0x8] sm:$0xff] }
 0x10d   : > { %435 = vst [vmem:[%s402_s24 + $0x10] sm:$0xff] %v434_v34 }
 0x10e PF: > { %s13_s16 = sadd.s32 1, %s654_s16   ;;  %s768_s12 = smov %s642_s13 }
 0x10f   : > { %p10_p11 = scmp.ge.s32.totalorder %s13_s16, 4   ;;  %s769_s13 = smov %s718_s22 }
 0x110   : > { %s770_s14 = smov %s650_s15  ;;  %s771_s15 = smov %s773_s17 }
 0x111   :  { %12 = sbr.rel (!%p10_p11) target bundleno = 3 (0x3), region = 149 }

// kernel: deeplab_forward.17
= control target key start
LH: loop header
LB: loop body
LE: loop exit
PB: predicated region body
PF: predicated region fallthrough
CT: control target
= control target key end

     0   :  { %v181_v0 = vmov 0.0   ;;  %vm182_vm0 = vmmov 0   ;;  %v183_v2 = vmov 0   ;;  %vm74_vm1 = vcmask 1043456   ;;  %s231_s1 = inlined_call_operand.vmem [shape: bf16[72,128], index: 1, kind: input, shape index: {}]   ;;  %s232_s2 = inlined_call_operand.vmem [shape: f32[16,1], index: 2, kind: input, shape index: {}]   ;;  %s233_s0 = inlined_call_operand.vmem [shape: bf16[16,72], index: 0, kind: input, shape index: {}]   ;;  %s234_s3 = inlined_call_operand.vmem [shape: bf16[16,128], index: 3, kind: output, shape index: {}]  }
   0x1   :  { %157 = vmatprep.subr.bf16.mxu0 %v181_v0  ;;  %v175_v1 = vld [vmem:[%s231_s1] sm:$0xff]   ;;  %167 = vmatprep.mubr.msk.bf16.mxu0 %vm182_vm0, %v181_v0  ;;  %v176_v3 = vld [vmem:[%s231_s1 + $0x8] sm:$0xff]   ;;  %v177_v5 = vld [vmem:[%s231_s1 + $0x10] sm:$0xff]   ;;  %vm70_vm2 = vcmask 588800  }
   0x2   :  { %174 = vset.pattern.permute.xlu0 %v183_v2  ;;  %158 = vmatpush3.bf16.msra.mxu0 %v175_v1  ;;  %v26_v4 = vld [vmem:[%s232_s2] sm:$0xff]  ;;  %v27_v6 = vld [vmem:[%s232_s2 + $0x8] sm:$0xff]  ;;  %v178_v7 = vld [vmem:[%s231_s1 + $0x18] sm:$0xff]  }
   0x3   :  { %159 = vmatprep.subr.bf16.mxu0 %v181_v0  ;;  %30 = vperm.xlu0 %174, %v26_v4   ;;  %v179_v8 = vld [vmem:[%s231_s1 + $0x20] ss:$0 sps:$4 sm:$0xff]  }
   0x4   :  { %v76_v9 = vsel %vm74_vm1, %v179_v8, 0  ;;  %v180_v10 = vld [vmem:[%s233_s0] sm:$0xff]  }
   0x6   :  { %160 = vmatpush3.bf16.msra.mxu0 %v176_v3 }
   0x7   :  { %161 = vmatprep.subr.bf16.mxu0 %v181_v0  ;;  %35 = vperm.xlu0 %174, %v27_v6  }
   0xa   :  { %162 = vmatpush3.bf16.msra.mxu0 %v177_v5 }
   0xb   :  { %163 = vmatprep.subr.bf16.mxu0 %v181_v0 }
   0xe   :  { %164 = vmatpush3.bf16.msra.mxu0 %v178_v7 }
   0xf   :  { %165 = vmatprep.subr.bf16.mxu0 %v181_v0 }
  0x12   :  { %166 = vmatpush3.bf16.msra.mxu0 %v76_v9 }
  0x15   :  { %168 = vmatmul.mubr.msk.bf16.vlgmr.msra.gmra.mrb[0].mxu0 %vm70_vm2, %v180_v10 }
  0x82   :  { %v31_v11 = vpop.permute.xlu0 %30 }
  0x86   :  { %v36_v15 = vpop.permute.xlu0 %35 }
  0xe8   :  { %v112_v12 = vpop.f32.mrb[0].mxu0 }
  0xe9   :  { %v113_v13 = vadd.f32 %v112_v12, %v31_v11  ;;  %v169_v14 = vpop.f32.mrb[1].mxu0 }
  0xea   :  { %v115_v16 = vpop.f32.mrb[2].mxu0 }
  0xeb   :  { %v116_v17 = vadd.f32 %v115_v16, %v36_v15  ;;  %v170_v18 = vpop.f32.mrb[3].mxu0  ;;  %v119_v19 = vmax.f32 %v113_v13, 0.0 }
  0xed   :  { %v120_v20 = vmax.f32 %v116_v17, 0.0 }
  0xef   :  { %v149_v21 = vpack.c.bf16 %v120_v20, %v119_v19 }
  0xf1   :  { %150 = vst [vmem:[%s234_s3] sm:$0xff] %v149_v21  }

// kernel: deeplab_forward.18
= control target key start
LH: loop header
LB: loop body
LE: loop exit
PB: predicated region body
PF: predicated region fallthrough
CT: control target
= control target key end

     0   :  { %v277_v0 = vmov 0   ;;  %vm133_vm0 = vcmask 130048   ;;  %vm209_vm1 = vcmask 257024   ;;  %s361_s1 = inlined_call_operand.vmem [shape: bf16[144,32], index: 1, kind: input, shape index: {}]   ;;  %s362_s0 = inlined_call_operand.vmem [shape: bf16[32,144], index: 0, kind: input, shape index: {}]   ;;  %s363_s2 = inlined_call_operand.vmem [shape: f32[32,1], index: 2, kind: input, shape index: {}]   ;;  %s364_s3 = inlined_call_operand.vmem [shape: bf16[32,32], index: 3, kind: output, shape index: {}]  }
   0x1   :  { %140 = vmatprep.subr.bf16.mxu0 %v277_v0  ;;  %241 = vmatprep.subr.bf16.mxu1 %v277_v0  ;;  %v262_v1 = vld [vmem:[%s361_s1] sm:$0xff]   ;;  %v263_v2 = vld [vmem:[%s361_s1 + $0x8] sm:$0xff]   ;;  %v264_v3 = vld [vmem:[%s361_s1 + $0x10] sm:$0xff]  }
   0x2   :  { %261 = vset.pattern.permute.xlu1 %v277_v0  ;;  %260 = vset.pattern.permute.xlu0 %v277_v0  ;;  %v265_v4 = vld [vmem:[%s361_s1 + $0x18] sm:$0xff]   ;;  %v273_v5 = vld [vmem:[%s362_s0 + $0x4] ss:$8 sps:$4 sm:$0xff]   ;;  %v39_v7 = vld [vmem:[%s363_s2 + $0x10] sm:$0xff] }
   0x3   :  { %141 = vmatpush1.bf16.msra.mxu0 %v262_v1  ;;  %250 = vmatpush1.bf16.msra.mxu1 %v262_v1  ;;  %v276_v6 = vld [vmem:[%s362_s0 + $0x14] ss:$8 sps:$4 sm:$0xff]   ;;  %v37_v8 = vld [vmem:[%s363_s2] sm:$0xff]  ;;  %v38_v11 = vld [vmem:[%s363_s2 + $0x8] sm:$0xff] }
   0x4   :  { %142 = vmatprep.subr.bf16.mxu0 %v277_v0  ;;  %242 = vmatprep.subr.bf16.mxu1 %v277_v0  ;;  %v40_v9 = vld [vmem:[%s363_s2 + $0x18] sm:$0xff]  ;;  %v266_v10 = vld [vmem:[%s361_s1 + $0x20] sm:$0xff]   ;;  %v267_v12 = vld [vmem:[%s361_s1 + $0x28] sm:$0xff]  }
   0x5   :  { %231 = vmatprep.mubr.msk.bf16.mxu0 %vm133_vm0, %v273_v5  ;;  %53 = vperm.xlu1 %261, %v39_v7   ;;  %v268_v13 = vld [vmem:[%s361_s1 + $0x30] sm:$0xff]   ;;  %v269_v14 = vld [vmem:[%s361_s1 + $0x38] sm:$0xff]   ;;  %v270_v15 = vld [vmem:[%s361_s1 + $0x40] sm:$0xff]  }
   0x6   :  { %232 = vmatprep.mubr.msk.bf16.mxu1 %vm133_vm0, %v276_v6  ;;  %43 = vperm.xlu0 %260, %v37_v8   ;;  %v271_v16 = vld [vmem:[%s362_s0] ss:$8 sps:$4 sm:$0xff]   ;;  %v274_v17 = vld [vmem:[%s362_s0 + $0x10] ss:$8 sps:$4 sm:$0xff]  }
   0x7   :  { %143 = vmatpush1.bf16.msra.mxu0 %v263_v2  ;;  %251 = vmatpush1.bf16.msra.mxu1 %v263_v2 }
   0x8   :  { %144 = vmatprep.subr.bf16.mxu0 %v277_v0  ;;  %243 = vmatprep.subr.bf16.mxu1 %v277_v0 }
   0x9   :  { %58 = vperm.xlu1 %261, %v40_v9  }
   0xa   :  { %48 = vperm.xlu0 %260, %v38_v11  }
   0xb   :  { %145 = vmatpush1.bf16.msra.mxu0 %v264_v3  ;;  %252 = vmatpush1.bf16.msra.mxu1 %v264_v3 }
   0xc   :  { %146 = vmatprep.subr.bf16.mxu0 %v277_v0  ;;  %244 = vmatprep.subr.bf16.mxu1 %v277_v0 }
   0xf   :  { %147 = vmatpush1.bf16.msra.mxu0 %v265_v4  ;;  %253 = vmatpush1.bf16.msra.mxu1 %v265_v4 }
  0x10   :  { %148 = vmatprep.subr.bf16.mxu0 %v277_v0  ;;  %245 = vmatprep.subr.bf16.mxu1 %v277_v0 }
  0x13   :  { %149 = vmatpush1.bf16.msra.mxu0 %v266_v10  ;;  %254 = vmatpush1.bf16.msra.mxu1 %v266_v10 }
  0x14   :  { %150 = vmatprep.subr.bf16.mxu0 %v277_v0  ;;  %246 = vmatprep.subr.bf16.mxu1 %v277_v0 }
  0x17   :  { %151 = vmatpush1.bf16.msra.mxu0 %v267_v12  ;;  %255 = vmatpush1.bf16.msra.mxu1 %v267_v12 }
  0x18   :  { %152 = vmatprep.subr.bf16.mxu0 %v277_v0  ;;  %247 = vmatprep.subr.bf16.mxu1 %v277_v0 }
  0x1b   :  { %153 = vmatpush1.bf16.msra.mxu0 %v268_v13  ;;  %256 = vmatpush1.bf16.msra.mxu1 %v268_v13 }
  0x1c   :  { %154 = vmatprep.subr.bf16.mxu0 %v277_v0  ;;  %248 = vmatprep.subr.bf16.mxu1 %v277_v0 }
  0x1f   :  { %155 = vmatpush1.bf16.msra.mxu0 %v269_v14  ;;  %257 = vmatpush1.bf16.msra.mxu1 %v269_v14 }
  0x20   :  { %156 = vmatprep.subr.bf16.mxu0 %v277_v0  ;;  %249 = vmatprep.subr.bf16.mxu1 %v277_v0 }
  0x23   :  { %157 = vmatpush1.bf16.msra.mxu0 %v270_v15  ;;  %258 = vmatpush1.bf16.msra.mxu1 %v270_v15 }
  0x26   :  { %173 = vmatmul.mubr.bf16.vlgmr.msra.gmra.mrb[0].mxu0 %v271_v16  ;;  %181 = vmatmul.mubr.bf16.vlgmr.msra.gmra.mrb[0].mxu1 %v274_v17 }
  0x84   :  { %v54_v18 = vpop.permute.xlu1 %53 }
  0x85   :  { %v44_v19 = vpop.permute.xlu0 %43 }
  0x88   :  { %v59_v20 = vpop.permute.xlu1 %58 }
  0x89   :  { %v49_v21 = vpop.permute.xlu0 %48 }
  0xf9   :  { %v174_v22 = vpop.f32.mrb[0].mxu0  ;;  %v182_v23 = vpop.f32.mrb[0].mxu1 }
  0xfa   :  { %v175_v24 = vadd.f32 %v174_v22, %v44_v19  ;;  %v183_v25 = vadd.f32 %v182_v23, %v54_v18  ;;  %v176_v26 = vpop.f32.mrb[1].mxu0  ;;  %v184_v27 = vpop.f32.mrb[1].mxu1 }
  0xfb   :  { %v177_v28 = vpop.f32.mrb[2].mxu0  ;;  %v185_v29 = vpop.f32.mrb[2].mxu1 }
  0xfc   :  { %v189_v30 = vmax.f32 %v175_v24, 0.0  ;;  %v191_v31 = vmax.f32 %v183_v25, 0.0  ;;  %v178_v32 = vadd.f32 %v177_v28, %v49_v21  ;;  %v186_v33 = vadd.f32 %v185_v29, %v59_v20  ;;  %v179_v34 = vpop.f32.mrb[3].mxu0  ;;  %v187_v35 = vpop.f32.mrb[3].mxu1 }
  0xfe   :  { %v237_v36 = vpack.c.bf16 %v189_v30, %v189_v30  ;;  %v239_v37 = vpack.c.bf16 %v191_v31, %v191_v31  ;;  %v190_v38 = vmax.f32 %v178_v32, 0.0  ;;  %v192_v39 = vmax.f32 %v186_v33, 0.0 }
 0x100   :  { %210 = vst.msk [vmem:[%s364_s3] sm:$0xf] %vm209_vm1, %v237_v36  ;;  %212 = vst.msk [vmem:[%s364_s3 + $0x8] sm:$0xf] %vm209_vm1, %v239_v37  ;;  %v238_v40 = vpack.c.bf16 %v190_v38, %v190_v38  ;;  %v240_v41 = vpack.c.bf16 %v192_v39, %v192_v39 }
 0x102   :  { %211 = vst.msk [vmem:[%s364_s3 + $0x4] sm:$0xf] %vm209_vm1, %v238_v40  ;;  %213 = vst.msk [vmem:[%s364_s3 + $0xc] sm:$0xf] %vm209_vm1, %v240_v41 }

// kernel: deeplab_forward.26
= control target key start
LH: loop header
LB: loop body
LE: loop exit
PB: predicated region body
PF: predicated region fallthrough
CT: control target
= control target key end

     0   :  { %v129_v0 = vmov 0.0   ;;  %vm130_vm0 = vmmov 0   ;;  %v131_v3 = vmov 0   ;;  %vm42_vm1 = vcmask 130048   ;;  %s167_s1 = inlined_call_operand.vmem [shape: bf16[16,128], index: 1, kind: input, shape index: {}]   ;;  %s168_s0 = inlined_call_operand.vmem [shape: bf16[16,16], index: 0, kind: input, shape index: {}]   ;;  %s169_s2 = inlined_call_operand.vmem [shape: f32[16,1], index: 2, kind: input, shape index: {}]   ;;  %s170_s3 = inlined_call_operand.vmem [shape: bf16[16,128], index: 3, kind: output, shape index: {}]  }
   0x1   :  { %117 = vmatprep.subr.bf16.mxu0 %v129_v0  ;;  %v127_v1 = vld [vmem:[%s167_s1] sm:$0xff]   ;;  %119 = vmatprep.mubr.msk.bf16.mxu0 %vm130_vm0, %v129_v0  ;;  %v20_v5 = vld [vmem:[%s169_s2 + $0x8] sm:$0xff] }
   0x2   :  { %v128_v2 = vld [vmem:[%s168_s0] sm:$0xff]   ;;  %126 = vset.pattern.permute.xlu0 %v131_v3  ;;  %118 = vmatpush3.bf16.msra.mxu0 %v127_v1 }
   0x3   :  { %v19_v4 = vld [vmem:[%s169_s2] sm:$0xff] }
   0x4   :  { %23 = vperm.xlu0 %126, %v19_v4  }
   0x5   :  { %120 = vmatmul.mubr.msk.bf16.vlgmr.msra.gmra.mrb[0].mxu0 %vm42_vm1, %v128_v2 }
   0x8   :  { %28 = vperm.xlu0 %126, %v20_v5  }
  0x83   :  { %v24_v6 = vpop.permute.xlu0 %23 }
  0x87   :  { %v29_v10 = vpop.permute.xlu0 %28 }
  0xd8   :  { %v80_v7 = vpop.f32.mrb[0].mxu0 }
  0xd9   :  { %v81_v8 = vadd.f32 %v80_v7, %v24_v6  ;;  %v121_v9 = vpop.f32.mrb[1].mxu0 }
  0xda   :  { %v83_v11 = vpop.f32.mrb[2].mxu0 }
  0xdb   :  { %v84_v12 = vadd.f32 %v83_v11, %v29_v10  ;;  %v122_v13 = vpop.f32.mrb[3].mxu0  ;;  %v87_v14 = vmax.f32 %v81_v8, 0.0 }
  0xdd   :  { %v88_v15 = vmax.f32 %v84_v12, 0.0 }
  0xdf   :  { %v113_v16 = vpack.c.bf16 %v88_v15, %v87_v14 }
  0xe1   :  { %114 = vst [vmem:[%s170_s3] sm:$0xff] %v113_v16  }

// kernel: deeplab_forward.19
= control target key start
LH: loop header
LB: loop body
LE: loop exit
PB: predicated region body
PF: predicated region fallthrough
CT: control target
= control target key end

     0   :  { %v458_v1 = vmov 0   ;;  %vm221_vm0 = vcmask 261120   ;;  %vm346_vm1 = vcmask 60416   ;;  %s581_s1 = inlined_call_operand.vmem [shape: bf16[288,8], index: 1, kind: input, shape index: {}]   ;;  %s582_s0 = inlined_call_operand.vmem [shape: bf16[32,288], index: 0, kind: input, shape index: {}]   ;;  %s583_s2 = inlined_call_operand.vmem [shape: f32[32,1], index: 2, kind: input, shape index: {}]   ;;  %s584_s3 = inlined_call_operand.vmem [shape: bf16[32,8], index: 3, kind: output, shape index: {}]  }
   0x1   :  { %v432_v0 = vld [vmem:[%s581_s1 + $0x40] sm:$0xff]   ;;  %430 = vset.pattern.permute.xlu0 %v458_v1  ;;  %431 = vset.pattern.permute.xlu1 %v458_v1  ;;  %v434_v3 = vld [vmem:[%s581_s1 + $0x48] sm:$0xff]   ;;  %v436_v5 = vld [vmem:[%s581_s1 + $0x50] sm:$0xff]  }
   0x2   :  { %v433_v2 = vld [vmem:[%s581_s1] sm:$0xff]   ;;  %389 = vmatprep.subr.bf16.mxu0 %v432_v0  ;;  %v435_v4 = vld [vmem:[%s581_s1 + $0x8] sm:$0xff]   ;;  %v437_v6 = vld [vmem:[%s581_s1 + $0x10] sm:$0xff]  }
   0x3   :  { %390 = vmatpush3.bf16.msra.mxu0 %v433_v2  ;;  %v438_v7 = vld [vmem:[%s581_s1 + $0x58] sm:$0xff]   ;;  %v440_v9 = vld [vmem:[%s581_s1 + $0x60] sm:$0xff]   ;;  %v442_v12 = vld [vmem:[%s581_s1 + $0x68] sm:$0xff]  }
   0x4   :  { %391 = vmatprep.subr.bf16.mxu0 %v434_v3  ;;  %v439_v8 = vld [vmem:[%s581_s1 + $0x18] sm:$0xff]   ;;  %v441_v10 = vld [vmem:[%s581_s1 + $0x20] sm:$0xff]   ;;  %v443_v13 = vld [vmem:[%s581_s1 + $0x28] sm:$0xff]  }
   0x5   :  { %v447_v11 = vld [vmem:[%s581_s1 + $0x80] sm:$0xff]   ;;  %v444_v14 = vld [vmem:[%s581_s1 + $0x70] sm:$0xff]   ;;  %v452_v16 = vld [vmem:[%s581_s1 + $0x88] sm:$0xff]  }
   0x6   :  { %421 = vmatprep.subr.bf16.mxu1 %v447_v11  ;;  %v451_v15 = vld [vmem:[%s582_s0 + $0x4] ss:$12 sps:$4 sm:$0xff]   ;;  %v453_v17 = vld [vmem:[%s582_s0 + $0x8] ss:$12 sps:$4 sm:$0xff]   ;;  %v454_v18 = vld [vmem:[%s582_s0 + $0x20] ss:$12 sps:$4 sm:$0xff]  }
   0x7   :  { %392 = vmatpush3.bf16.msra.mxu0 %v435_v4  ;;  %422 = vmatpush3.bf16.msra.mxu1 %v447_v11  ;;  %v59_v19 = vld [vmem:[%s583_s2] sm:$0xff]  ;;  %v445_v20 = vld [vmem:[%s581_s1 + $0x30] sm:$0xff]   ;;  %v446_v22 = vld [vmem:[%s581_s1 + $0x78] sm:$0xff]  }
   0x8   :  { %393 = vmatprep.subr.bf16.mxu0 %v436_v5  ;;  %260 = vmatprep.mubr.bf16.mxu0 %v451_v15  ;;  %v61_v21 = vld [vmem:[%s583_s2 + $0x10] sm:$0xff]  ;;  %v60_v23 = vld [vmem:[%s583_s2 + $0x8] sm:$0xff]  ;;  %v62_v24 = vld [vmem:[%s583_s2 + $0x18] sm:$0xff] }
   0x9   :  { %423 = vmatprep.subr.bf16.mxu1 %v452_v16  ;;  %425 = vmatprep.mubr.msk.bf16.mxu1 %vm221_vm0, %v453_v17  ;;  %v448_v25 = vld [vmem:[%s581_s1 + $0x38] sm:$0xff]   ;;  %v449_v26 = vld [vmem:[%s582_s0] ss:$12 sps:$4 sm:$0xff]  }
   0xa   :  { %65 = vperm.xlu0 %430, %v59_v19   ;;  %75 = vperm.xlu1 %431, %v61_v21   ;;  %v455_v27 = vld [vmem:[%s582_s0 + $0x1c] ss:$12 sps:$4 sm:$0xff]   ;;  %v457_v28 = vld [vmem:[%s582_s0 + $0x18] ss:$12 sps:$4 sm:$0xff]  }
   0xb   :  { %394 = vmatpush3.bf16.msra.mxu0 %v437_v6  ;;  %424 = vmatpush3.bf16.msra.mxu1 %v452_v16 }
   0xc   :  { %395 = vmatprep.subr.bf16.mxu0 %v438_v7 }
   0xe   :  { %426 = vmatmul.mubr.msk.bf16.vlgmr.msra.gmra.mrb[0].mxu1 %vm221_vm0, %v454_v18  ;;  %70 = vperm.xlu0 %430, %v60_v23  }
   0xf   :  { %396 = vmatpush3.bf16.msra.mxu0 %v439_v8  ;;  %80 = vperm.xlu1 %431, %v62_v24  }
  0x10   :  { %397 = vmatprep.subr.bf16.mxu0 %v440_v9 }
  0x13   :  { %398 = vmatpush3.bf16.msra.mxu0 %v441_v10 }
  0x14   :  { %399 = vmatprep.subr.bf16.mxu0 %v442_v12 }
  0x17   :  { %400 = vmatpush3.bf16.msra.mxu0 %v443_v13 }
  0x18   :  { %401 = vmatprep.subr.bf16.mxu0 %v444_v14 }
  0x1b   :  { %402 = vmatpush3.bf16.msra.mxu0 %v445_v20 }
  0x1c   :  { %403 = vmatprep.subr.bf16.mxu0 %v446_v22 }
  0x1f   :  { %404 = vmatpush3.bf16.msra.mxu0 %v448_v25 }
  0x22   :  { %261 = vmatmul.mubr.bf16.vlgmr.msra.gmra.mrb[0].mxu0 %v449_v26 }
  0x23   :  { %268 = vmatprep.mubr.bf16.mxu0 %v455_v27 }
  0x2a   :  { %269 = vmatmul.mubr.bf16.gmra.mrb[4].mxu0 %v457_v28 }
  0x89   :  { %v66_v33 = vpop.permute.xlu0 %65  ;;  %v76_v44 = vpop.permute.xlu1 %75 }
  0x8d   :  { %v71_v39 = vpop.permute.xlu0 %70 }
  0x8e   :  { %v81_v57 = vpop.permute.xlu1 %80 }
  0xe1   :  { %v427_v29 = vpop.f32.mrb[0].mxu1 }
  0xe2   :  { %v311_v30 = vpop.f32.mrb[1].mxu1 }
  0xe3   :  { %v428_v31 = vpop.f32.mrb[2].mxu1 }
  0xe4   :  { %v314_v32 = vpop.f32.mrb[3].mxu1 }
  0xf5   :  { %v405_v34 = vpop.f32.mrb[0].mxu0 }
  0xf6   :  { %v406_v35 = vpop.f32.mrb[1].mxu0 }
  0xf7   :  { %v407_v36 = vadd.f32 %v406_v35, %v405_v34  ;;  %v408_v37 = vpop.f32.mrb[2].mxu0 }
  0xf8   :  { %v409_v38 = vpop.f32.mrb[3].mxu0 }
  0xf9   :  { %v410_v40 = vadd.f32 %v409_v38, %v408_v37  ;;  %v263_v41 = vadd.f32 %v407_v36, %v66_v33 }
  0xfb   :  { %v266_v42 = vadd.f32 %v410_v40, %v71_v39  ;;  %v312_v43 = vadd.f32 %v311_v30, %v263_v41 }
  0xfd   :  { %v326_v45 = vmax.f32 %v312_v43, 0.0  ;;  %v315_v46 = vadd.f32 %v314_v32, %v266_v42  ;;  %v411_v47 = vpop.f32.mrb[4].mxu0 }
  0xfe   :  { %v412_v48 = vpop.f32.mrb[5].mxu0 }
  0xff   :  { %v385_v49 = vpack.c.bf16 %v326_v45, %v326_v45  ;;  %v327_v50 = vmax.f32 %v315_v46, 0.0  ;;  %v413_v51 = vadd.f32 %v412_v48, %v411_v47  ;;  %v414_v52 = vpop.f32.mrb[6].mxu0 }
 0x100   :  { %v415_v53 = vpop.f32.mrb[7].mxu0 }
 0x101   :  { %347 = vst.msk [vmem:[%s584_s3] sm:$0xf] %vm346_vm1, %v385_v49  ;;  %v386_v54 = vpack.c.bf16 %v327_v50, %v327_v50  ;;  %v271_v55 = vadd.f32 %v413_v51, %v76_v44  ;;  %v416_v56 = vadd.f32 %v415_v53, %v414_v52 }
 0x103   :  { %348 = vst.msk [vmem:[%s584_s3 + $0x4] sm:$0xf] %vm346_vm1, %v386_v54  ;;  %v320_v58 = vadd.f32 %v427_v29, %v271_v55  ;;  %v274_v59 = vadd.f32 %v416_v56, %v81_v57 }
 0x105   :  { %v328_v60 = vmax.f32 %v320_v58, 0.0  ;;  %v323_v61 = vadd.f32 %v428_v31, %v274_v59 }
 0x107   :  { %v387_v62 = vpack.c.bf16 %v328_v60, %v328_v60  ;;  %v329_v63 = vmax.f32 %v323_v61, 0.0 }
 0x109   :  { %349 = vst.msk [vmem:[%s584_s3 + $0x8] sm:$0xf] %vm346_vm1, %v387_v62  ;;  %v388_v0 = vpack.c.bf16 %v329_v63, %v329_v63 }
 0x10b   :  { %350 = vst.msk [vmem:[%s584_s3 + $0xc] sm:$0xf] %vm346_vm1, %v388_v0 }

// kernel: deeplab_forward.24
= control target key start
LH: loop header
LB: loop body
LE: loop exit
PB: predicated region body
PF: predicated region fallthrough
CT: control target
= control target key end

     0   :  { %v138_v0 = vmov 0.0   ;;  %vm139_vm0 = vmmov 0   ;;  %v140_v2 = vmov 0   ;;  %vm50_vm1 = vcmask 261120   ;;  %s182_s1 = inlined_call_operand.vmem [shape: bf16[32,2], index: 1, kind: input, shape index: {}]   ;;  %s183_s2 = inlined_call_operand.vmem [shape: f32[16,1], index: 2, kind: input, shape index: {}]   ;;  %s184_s0 = inlined_call_operand.vmem [shape: bf16[16,32], index: 0, kind: input, shape index: {}]   ;;  %s185_s3 = inlined_call_operand.vmem [shape: bf16[16,2], index: 3, kind: output, shape index: {}]  }
   0x1   :  { %123 = vmatprep.subr.bf16.mxu0 %v138_v0  ;;  %v135_v1 = vld [vmem:[%s182_s1] sm:$0xff]   ;;  %127 = vmatprep.mubr.msk.bf16.mxu0 %vm139_vm0, %v138_v0  ;;  %v136_v3 = vld [vmem:[%s182_s1 + $0x8] sm:$0xff]   ;;  %vm105_vm2 = vcmask 11264  }
   0x2   :  { %134 = vset.pattern.permute.xlu0 %v140_v2  ;;  %124 = vmatpush3.bf16.msra.mxu0 %v135_v1  ;;  %v21_v4 = vld [vmem:[%s183_s2] sm:$0xff]  ;;  %v22_v6 = vld [vmem:[%s183_s2 + $0x8] sm:$0xff] }
   0x3   :  { %125 = vmatprep.subr.bf16.mxu0 %v138_v0  ;;  %25 = vperm.xlu0 %134, %v21_v4   ;;  %v137_v5 = vld [vmem:[%s184_s0] sm:$0xff]  }
   0x6   :  { %126 = vmatpush3.bf16.msra.mxu0 %v136_v3 }
   0x7   :  { %30 = vperm.xlu0 %134, %v22_v6  }
   0x9   :  { %128 = vmatmul.mubr.msk.bf16.vlgmr.msra.gmra.mrb[0].mxu0 %vm50_vm1, %v137_v5 }
  0x82   :  { %v26_v7 = vpop.permute.xlu0 %25 }
  0x86   :  { %v31_v11 = vpop.permute.xlu0 %30 }
  0xdc   :  { %v88_v8 = vpop.f32.mrb[0].mxu0 }
  0xdd   :  { %v89_v9 = vadd.f32 %v88_v8, %v26_v7  ;;  %v129_v10 = vpop.f32.mrb[1].mxu0 }
  0xde   :  { %v91_v12 = vpop.f32.mrb[2].mxu0 }
  0xdf   :  { %v95_v13 = vmax.f32 %v89_v9, 0.0  ;;  %v92_v14 = vadd.f32 %v91_v12, %v31_v11  ;;  %v130_v15 = vpop.f32.mrb[3].mxu0 }
  0xe1   :  { %v118_v16 = vpack.c.bf16 %v95_v13, %v95_v13  ;;  %v96_v17 = vmax.f32 %v92_v14, 0.0 }
  0xe3   :  { %106 = vst.msk [vmem:[%s185_s3] sm:$0xf] %vm105_vm2, %v118_v16  ;;  %v119_v18 = vpack.c.bf16 %v96_v17, %v96_v17 }
  0xe5   :  { %107 = vst.msk [vmem:[%s185_s3 + $0x4] sm:$0xf] %vm105_vm2, %v119_v18 }

// kernel: deeplab_forward.25
= control target key start
LH: loop header
LB: loop body
LE: loop exit
PB: predicated region body
PF: predicated region fallthrough
CT: control target
= control target key end

     0   :  { %v445_v0 = vmov 0.0   ;;  %vm446_vm0 = vmmov 0   ;;  %vm58_vm1 = vcmask 130048   ;;  %v447_v4 = vmov 0   ;;  %s560_s6 = inlined_call_operand.vmem [shape: bf16[16,8], index: 6, kind: input, shape index: {}]   ;;  %s561_s5 = inlined_call_operand.vmem [shape: bf16[16,8], index: 5, kind: input, shape index: {}]   ;;  %s562_s1 = inlined_call_operand.vmem [shape: bf16[16,16], index: 1, kind: input, shape index: {}]   ;;  %s563_s0 = inlined_call_operand.vmem [shape: bf16[16,16], index: 0, kind: input, shape index: {}]   ;;  %s564_s7 = inlined_call_operand.vmem [shape: bf16[16,8], index: 7, kind: input, shape index: {}]   ;;  %s565_s8 = inlined_call_operand.vmem [shape: bf16[16,8], index: 8, kind: input, shape index: {}]   ;;  %s566_s2 = inlined_call_operand.vmem [shape: bf16[16,16], index: 2, kind: input, shape index: {}]   ;;  %s567_s9 = inlined_call_operand.vmem [shape: bf16[16,8], index: 9, kind: input, shape index: {}]   ;;  %s568_s3 = inlined_call_operand.vmem [shape: bf16[16,16], index: 3, kind: input, shape index: {}]   ;;  %s569_s10 = inlined_call_operand.vmem [shape: f32[16,1], index: 10, kind: input, shape index: {}]   ;;  %s570_s4 = inlined_call_operand.vmem [shape: bf16[16,16], index: 4, kind: input, shape index: {}]   ;;  %s571_s11 = inlined_call_operand.vmem [shape: bf16[16,8], index: 11, kind: output, shape index: {}]  }
   0x1   :  { %401 = vmatprep.subr.bf16.mxu0 %v445_v0  ;;  %407 = vmatprep.subr.bf16.mxu1 %v445_v0  ;;  %v435_v1 = vld [vmem:[%s560_s6] sm:$0xff]   ;;  %v342_v12 = vld [vmem:[%s569_s10 + $0x8] sm:$0xff]  ;;  %vm365_vm2 = vcmask 60416  }
   0x2   :  { %v436_v2 = vld [vmem:[%s561_s5] sm:$0xff]   ;;  %403 = vmatprep.mubr.msk.bf16.mxu0 %vm446_vm0, %v445_v0  ;;  %409 = vmatprep.mubr.msk.bf16.mxu1 %vm446_vm0, %v445_v0 }
   0x3   :  { %402 = vmatpush3.bf16.msra.mxu0 %v435_v1  ;;  %v437_v3 = vld [vmem:[%s562_s1] sm:$0xff]   ;;  %434 = vset.pattern.permute.xlu0 %v447_v4 }
   0x4   :  { %408 = vmatpush3.bf16.msra.mxu1 %v436_v2  ;;  %v438_v5 = vld [vmem:[%s563_s0] sm:$0xff]   ;;  %413 = vmatprep.subr.bf16.mxu0 %v445_v0 }
   0x5   :  { %v439_v6 = vld [vmem:[%s564_s7] sm:$0xff]   ;;  %419 = vmatprep.subr.bf16.mxu1 %v445_v0 }
   0x6   :  { %404 = vmatmul.mubr.msk.bf16.vlgmr.msra.gmra.mrb[0].mxu0 %vm58_vm1, %v437_v3  ;;  %v440_v7 = vld [vmem:[%s565_s8] sm:$0xff]  }
   0x7   :  { %410 = vmatmul.mubr.msk.bf16.vlgmr.msra.gmra.mrb[0].mxu1 %vm58_vm1, %v438_v5  ;;  %414 = vmatpush3.bf16.msra.mxu0 %v439_v6  ;;  %v441_v8 = vld [vmem:[%s566_s2] sm:$0xff]  }
   0x8   :  { %415 = vmatprep.mubr.msk.bf16.mxu0 %vm446_vm0, %v445_v0  ;;  %420 = vmatpush3.bf16.msra.mxu1 %v440_v7  ;;  %v442_v9 = vld [vmem:[%s567_s9] sm:$0xff]  }
   0x9   :  { %425 = vmatprep.subr.bf16.mxu0 %v445_v0  ;;  %421 = vmatprep.mubr.msk.bf16.mxu1 %vm446_vm0, %v445_v0  ;;  %v443_v10 = vld [vmem:[%s568_s3] sm:$0xff]  }
   0xa   :  { %v341_v11 = vld [vmem:[%s569_s10] sm:$0xff] }
   0xb   :  { %345 = vperm.xlu0 %434, %v341_v11   ;;  %v444_v13 = vld [vmem:[%s570_s4] sm:$0xff]  }
   0xe   :  { %416 = vmatmul.mubr.msk.bf16.vlgmr.msra.gmra.mrb[4].mxu0 %vm58_vm1, %v441_v8 }
   0xf   :  { %426 = vmatpush3.bf16.msra.mxu0 %v442_v9  ;;  %422 = vmatmul.mubr.msk.bf16.vlgmr.msra.gmra.mrb[4].mxu1 %vm58_vm1, %v443_v10 }
  0x10   :  { %427 = vmatprep.mubr.msk.bf16.mxu0 %vm446_vm0, %v445_v0  ;;  %350 = vperm.xlu0 %434, %v342_v12  }
  0x16   :  { %428 = vmatmul.mubr.msk.bf16.vlgmr.msra.gmra.mrb[8].mxu0 %vm58_vm1, %v444_v13 }
  0x8a   :  { %v346_v36 = vpop.permute.xlu0 %345 }
  0x8f   :  { %v351_v44 = vpop.permute.xlu0 %350 }
  0xd9   :  { %v96_v14 = vpop.f32.mrb[0].mxu0 }
  0xda   :  { %v151_v15 = vpop.f32.mrb[0].mxu1  ;;  %v405_v16 = vpop.f32.mrb[1].mxu0 }
  0xdb   :  { %v152_v17 = vadd.f32 %v151_v15, %v96_v14  ;;  %v411_v18 = vpop.f32.mrb[1].mxu1  ;;  %v99_v19 = vpop.f32.mrb[2].mxu0 }
  0xdc   :  { %v154_v20 = vpop.f32.mrb[2].mxu1  ;;  %v406_v21 = vpop.f32.mrb[3].mxu0 }
  0xdd   :  { %v155_v22 = vadd.f32 %v154_v20, %v99_v19  ;;  %v412_v23 = vpop.f32.mrb[3].mxu1 }
  0xe1   :  { %v210_v24 = vpop.f32.mrb[4].mxu0 }
  0xe2   :  { %v217_v25 = vadd.f32 %v210_v24, %v152_v17  ;;  %v417_v26 = vpop.f32.mrb[5].mxu0  ;;  %v271_v27 = vpop.f32.mrb[4].mxu1 }
  0xe3   :  { %v213_v28 = vpop.f32.mrb[6].mxu0  ;;  %v423_v29 = vpop.f32.mrb[5].mxu1 }
  0xe4   :  { %v218_v30 = vadd.f32 %v213_v28, %v155_v22  ;;  %v278_v31 = vadd.f32 %v271_v27, %v217_v25  ;;  %v418_v32 = vpop.f32.mrb[7].mxu0  ;;  %v274_v33 = vpop.f32.mrb[6].mxu1 }
  0xe5   :  { %v424_v34 = vpop.f32.mrb[7].mxu1 }
  0xe6   :  { %v279_v35 = vadd.f32 %v274_v33, %v218_v30 }
  0xe9   :  { %v332_v37 = vpop.f32.mrb[8].mxu0 }
  0xea   :  { %v339_v38 = vadd.f32 %v332_v37, %v278_v31  ;;  %v429_v39 = vpop.f32.mrb[9].mxu0 }
  0xeb   :  { %v335_v40 = vpop.f32.mrb[10].mxu0 }
  0xec   :  { %v353_v41 = vadd.f32 %v346_v36, %v339_v38  ;;  %v340_v42 = vadd.f32 %v335_v40, %v279_v35  ;;  %v430_v43 = vpop.f32.mrb[11].mxu0 }
  0xee   :  { %v355_v45 = vmax.f32 %v353_v41, 0.0  ;;  %v354_v46 = vadd.f32 %v351_v44, %v340_v42 }
  0xf0   :  { %v389_v47 = vpack.c.bf16 %v355_v45, %v355_v45  ;;  %v356_v48 = vmax.f32 %v354_v46, 0.0 }
  0xf2   :  { %366 = vst.msk [vmem:[%s571_s11] sm:$0xf] %vm365_vm2, %v389_v47  ;;  %v390_v49 = vpack.c.bf16 %v356_v48, %v356_v48 }
  0xf4   :  { %367 = vst.msk [vmem:[%s571_s11 + $0x4] sm:$0xf] %vm365_vm2, %v390_v49 }

// kernel: deeplab_forward.20
= control target key start
LH: loop header
LB: loop body
LE: loop exit
PB: predicated region body
PF: predicated region fallthrough
CT: control target
= control target key end

     0   :  { %v138_v0 = vmov 0.0   ;;  %vm139_vm0 = vmmov 0   ;;  %v140_v2 = vmov 0   ;;  %vm50_vm1 = vcmask 261120   ;;  %s182_s1 = inlined_call_operand.vmem [shape: bf16[32,8], index: 1, kind: input, shape index: {}]   ;;  %s183_s2 = inlined_call_operand.vmem [shape: f32[16,1], index: 2, kind: input, shape index: {}]   ;;  %s184_s0 = inlined_call_operand.vmem [shape: bf16[16,32], index: 0, kind: input, shape index: {}]   ;;  %s185_s3 = inlined_call_operand.vmem [shape: bf16[16,8], index: 3, kind: output, shape index: {}]  }
   0x1   :  { %123 = vmatprep.subr.bf16.mxu0 %v138_v0  ;;  %v135_v1 = vld [vmem:[%s182_s1] sm:$0xff]   ;;  %127 = vmatprep.mubr.msk.bf16.mxu0 %vm139_vm0, %v138_v0  ;;  %v136_v3 = vld [vmem:[%s182_s1 + $0x8] sm:$0xff]   ;;  %vm105_vm2 = vcmask 60416  }
   0x2   :  { %134 = vset.pattern.permute.xlu0 %v140_v2  ;;  %124 = vmatpush3.bf16.msra.mxu0 %v135_v1  ;;  %v21_v4 = vld [vmem:[%s183_s2] sm:$0xff]  ;;  %v22_v6 = vld [vmem:[%s183_s2 + $0x8] sm:$0xff] }
   0x3   :  { %125 = vmatprep.subr.bf16.mxu0 %v138_v0  ;;  %25 = vperm.xlu0 %134, %v21_v4   ;;  %v137_v5 = vld [vmem:[%s184_s0] sm:$0xff]  }
   0x6   :  { %126 = vmatpush3.bf16.msra.mxu0 %v136_v3 }
   0x7   :  { %30 = vperm.xlu0 %134, %v22_v6  }
   0x9   :  { %128 = vmatmul.mubr.msk.bf16.vlgmr.msra.gmra.mrb[0].mxu0 %vm50_vm1, %v137_v5 }
  0x82   :  { %v26_v7 = vpop.permute.xlu0 %25 }
  0x86   :  { %v31_v11 = vpop.permute.xlu0 %30 }
  0xdc   :  { %v88_v8 = vpop.f32.mrb[0].mxu0 }
  0xdd   :  { %v89_v9 = vadd.f32 %v88_v8, %v26_v7  ;;  %v129_v10 = vpop.f32.mrb[1].mxu0 }
  0xde   :  { %v91_v12 = vpop.f32.mrb[2].mxu0 }
  0xdf   :  { %v95_v13 = vmax.f32 %v89_v9, 0.0  ;;  %v92_v14 = vadd.f32 %v91_v12, %v31_v11  ;;  %v130_v15 = vpop.f32.mrb[3].mxu0 }
  0xe1   :  { %v118_v16 = vpack.c.bf16 %v95_v13, %v95_v13  ;;  %v96_v17 = vmax.f32 %v92_v14, 0.0 }
  0xe3   :  { %106 = vst.msk [vmem:[%s185_s3] sm:$0xf] %vm105_vm2, %v118_v16  ;;  %v119_v18 = vpack.c.bf16 %v96_v17, %v96_v17 }
  0xe5   :  { %107 = vst.msk [vmem:[%s185_s3 + $0x4] sm:$0xf] %vm105_vm2, %v119_v18 }

// kernel: deeplab_forward.21
= control target key start
LH: loop header
LB: loop body
LE: loop exit
PB: predicated region body
PF: predicated region fallthrough
CT: control target
= control target key end

     0   :  { %v378_v1 = vmov 0.0   ;;  %vm379_vm0 = vmmov 0   ;;  %v380_v3 = vmov 0   ;;  %vm190_vm1 = vcmask 261120   ;;  %s476_s1 = inlined_call_operand.vmem [shape: bf16[288,8], index: 1, kind: input, shape index: {}]   ;;  %s477_s0 = inlined_call_operand.vmem [shape: bf16[16,288], index: 0, kind: input, shape index: {}]   ;;  %s478_s2 = inlined_call_operand.vmem [shape: f32[16,1], index: 2, kind: input, shape index: {}]   ;;  %s479_s3 = inlined_call_operand.vmem [shape: bf16[16,8], index: 3, kind: output, shape index: {}]  }
   0x1   :  { %v356_v0 = vld [vmem:[%s476_s1 + $0x40] sm:$0xff]   ;;  %344 = vmatprep.subr.bf16.mxu1 %v378_v1  ;;  %348 = vmatprep.mubr.msk.bf16.mxu1 %vm379_vm0, %v378_v1  ;;  %v358_v4 = vld [vmem:[%s476_s1 + $0x48] sm:$0xff]   ;;  %v360_v6 = vld [vmem:[%s476_s1 + $0x50] sm:$0xff]   ;;  %vm286_vm2 = vcmask 60416  }
   0x2   :  { %v357_v2 = vld [vmem:[%s476_s1] sm:$0xff]   ;;  %355 = vset.pattern.permute.xlu0 %v380_v3  ;;  %319 = vmatprep.subr.bf16.mxu0 %v356_v0  ;;  %v359_v5 = vld [vmem:[%s476_s1 + $0x8] sm:$0xff]   ;;  %v361_v7 = vld [vmem:[%s476_s1 + $0x10] sm:$0xff]  }
   0x3   :  { %320 = vmatpush3.bf16.msra.mxu0 %v357_v2  ;;  %v362_v8 = vld [vmem:[%s476_s1 + $0x58] sm:$0xff]   ;;  %v364_v10 = vld [vmem:[%s476_s1 + $0x60] sm:$0xff]   ;;  %v366_v13 = vld [vmem:[%s476_s1 + $0x68] sm:$0xff]  }
   0x4   :  { %321 = vmatprep.subr.bf16.mxu0 %v358_v4  ;;  %v363_v9 = vld [vmem:[%s476_s1 + $0x18] sm:$0xff]   ;;  %v370_v11 = vld [vmem:[%s476_s1 + $0x80] sm:$0xff]   ;;  %v367_v14 = vld [vmem:[%s476_s1 + $0x28] sm:$0xff]  }
   0x5   :  { %v365_v12 = vld [vmem:[%s476_s1 + $0x20] sm:$0xff]   ;;  %345 = vmatpush3.bf16.msra.mxu1 %v370_v11  ;;  %v376_v16 = vld [vmem:[%s476_s1 + $0x88] sm:$0xff]   ;;  %v368_v17 = vld [vmem:[%s476_s1 + $0x70] sm:$0xff]  }
   0x6   :  { %346 = vmatprep.subr.bf16.mxu1 %v378_v1  ;;  %v375_v15 = vld [vmem:[%s477_s0 + $0x4] ss:$12 sps:$4 sm:$0xff]   ;;  %v377_v18 = vld [vmem:[%s477_s0 + $0x8] ss:$12 sps:$4 sm:$0xff]   ;;  %v371_v22 = vld [vmem:[%s476_s1 + $0x78] sm:$0xff]  }
   0x7   :  { %322 = vmatpush3.bf16.msra.mxu0 %v359_v5  ;;  %226 = vmatprep.mubr.bf16.mxu0 %v375_v15  ;;  %v55_v19 = vld [vmem:[%s478_s2] sm:$0xff]  ;;  %v56_v20 = vld [vmem:[%s478_s2 + $0x8] sm:$0xff]  ;;  %v369_v21 = vld [vmem:[%s476_s1 + $0x30] sm:$0xff]  }
   0x8   :  { %323 = vmatprep.subr.bf16.mxu0 %v360_v6  ;;  %59 = vperm.xlu0 %355, %v55_v19   ;;  %v372_v23 = vld [vmem:[%s476_s1 + $0x38] sm:$0xff]   ;;  %v373_v24 = vld [vmem:[%s477_s0] ss:$12 sps:$4 sm:$0xff]  }
   0x9   :  { %347 = vmatpush3.bf16.msra.mxu1 %v376_v16 }
   0xb   :  { %324 = vmatpush3.bf16.msra.mxu0 %v361_v7 }
   0xc   :  { %325 = vmatprep.subr.bf16.mxu0 %v362_v8  ;;  %349 = vmatmul.mubr.msk.bf16.vlgmr.msra.gmra.mrb[0].mxu1 %vm190_vm1, %v377_v18 }
   0xd   :  { %64 = vperm.xlu0 %355, %v56_v20  }
   0xf   :  { %326 = vmatpush3.bf16.msra.mxu0 %v363_v9 }
  0x10   :  { %327 = vmatprep.subr.bf16.mxu0 %v364_v10 }
  0x13   :  { %328 = vmatpush3.bf16.msra.mxu0 %v365_v12 }
  0x14   :  { %329 = vmatprep.subr.bf16.mxu0 %v366_v13 }
  0x17   :  { %330 = vmatpush3.bf16.msra.mxu0 %v367_v14 }
  0x18   :  { %331 = vmatprep.subr.bf16.mxu0 %v368_v17 }
  0x1b   :  { %332 = vmatpush3.bf16.msra.mxu0 %v369_v21 }
  0x1c   :  { %333 = vmatprep.subr.bf16.mxu0 %v371_v22 }
  0x1f   :  { %334 = vmatpush3.bf16.msra.mxu0 %v372_v23 }
  0x22   :  { %227 = vmatmul.mubr.bf16.vlgmr.msra.gmra.mrb[0].mxu0 %v373_v24 }
  0x87   :  { %v60_v29 = vpop.permute.xlu0 %59 }
  0x8c   :  { %v65_v37 = vpop.permute.xlu0 %64 }
  0xdf   :  { %v269_v25 = vpop.f32.mrb[0].mxu1 }
  0xe0   :  { %v350_v26 = vpop.f32.mrb[1].mxu1 }
  0xe1   :  { %v272_v27 = vpop.f32.mrb[2].mxu1 }
  0xe2   :  { %v351_v28 = vpop.f32.mrb[3].mxu1 }
  0xf5   :  { %v335_v30 = vpop.f32.mrb[0].mxu0 }
  0xf6   :  { %v336_v31 = vpop.f32.mrb[1].mxu0 }
  0xf7   :  { %v337_v32 = vadd.f32 %v336_v31, %v335_v30  ;;  %v338_v33 = vpop.f32.mrb[2].mxu0 }
  0xf8   :  { %v339_v34 = vpop.f32.mrb[3].mxu0 }
  0xf9   :  { %v229_v35 = vadd.f32 %v337_v32, %v60_v29  ;;  %v340_v36 = vadd.f32 %v339_v34, %v338_v33 }
  0xfb   :  { %v270_v38 = vadd.f32 %v269_v25, %v229_v35  ;;  %v232_v39 = vadd.f32 %v340_v36, %v65_v37 }
  0xfd   :  { %v276_v40 = vmax.f32 %v270_v38, 0.0  ;;  %v273_v41 = vadd.f32 %v272_v27, %v232_v39 }
  0xff   :  { %v317_v42 = vpack.c.bf16 %v276_v40, %v276_v40  ;;  %v277_v43 = vmax.f32 %v273_v41, 0.0 }
 0x101   :  { %287 = vst.msk [vmem:[%s479_s3] sm:$0xf] %vm286_vm2, %v317_v42  ;;  %v318_v44 = vpack.c.bf16 %v277_v43, %v277_v43 }
 0x103   :  { %288 = vst.msk [vmem:[%s479_s3 + $0x4] sm:$0xf] %vm286_vm2, %v318_v44 }

// kernel: deeplab_forward.27
= control target key start
LH: loop header
LB: loop body
LE: loop exit
PB: predicated region body
PF: predicated region fallthrough
CT: control target
= control target key end

     0   :  { %s1713_s12 = smov 0   ;;  %s1869_s0 = inlined_call_operand.vmem [shape: bf16[32,2,2], index: 0, kind: input, shape index: {}]   ;;  %s1870_s1 = inlined_call_operand.vmem [shape: f32[8,2], index: 1, kind: input, shape index: {}]   ;;  %s1871_s2 = inlined_call_operand.vmem [shape: f32[2,8], index: 2, kind: input, shape index: {}]   ;;  %s1872_s3 = inlined_call_operand.vmem [shape: bf16[32,8,8], index: 3, kind: output, shape index: {}]  }
   0x1 LB: > { %s1505_s13 = sadd.s32 4294967295, %s1689_s12   ;;  %p1509_p0 = scmp.ge.s32.totalorder %s1689_s12, 1  ;;  %s1689_s12 = sphi %s1713_s12, %s13_s12  }
   0x2   : > { %p137_p1 = scmp.lt.s32.totalorder %s1689_s12, 5 }
   0x4   : > { %p138_p2 = pnand %p1509_p0, %p137_p1 }
   0x5   : > { %s1510_s14 = sshll.u32 (!%p138_p2), %s1505_s13, 3  ;;  %v1691_v0 = vmov (!%p138_p2), 0.0   ;;  %vm1692_vm0 = vmmov (!%p138_p2), 0   ;;  %vm178_vm1 = vcmask (!%p138_p2), 1041408   ;;  %v171_v4 = vld [vmem:[%s1870_s1] sm:$0xff] (!%p138_p2)  ;;  %vm174_vm2 = vcmask (!%p138_p2), 15360  }
   0x6   : > { %141 = sbr.rel (%p138_p2) target bundleno = 474 (0x1da), region = 32  ;;  %1593 = vmatprep.subr.mxu0 (!%p138_p2), %v1691_v0  ;;  %p161_p3 = scmp.lt.s32.totalorder (!%p138_p2), %s1510_s14, 31  ;;  %1595 = vmatprep.mubr.msk.f32.mxu0 (!%p138_p2), %vm1692_vm0, %v1691_v0  ;;  %v252_v18 = vld [vmem:[%s1871_s2] sm:$0x3] (!%p138_p2)  ;;  %vm330_vm3 = vcmask (!%p138_p2), 60416  }
   0x7   : > { %1598 = vmatprep.subr.mxu1 (!%p138_p2), %v1691_v0  ;;  %1600 = vmatprep.mubr.msk.f32.mxu1 (!%p138_p2), %vm1692_vm0, %v1691_v0  ;;  %v412_v19 = vld [vmem:[%s1871_s2] sm:$0x3] (!%p138_p2) }
   0x8   : > { %1599 = vmatpush3.msk.msra.mxu1 (!%p138_p2), %vm178_vm1, %v252_v18  ;;  %v572_v22 = vld [vmem:[%s1871_s2] sm:$0x3] (!%p138_p2) }
   0x9   : > { %1608 = vmatprep.subr.mxu1 (!%p138_p2), %v1691_v0  ;;  %v732_v25 = vld [vmem:[%s1871_s2] sm:$0x3] (!%p138_p2) }
   0xa   : > { %v892_v28 = vld [vmem:[%s1871_s2] sm:$0x3] (!%p138_p2) }
   0xb   : > { %v1052_v31 = vld [vmem:[%s1871_s2] sm:$0x3] (!%p138_p2) }
   0xc   : > { %v1212_v34 = vld [vmem:[%s1871_s2] sm:$0x3] (!%p138_p2) }
   0xd   : > { %s1874_s14 = smov (!%p161_p3, %s1510_s14), 31  ;;  %v1372_v37 = vld [vmem:[%s1871_s2] sm:$0x3] }
   0xe   : > { %s1733_s17 = scalar_lea.vmem %s1869_s0, %s1874_s14  ;;  %s1512_s9 = sshll.u32 %s1874_s14, 2 }
   0xf   : > { %v172_v1 = vld [vmem:[%s1733_s17] sm:$0x1]  ;;  %v1517_v2 = vld [vmem:[%s1733_s17 + $0x1] sm:$0x1]  ;;  %v1523_v6 = vld [vmem:[%s1733_s17 + $0x2] sm:$0x1]  ;;  %s1848_s13 = scalar_lea.vmem %s1872_s3, %s1512_s9 }
  0x10   : > { %v173_v3 = vunpack.c.l.bf16 %v172_v1  ;;  %v335_v5 = vunpack.c.l.bf16 %v1517_v2  ;;  %v495_v7 = vunpack.c.l.bf16 %v1523_v6  ;;  %v1529_v8 = vld [vmem:[%s1733_s17 + $0x3] sm:$0x1]  ;;  %v1535_v10 = vld [vmem:[%s1733_s17 + $0x4] sm:$0x1]  ;;  %v1541_v12 = vld [vmem:[%s1733_s17 + $0x5] sm:$0x1] }
  0x11   : > { %v655_v9 = vunpack.c.l.bf16 %v1529_v8  ;;  %v815_v11 = vunpack.c.l.bf16 %v1535_v10  ;;  %v975_v13 = vunpack.c.l.bf16 %v1541_v12  ;;  %v1547_v14 = vld [vmem:[%s1733_s17 + $0x6] sm:$0x1]  ;;  %v1553_v16 = vld [vmem:[%s1733_s17 + $0x7] sm:$0x1] }
  0x12   : > { %1594 = vmatpush3.msk.msra.mxu0 %vm178_vm1, %v173_v3  ;;  %v1135_v15 = vunpack.c.l.bf16 %v1547_v14  ;;  %v1295_v17 = vunpack.c.l.bf16 %v1553_v16 }
  0x13   : > { %1596 = vmatmul.mubr.msk.f32.vlgmr.msra.gmra.mrb[0].mxu0 %vm174_vm2, %v171_v4  ;;  %1603 = vmatprep.subr.mxu0 %v1691_v0 }
  0x14   : > { %1604 = vmatpush3.msk.msra.mxu0 %vm178_vm1, %v335_v5  ;;  %1605 = vmatprep.mubr.msk.f32.mxu0 %vm1692_vm0, %v1691_v0 }
  0x15   : > { %1613 = vmatprep.subr.mxu0 %v1691_v0 }
  0x17   : > { %1606 = vmatmul.mubr.msk.f32.vlgmr.msra.gmra.mrb[2].mxu0 %vm174_vm2, %v171_v4 }
  0x18   : > { %1614 = vmatpush3.msk.msra.mxu0 %vm178_vm1, %v495_v7  ;;  %1615 = vmatprep.mubr.msk.f32.mxu0 %vm1692_vm0, %v1691_v0 }
  0x19   : > { %1623 = vmatprep.subr.mxu0 %v1691_v0 }
  0x1b   : > { %1616 = vmatmul.mubr.msk.f32.vlgmr.msra.gmra.mrb[4].mxu0 %vm174_vm2, %v171_v4 }
  0x1c   : > { %1624 = vmatpush3.msk.msra.mxu0 %vm178_vm1, %v655_v9  ;;  %1625 = vmatprep.mubr.msk.f32.mxu0 %vm1692_vm0, %v1691_v0 }
  0x1d   : > { %1633 = vmatprep.subr.mxu0 %v1691_v0 }
  0x1f   : > { %1626 = vmatmul.mubr.msk.f32.vlgmr.msra.gmra.mrb[6].mxu0 %vm174_vm2, %v171_v4 }
  0x20   : > { %1634 = vmatpush3.msk.msra.mxu0 %vm178_vm1, %v815_v11  ;;  %1635 = vmatprep.mubr.msk.f32.mxu0 %vm1692_vm0, %v1691_v0 }
  0x21   : > { %1643 = vmatprep.subr.mxu0 %v1691_v0 }
  0x23   : > { %1636 = vmatmul.mubr.msk.f32.vlgmr.msra.gmra.mrb[8].mxu0 %vm174_vm2, %v171_v4 }
  0x24   : > { %1644 = vmatpush3.msk.msra.mxu0 %vm178_vm1, %v975_v13  ;;  %1645 = vmatprep.mubr.msk.f32.mxu0 %vm1692_vm0, %v1691_v0 }
  0x25   : > { %1653 = vmatprep.subr.mxu0 %v1691_v0 }
  0x27   : > { %1646 = vmatmul.mubr.msk.f32.vlgmr.msra.gmra.mrb[10].mxu0 %vm174_vm2, %v171_v4 }
  0x28   : > { %1654 = vmatpush3.msk.msra.mxu0 %vm178_vm1, %v1135_v15  ;;  %1655 = vmatprep.mubr.msk.f32.mxu0 %vm1692_vm0, %v1691_v0 }
  0x29   : > { %1663 = vmatprep.subr.mxu0 %v1691_v0 }
  0x2b   : > { %1656 = vmatmul.mubr.msk.f32.vlgmr.msra.gmra.mrb[12].mxu0 %vm174_vm2, %v171_v4 }
  0x2c   : > { %1664 = vmatpush3.msk.msra.mxu0 %vm178_vm1, %v1295_v17  ;;  %1665 = vmatprep.mubr.msk.f32.mxu0 %vm1692_vm0, %v1691_v0 }
  0x2f   : > { %1666 = vmatmul.mubr.msk.f32.vlgmr.msra.gmra.mrb[14].mxu0 %vm174_vm2, %v171_v4 }
  0xe6   : > { %v248_v20 = vpop.f32.mrb[0].mxu0 }
  0xe7   : > { %v1597_v21 = vpop.f32.mrb[1].mxu0  ;;  %1601 = vmatmul.mubr.msk.f32.vlgmr.msra.gmra.mrb[0].mxu1 %vm174_vm2, %v248_v20 }
  0xe8   : > { %1609 = vmatpush3.msk.msra.mxu1 %vm178_vm1, %v412_v19  ;;  %1610 = vmatprep.mubr.msk.f32.mxu1 %vm1692_vm0, %v1691_v0 }
  0xe9   : > { %1618 = vmatprep.subr.mxu1 %v1691_v0 }
  0xea   : > { %v408_v23 = vpop.f32.mrb[2].mxu0 }
  0xeb   : > { %v1607_v24 = vpop.f32.mrb[3].mxu0  ;;  %1611 = vmatmul.mubr.msk.f32.vlgmr.msra.gmra.mrb[2].mxu1 %vm174_vm2, %v408_v23 }
  0xec   : > { %1619 = vmatpush3.msk.msra.mxu1 %vm178_vm1, %v572_v22  ;;  %1620 = vmatprep.mubr.msk.f32.mxu1 %vm1692_vm0, %v1691_v0 }
  0xed   : > { %1628 = vmatprep.subr.mxu1 %v1691_v0 }
  0xee   : > { %v568_v26 = vpop.f32.mrb[4].mxu0 }
  0xef   : > { %v1617_v27 = vpop.f32.mrb[5].mxu0  ;;  %1621 = vmatmul.mubr.msk.f32.vlgmr.msra.gmra.mrb[4].mxu1 %vm174_vm2, %v568_v26 }
  0xf0   : > { %1629 = vmatpush3.msk.msra.mxu1 %vm178_vm1, %v732_v25  ;;  %1630 = vmatprep.mubr.msk.f32.mxu1 %vm1692_vm0, %v1691_v0 }
  0xf1   : > { %1638 = vmatprep.subr.mxu1 %v1691_v0 }
  0xf2   : > { %v728_v29 = vpop.f32.mrb[6].mxu0 }
  0xf3   : > { %v1627_v30 = vpop.f32.mrb[7].mxu0  ;;  %1631 = vmatmul.mubr.msk.f32.vlgmr.msra.gmra.mrb[6].mxu1 %vm174_vm2, %v728_v29 }
  0xf4   : > { %1639 = vmatpush3.msk.msra.mxu1 %vm178_vm1, %v892_v28  ;;  %1640 = vmatprep.mubr.msk.f32.mxu1 %vm1692_vm0, %v1691_v0 }
  0xf5   : > { %1648 = vmatprep.subr.mxu1 %v1691_v0 }
  0xf6   : > { %v888_v32 = vpop.f32.mrb[8].mxu0 }
  0xf7   : > { %v1637_v33 = vpop.f32.mrb[9].mxu0  ;;  %1641 = vmatmul.mubr.msk.f32.vlgmr.msra.gmra.mrb[8].mxu1 %vm174_vm2, %v888_v32 }
  0xf8   : > { %1649 = vmatpush3.msk.msra.mxu1 %vm178_vm1, %v1052_v31  ;;  %1650 = vmatprep.mubr.msk.f32.mxu1 %vm1692_vm0, %v1691_v0 }
  0xf9   : > { %1658 = vmatprep.subr.mxu1 %v1691_v0 }
  0xfa   : > { %v1048_v35 = vpop.f32.mrb[10].mxu0 }
  0xfb   : > { %v1647_v36 = vpop.f32.mrb[11].mxu0  ;;  %1651 = vmatmul.mubr.msk.f32.vlgmr.msra.gmra.mrb[10].mxu1 %vm174_vm2, %v1048_v35 }
  0xfc   : > { %1659 = vmatpush3.msk.msra.mxu1 %vm178_vm1, %v1212_v34  ;;  %1660 = vmatprep.mubr.msk.f32.mxu1 %vm1692_vm0, %v1691_v0 }
  0xfd   : > { %1668 = vmatprep.subr.mxu1 %v1691_v0 }
  0xfe   : > { %v1208_v38 = vpop.f32.mrb[12].mxu0 }
  0xff   : > { %v1657_v39 = vpop.f32.mrb[13].mxu0  ;;  %1661 = vmatmul.mubr.msk.f32.vlgmr.msra.gmra.mrb[12].mxu1 %vm174_vm2, %v1208_v38 }
 0x100   : > { %1669 = vmatpush3.msk.msra.mxu1 %vm178_vm1, %v1372_v37  ;;  %1670 = vmatprep.mubr.msk.f32.mxu1 %vm1692_vm0, %v1691_v0 }
 0x102   : > { %v1368_v40 = vpop.f32.mrb[14].mxu0 }
 0x103   : > { %v1667_v41 = vpop.f32.mrb[15].mxu0  ;;  %1671 = vmatmul.mubr.msk.f32.vlgmr.msra.gmra.mrb[14].mxu1 %vm174_vm2, %v1368_v40 }
 0x1ba   : > { %v325_v42 = vpop.f32.mrb[0].mxu1 }
 0x1bb   : > { %v329_v43 = vpack.c.bf16 %v325_v42, %v325_v42  ;;  %v1602_v44 = vpop.f32.mrb[1].mxu1 }
 0x1bd   : > { %331 = vst.msk [vmem:[%s1848_s13] sm:$0xf] %vm330_vm3, %v329_v43 }
 0x1be   : > { %v485_v45 = vpop.f32.mrb[2].mxu1 }
 0x1bf   : > { %v489_v46 = vpack.c.bf16 %v485_v45, %v485_v45  ;;  %v1612_v47 = vpop.f32.mrb[3].mxu1 }
 0x1c1   : > { %1522 = vst.msk [vmem:[%s1848_s13 + $0x4] sm:$0xf] %vm330_vm3, %v489_v46 }
 0x1c2   : > { %v645_v48 = vpop.f32.mrb[4].mxu1 }
 0x1c3   : > { %v649_v49 = vpack.c.bf16 %v645_v48, %v645_v48  ;;  %v1622_v50 = vpop.f32.mrb[5].mxu1 }
 0x1c5   : > { %1528 = vst.msk [vmem:[%s1848_s13 + $0x8] sm:$0xf] %vm330_vm3, %v649_v49 }
 0x1c6   : > { %v805_v51 = vpop.f32.mrb[6].mxu1 }
 0x1c7   : > { %v809_v52 = vpack.c.bf16 %v805_v51, %v805_v51  ;;  %v1632_v53 = vpop.f32.mrb[7].mxu1 }
 0x1c9   : > { %1534 = vst.msk [vmem:[%s1848_s13 + $0xc] sm:$0xf] %vm330_vm3, %v809_v52 }
 0x1ca   : > { %v965_v54 = vpop.f32.mrb[8].mxu1 }
 0x1cb   : > { %v969_v55 = vpack.c.bf16 %v965_v54, %v965_v54  ;;  %v1642_v56 = vpop.f32.mrb[9].mxu1 }
 0x1cd   : > { %1540 = vst.msk [vmem:[%s1848_s13 + $0x10] sm:$0xf] %vm330_vm3, %v969_v55 }
 0x1ce   : > { %v1125_v57 = vpop.f32.mrb[10].mxu1 }
 0x1cf   : > { %v1129_v58 = vpack.c.bf16 %v1125_v57, %v1125_v57  ;;  %v1652_v59 = vpop.f32.mrb[11].mxu1 }
 0x1d1   : > { %1546 = vst.msk [vmem:[%s1848_s13 + $0x14] sm:$0xf] %vm330_vm3, %v1129_v58 }
 0x1d2   : > { %v1285_v60 = vpop.f32.mrb[12].mxu1 }
 0x1d3   : > { %v1289_v61 = vpack.c.bf16 %v1285_v60, %v1285_v60  ;;  %v1662_v62 = vpop.f32.mrb[13].mxu1 }
 0x1d5   : > { %1552 = vst.msk [vmem:[%s1848_s13 + $0x18] sm:$0xf] %vm330_vm3, %v1289_v61 }
 0x1d6   : > { %v1445_v63 = vpop.f32.mrb[14].mxu1 }
 0x1d7   : > { %v1449_v0 = vpack.c.bf16 %v1445_v63, %v1445_v63  ;;  %v1672_v1 = vpop.f32.mrb[15].mxu1 }
 0x1d9   : > { %1558 = vst.msk [vmem:[%s1848_s13 + $0x1c] sm:$0xf] %vm330_vm3, %v1449_v0 }
 0x1da PF: > { %s13_s12 = sadd.s32 1, %s1689_s12  }
 0x1db   : > { %p10_p4 = scmp.ge.s32.totalorder %s13_s12, 6  }
 0x1dd   :  { %12 = sbr.rel (!%p10_p4) target bundleno = 1 (0x1), region = 76 }

// kernel: deeplab_forward.30
= control target key start
LH: loop header
LB: loop body
LE: loop exit
PB: predicated region body
PF: predicated region fallthrough
CT: control target
= control target key end

     0   :  { %v110_v0 = vmov 0.0   ;;  %vm111_vm0 = vmmov 0   ;;  %v112_v3 = vmov 0   ;;  %vm42_vm1 = vcmask 130048   ;;  %s151_s1 = inlined_call_operand.vmem [shape: bf16[16,128], index: 1, kind: input, shape index: {}]   ;;  %s152_s0 = inlined_call_operand.vmem [shape: bf16[16,16], index: 0, kind: input, shape index: {}]   ;;  %s153_s2 = inlined_call_operand.vmem [shape: f32[16,1], index: 2, kind: input, shape index: {}]   ;;  %s154_s3 = inlined_call_operand.vmem [shape: f32[16,128], index: 3, kind: output, shape index: {}]  }
   0x1   :  { %98 = vmatprep.subr.bf16.mxu0 %v110_v0  ;;  %v108_v1 = vld [vmem:[%s151_s1] sm:$0xff]   ;;  %100 = vmatprep.mubr.msk.bf16.mxu0 %vm111_vm0, %v110_v0  ;;  %v20_v5 = vld [vmem:[%s153_s2 + $0x8] sm:$0xff] }
   0x2   :  { %v109_v2 = vld [vmem:[%s152_s0] sm:$0xff]   ;;  %107 = vset.pattern.permute.xlu0 %v112_v3  ;;  %99 = vmatpush3.bf16.msra.mxu0 %v108_v1 }
   0x3   :  { %v19_v4 = vld [vmem:[%s153_s2] sm:$0xff] }
   0x4   :  { %23 = vperm.xlu0 %107, %v19_v4  }
   0x5   :  { %101 = vmatmul.mubr.msk.bf16.vlgmr.msra.gmra.mrb[0].mxu0 %vm42_vm1, %v109_v2 }
   0x8   :  { %28 = vperm.xlu0 %107, %v20_v5  }
  0x83   :  { %v24_v6 = vpop.permute.xlu0 %23 }
  0x87   :  { %v29_v10 = vpop.permute.xlu0 %28 }
  0xd8   :  { %v80_v7 = vpop.f32.mrb[0].mxu0 }
  0xd9   :  { %v81_v8 = vadd.f32 %v80_v7, %v24_v6  ;;  %v102_v9 = vpop.f32.mrb[1].mxu0 }
  0xda   :  { %v83_v11 = vpop.f32.mrb[2].mxu0 }
  0xdb   :  { %87 = vst [vmem:[%s154_s3] sm:$0xff] %v81_v8  ;;  %v84_v12 = vadd.f32 %v83_v11, %v29_v10  ;;  %v103_v13 = vpop.f32.mrb[3].mxu0 }
  0xdd   :  { %88 = vst [vmem:[%s154_s3 + $0x8] sm:$0xff] %v84_v12 }

// kernel: deeplab_forward.28
= control target key start
LH: loop header
LB: loop body
LE: loop exit
PB: predicated region body
PF: predicated region fallthrough
CT: control target
= control target key end

     0   :  { %v341_v0 = vmov 0   ;;  %v342_v2 = vmov 0.0   ;;  %vm343_vm0 = vmmov 0   ;;  %vm196_vm1 = vcmask 130048   ;;  %s434_s2 = inlined_call_operand.vmem [shape: bf16[144,128], index: 2, kind: input, shape index: {}]   ;;  %s435_s3 = inlined_call_operand.vmem [shape: bf16[72,128], index: 3, kind: input, shape index: {}]   ;;  %s436_s1 = inlined_call_operand.vmem [shape: bf16[16,72], index: 1, kind: input, shape index: {}]   ;;  %s437_s0 = inlined_call_operand.vmem [shape: bf16[16,144], index: 0, kind: input, shape index: {}]   ;;  %s438_s4 = inlined_call_operand.vmem [shape: f32[16,1], index: 4, kind: input, shape index: {}]   ;;  %s439_s5 = inlined_call_operand.vmem [shape: bf16[16,128], index: 5, kind: output, shape index: {}]  }
   0x1   :  { %200 = vmatprep.subr.bf16.mxu1 %v341_v0  ;;  %v323_v1 = vld [vmem:[%s434_s2] sm:$0xff]   ;;  %305 = vmatprep.subr.bf16.mxu0 %v342_v2  ;;  %v324_v3 = vld [vmem:[%s434_s2 + $0x8] sm:$0xff]   ;;  %v325_v5 = vld [vmem:[%s434_s2 + $0x10] sm:$0xff]   ;;  %vm88_vm2 = vcmask 1043456   ;;  %vm84_vm3 = vcmask 588800  }
   0x2   :  { %315 = vmatprep.mubr.msk.bf16.mxu0 %vm343_vm0, %v342_v2  ;;  %322 = vset.pattern.permute.xlu0 %v341_v0  ;;  %v327_v4 = vld [vmem:[%s435_s3] sm:$0xff]   ;;  %v329_v6 = vld [vmem:[%s435_s3 + $0x8] sm:$0xff]   ;;  %v326_v7 = vld [vmem:[%s434_s2 + $0x18] sm:$0xff]  }
   0x3   :  { %201 = vmatpush1.bf16.msra.mxu1 %v323_v1  ;;  %306 = vmatpush3.bf16.msra.mxu0 %v327_v4  ;;  %v331_v8 = vld [vmem:[%s435_s3 + $0x10] sm:$0xff]   ;;  %v328_v9 = vld [vmem:[%s434_s2 + $0x20] sm:$0xff]   ;;  %v333_v10 = vld [vmem:[%s435_s3 + $0x18] sm:$0xff]  }
   0x4   :  { %202 = vmatprep.subr.bf16.mxu1 %v341_v0  ;;  %307 = vmatprep.subr.bf16.mxu0 %v342_v2  ;;  %v335_v11 = vld [vmem:[%s435_s3 + $0x20] ss:$0 sps:$4 sm:$0xff]   ;;  %v340_v12 = vld [vmem:[%s437_s0 + $0x4] ss:$8 sps:$4 sm:$0xff]   ;;  %v332_v18 = vld [vmem:[%s434_s2 + $0x30] sm:$0xff]  }
   0x5   :  { %v241_v13 = vld [vmem:[%s438_s4] sm:$0xff]  ;;  %289 = vmatprep.mubr.msk.bf16.mxu1 %vm196_vm1, %v340_v12  ;;  %v330_v14 = vld [vmem:[%s434_s2 + $0x28] sm:$0xff]   ;;  %v90_v16 = vsel %vm88_vm2, %v335_v11, 0  ;;  %v334_v19 = vld [vmem:[%s434_s2 + $0x38] sm:$0xff]  }
   0x6   :  { %245 = vperm.xlu0 %322, %v241_v13   ;;  %v242_v15 = vld [vmem:[%s438_s4 + $0x8] sm:$0xff]  ;;  %v336_v17 = vld [vmem:[%s436_s1] sm:$0xff]  }
   0x7   :  { %203 = vmatpush1.bf16.msra.mxu1 %v324_v3  ;;  %308 = vmatpush3.bf16.msra.mxu0 %v329_v6  ;;  %v337_v20 = vld [vmem:[%s434_s2 + $0x40] sm:$0xff]  }
   0x8   :  { %204 = vmatprep.subr.bf16.mxu1 %v341_v0  ;;  %309 = vmatprep.subr.bf16.mxu0 %v342_v2  ;;  %v338_v21 = vld [vmem:[%s437_s0] ss:$8 sps:$4 sm:$0xff]  }
   0xa   :  { %250 = vperm.xlu0 %322, %v242_v15  }
   0xb   :  { %205 = vmatpush1.bf16.msra.mxu1 %v325_v5  ;;  %310 = vmatpush3.bf16.msra.mxu0 %v331_v8 }
   0xc   :  { %206 = vmatprep.subr.bf16.mxu1 %v341_v0  ;;  %311 = vmatprep.subr.bf16.mxu0 %v342_v2 }
   0xf   :  { %207 = vmatpush1.bf16.msra.mxu1 %v326_v7  ;;  %312 = vmatpush3.bf16.msra.mxu0 %v333_v10 }
  0x10   :  { %208 = vmatprep.subr.bf16.mxu1 %v341_v0  ;;  %313 = vmatprep.subr.bf16.mxu0 %v342_v2 }
  0x13   :  { %209 = vmatpush1.bf16.msra.mxu1 %v328_v9  ;;  %314 = vmatpush3.bf16.msra.mxu0 %v90_v16 }
  0x14   :  { %210 = vmatprep.subr.bf16.mxu1 %v341_v0 }
  0x16   :  { %316 = vmatmul.mubr.msk.bf16.vlgmr.msra.gmra.mrb[0].mxu0 %vm84_vm3, %v336_v17 }
  0x17   :  { %211 = vmatpush1.bf16.msra.mxu1 %v330_v14 }
  0x18   :  { %212 = vmatprep.subr.bf16.mxu1 %v341_v0 }
  0x1b   :  { %213 = vmatpush1.bf16.msra.mxu1 %v332_v18 }
  0x1c   :  { %214 = vmatprep.subr.bf16.mxu1 %v341_v0 }
  0x1f   :  { %215 = vmatpush1.bf16.msra.mxu1 %v334_v19 }
  0x20   :  { %216 = vmatprep.subr.bf16.mxu1 %v341_v0 }
  0x23   :  { %217 = vmatpush1.bf16.msra.mxu1 %v337_v20 }
  0x26   :  { %233 = vmatmul.mubr.bf16.vlgmr.msra.gmra.mrb[0].mxu1 %v338_v21 }
  0x85   :  { %v246_v26 = vpop.permute.xlu0 %245 }
  0x89   :  { %v251_v34 = vpop.permute.xlu0 %250 }
  0xe9   :  { %v126_v22 = vpop.f32.mrb[0].mxu0 }
  0xea   :  { %v317_v23 = vpop.f32.mrb[1].mxu0 }
  0xeb   :  { %v129_v24 = vpop.f32.mrb[2].mxu0 }
  0xec   :  { %v318_v25 = vpop.f32.mrb[3].mxu0 }
  0xf9   :  { %v234_v27 = vpop.f32.mrb[0].mxu1 }
  0xfa   :  { %v235_v28 = vadd.f32 %v234_v27, %v126_v22  ;;  %v236_v29 = vpop.f32.mrb[1].mxu1 }
  0xfb   :  { %v237_v30 = vpop.f32.mrb[2].mxu1 }
  0xfc   :  { %v253_v31 = vadd.f32 %v246_v26, %v235_v28  ;;  %v238_v32 = vadd.f32 %v237_v30, %v129_v24  ;;  %v239_v33 = vpop.f32.mrb[3].mxu1 }
  0xfe   :  { %v254_v35 = vadd.f32 %v251_v34, %v238_v32  ;;  %v255_v36 = vmax.f32 %v253_v31, 0.0 }
 0x100   :  { %v256_v37 = vmax.f32 %v254_v35, 0.0 }
 0x102   :  { %v297_v38 = vpack.c.bf16 %v256_v37, %v255_v36 }
 0x104   :  { %298 = vst [vmem:[%s439_s5] sm:$0xff] %v297_v38  }

// kernel: deeplab_forward.29
= control target key start
LH: loop header
LB: loop body
LE: loop exit
PB: predicated region body
PF: predicated region fallthrough
CT: control target
= control target key end

     0   :  { %v206_v0 = vmov 0   ;;  %vm110_vm0 = vcmask 130048   ;;  %s269_s1 = inlined_call_operand.vmem [shape: bf16[144,128], index: 1, kind: input, shape index: {}]   ;;  %s270_s0 = inlined_call_operand.vmem [shape: bf16[16,144], index: 0, kind: input, shape index: {}]   ;;  %s271_s2 = inlined_call_operand.vmem [shape: f32[16,1], index: 2, kind: input, shape index: {}]   ;;  %s272_s3 = inlined_call_operand.vmem [shape: bf16[16,128], index: 3, kind: output, shape index: {}]  }
   0x1   :  { %114 = vmatprep.subr.bf16.mxu0 %v206_v0  ;;  %v194_v1 = vld [vmem:[%s269_s1] sm:$0xff]   ;;  %193 = vset.pattern.permute.xlu0 %v206_v0  ;;  %v195_v2 = vld [vmem:[%s269_s1 + $0x8] sm:$0xff]   ;;  %v196_v3 = vld [vmem:[%s269_s1 + $0x10] sm:$0xff]  }
   0x2   :  { %115 = vmatpush1.bf16.msra.mxu0 %v194_v1  ;;  %v197_v4 = vld [vmem:[%s269_s1 + $0x18] sm:$0xff]   ;;  %v205_v5 = vld [vmem:[%s270_s0 + $0x4] ss:$8 sps:$4 sm:$0xff]   ;;  %v200_v10 = vld [vmem:[%s269_s1 + $0x30] sm:$0xff]  }
   0x3   :  { %116 = vmatprep.subr.bf16.mxu0 %v206_v0  ;;  %v35_v6 = vld [vmem:[%s271_s2] sm:$0xff]  ;;  %182 = vmatprep.mubr.msk.bf16.mxu0 %vm110_vm0, %v205_v5  ;;  %v36_v7 = vld [vmem:[%s271_s2 + $0x8] sm:$0xff]  ;;  %v201_v11 = vld [vmem:[%s269_s1 + $0x38] sm:$0xff]  }
   0x4   :  { %39 = vperm.xlu0 %193, %v35_v6   ;;  %v198_v8 = vld [vmem:[%s269_s1 + $0x20] sm:$0xff]   ;;  %v199_v9 = vld [vmem:[%s269_s1 + $0x28] sm:$0xff]  }
   0x5   :  { %v202_v12 = vld [vmem:[%s269_s1 + $0x40] sm:$0xff]  }
   0x6   :  { %117 = vmatpush1.bf16.msra.mxu0 %v195_v2  ;;  %v203_v13 = vld [vmem:[%s270_s0] ss:$8 sps:$4 sm:$0xff]  }
   0x7   :  { %118 = vmatprep.subr.bf16.mxu0 %v206_v0 }
   0x8   :  { %44 = vperm.xlu0 %193, %v36_v7  }
   0xa   :  { %119 = vmatpush1.bf16.msra.mxu0 %v196_v3 }
   0xb   :  { %120 = vmatprep.subr.bf16.mxu0 %v206_v0 }
   0xe   :  { %121 = vmatpush1.bf16.msra.mxu0 %v197_v4 }
   0xf   :  { %122 = vmatprep.subr.bf16.mxu0 %v206_v0 }
  0x12   :  { %123 = vmatpush1.bf16.msra.mxu0 %v198_v8 }
  0x13   :  { %124 = vmatprep.subr.bf16.mxu0 %v206_v0 }
  0x16   :  { %125 = vmatpush1.bf16.msra.mxu0 %v199_v9 }
  0x17   :  { %126 = vmatprep.subr.bf16.mxu0 %v206_v0 }
  0x1a   :  { %127 = vmatpush1.bf16.msra.mxu0 %v200_v10 }
  0x1b   :  { %128 = vmatprep.subr.bf16.mxu0 %v206_v0 }
  0x1e   :  { %129 = vmatpush1.bf16.msra.mxu0 %v201_v11 }
  0x1f   :  { %130 = vmatprep.subr.bf16.mxu0 %v206_v0 }
  0x22   :  { %131 = vmatpush1.bf16.msra.mxu0 %v202_v12 }
  0x25   :  { %147 = vmatmul.mubr.bf16.vlgmr.msra.gmra.mrb[0].mxu0 %v203_v13 }
  0x83   :  { %v40_v14 = vpop.permute.xlu0 %39 }
  0x87   :  { %v45_v18 = vpop.permute.xlu0 %44 }
  0xf8   :  { %v148_v15 = vpop.f32.mrb[0].mxu0 }
  0xf9   :  { %v149_v16 = vadd.f32 %v148_v15, %v40_v14  ;;  %v150_v17 = vpop.f32.mrb[1].mxu0 }
  0xfa   :  { %v151_v19 = vpop.f32.mrb[2].mxu0 }
  0xfb   :  { %v152_v20 = vadd.f32 %v151_v19, %v45_v18  ;;  %v153_v21 = vpop.f32.mrb[3].mxu0  ;;  %v155_v22 = vmax.f32 %v149_v16, 0.0 }
  0xfd   :  { %v156_v23 = vmax.f32 %v152_v20, 0.0 }
  0xff   :  { %v190_v24 = vpack.c.bf16 %v156_v23, %v155_v22 }
 0x101   :  { %191 = vst [vmem:[%s272_s3] sm:$0xff] %v190_v24  }

// kernel: deeplab_forward.31
= control target key start
LH: loop header
LB: loop body
LE: loop exit
PB: predicated region body
PF: predicated region fallthrough
CT: control target
= control target key end

     0   :  { %s768_s12 = smov 0   ;;  %s828_s0 = inlined_call_operand.vmem [shape: f32[4,8,8], index: 0, kind: input, shape index: {}]   ;;  %s829_s1 = inlined_call_operand.vmem [shape: f32[32,8], index: 1, kind: input, shape index: {}]   ;;  %s830_s2 = inlined_call_operand.vmem [shape: f32[8,32], index: 2, kind: input, shape index: {}]   ;;  %s831_s3 = inlined_call_operand.vmem [shape: f32[4,32,32], index: 3, kind: output, shape index: {}]  }
   0x1 LB: > { %s646_s13 = sadd.s32 4294967295, %s746_s12   ;;  %p650_p0 = scmp.ge.s32.totalorder %s746_s12, 1  ;;  %s746_s12 = sphi %s768_s12, %s13_s12  }
   0x2   : > { %p138_p1 = scmp.lt.s32.totalorder %s746_s12, 3 }
   0x4   : > { %p139_p2 = pnand %p650_p0, %p138_p1 }
   0x5   : > { %s651_s14 = sshll.u32 (!%p139_p2), %s646_s13, 1  ;;  %v176_v0 = vld [vmem:[%s829_s1] sm:$0xff] (!%p139_p2)  ;;  %vm181_vm0 = vcmask (!%p139_p2), 64512   ;;  %v177_v2 = vld [vmem:[%s829_s1 + $0x8] sm:$0xff] (!%p139_p2)  ;;  %v178_v4 = vld [vmem:[%s829_s1 + $0x10] sm:$0xff] (!%p139_p2)  ;;  %vm377_vm1 = vcmask (!%p139_p2), 261120  }
   0x6   : > { %142 = sbr.rel (%p139_p2) target bundleno = 459 (0x1cb), region = 32  ;;  %p164_p3 = scmp.lt.s32.totalorder (!%p139_p2), %s651_s14, 3  ;;  %702 = vmatprep.mubr.msk.f32.mxu0 (!%p139_p2), %vm181_vm0, %v176_v0  ;;  %v179_v5 = vld [vmem:[%s829_s1 + $0x18] sm:$0xff] (!%p139_p2)  ;;  %v279_v6 = vld [vmem:[%s830_s2] sm:$0xff] (!%p139_p2) }
   0x7   : > { %708 = vmatprep.subr.mxu1 (!%p139_p2), %v279_v6 }
   0x8   : > { %709 = vmatpush3.msra.mxu1 (!%p139_p2), %v279_v6 }
   0x9   : > { %724 = vmatprep.subr.mxu1 (!%p139_p2), %v279_v6 }
   0xd   : > { %s833_s14 = smov (!%p164_p3, %s651_s14), 3 }
   0xe   : > { %s652_s17 = sshll.u32 %s833_s14, 3  ;;  %s679_s29 = sshll.u32 %s833_s14, 5 }
   0xf   : > { %s167_s20 = scalar_lea.vmem %s828_s0, %s652_s17  ;;  %s174_s5 = scalar_lea.vmem %s831_s3, %s679_s29 }
  0x10   : > { %v180_v1 = vld [vmem:[%s167_s20] sm:$0xff]  ;;  %v664_v3 = vld [vmem:[%s167_s20 + $0x8] sm:$0xff] }
  0x11   : > { %700 = vmatprep.subr.mxu0 %v180_v1 }
  0x12   : > { %701 = vmatpush3.msra.mxu0 %v180_v1 }
  0x13   : > { %703 = vmatmul.mubr.msk.f32.vlgmr.msra.gmra.mrb[0].mxu0 %vm181_vm0, %v177_v2  ;;  %716 = vmatprep.subr.mxu0 %v664_v3 }
  0x14   : > { %717 = vmatpush3.msra.mxu0 %v664_v3  ;;  %705 = vmatprep.mubr.msk.f32.mxu0 %vm181_vm0, %v178_v4 }
  0x17   : > { %706 = vmatmul.mubr.msk.f32.gmra.mrb[2].mxu0 %vm181_vm0, %v179_v5 }
  0x18   : > { %718 = vmatprep.mubr.msk.f32.mxu0 %vm181_vm0, %v176_v0 }
  0x1b   : > { %719 = vmatmul.mubr.msk.f32.vlgmr.msra.gmra.mrb[4].mxu0 %vm181_vm0, %v177_v2 }
  0x1c   : > { %721 = vmatprep.mubr.msk.f32.mxu0 %vm181_vm0, %v178_v4 }
  0x1f   : > { %722 = vmatmul.mubr.msk.f32.gmra.mrb[6].mxu0 %vm181_vm0, %v179_v5 }
  0xe6   : > { %v704_v7 = vpop.f32.mrb[0].mxu0 }
  0xe7   : > { %v260_v8 = vpop.f32.mrb[1].mxu0 }
  0xe8   : > { %710 = vmatprep.mubr.msk.f32.mxu1 %vm181_vm0, %v260_v8 }
  0xe9   : > { %711 = vmatmul.mubr.msk.f32.vlgmr.msra.gmra.mrb[0].mxu1 %vm181_vm0, %v704_v7 }
  0xea   : > { %v707_v9 = vpop.f32.mrb[2].mxu0  ;;  %725 = vmatpush3.msra.mxu1 %v279_v6 }
  0xeb   : > { %v270_v10 = vpop.f32.mrb[3].mxu0 }
  0xec   : > { %713 = vmatprep.mubr.msk.f32.mxu1 %vm181_vm0, %v270_v10 }
  0xed   : > { %714 = vmatmul.mubr.msk.f32.gmra.mrb[2].mxu1 %vm181_vm0, %v707_v9 }
  0xee   : > { %v720_v11 = vpop.f32.mrb[4].mxu0 }
  0xef   : > { %v466_v12 = vpop.f32.mrb[5].mxu0 }
  0xf0   : > { %726 = vmatprep.mubr.msk.f32.mxu1 %vm181_vm0, %v466_v12 }
  0xf1   : > { %727 = vmatmul.mubr.msk.f32.vlgmr.msra.gmra.mrb[4].mxu1 %vm181_vm0, %v720_v11 }
  0xf2   : > { %v723_v13 = vpop.f32.mrb[6].mxu0 }
  0xf3   : > { %v476_v14 = vpop.f32.mrb[7].mxu0 }
  0xf4   : > { %729 = vmatprep.mubr.msk.f32.mxu1 %vm181_vm0, %v476_v14 }
  0xf5   : > { %730 = vmatmul.mubr.msk.f32.gmra.mrb[6].mxu1 %vm181_vm0, %v723_v13 }
 0x1bc   : > { %v712_v15 = vpop.f32.mrb[0].mxu1 }
 0x1bd   : > { %379 = vst.msk [vmem:[%s174_s5 + $0x8] sm:$0xff] %vm377_vm1, %v712_v15  ;;  %v358_v16 = vpop.f32.mrb[1].mxu1 }
 0x1be   : > { %378 = vst.msk [vmem:[%s174_s5] sm:$0xff] %vm377_vm1, %v358_v16 }
 0x1c0   : > { %v715_v17 = vpop.f32.mrb[2].mxu1 }
 0x1c1   : > { %381 = vst.msk [vmem:[%s174_s5 + $0x18] sm:$0xff] %vm377_vm1, %v715_v17  ;;  %v368_v18 = vpop.f32.mrb[3].mxu1 }
 0x1c2   : > { %380 = vst.msk [vmem:[%s174_s5 + $0x10] sm:$0xff] %vm377_vm1, %v368_v18 }
 0x1c4   : > { %v728_v19 = vpop.f32.mrb[4].mxu1 }
 0x1c5   : > { %674 = vst.msk [vmem:[%s174_s5 + $0x28] sm:$0xff] %vm377_vm1, %v728_v19  ;;  %v564_v20 = vpop.f32.mrb[5].mxu1 }
 0x1c6   : > { %673 = vst.msk [vmem:[%s174_s5 + $0x20] sm:$0xff] %vm377_vm1, %v564_v20 }
 0x1c8   : > { %v731_v21 = vpop.f32.mrb[6].mxu1 }
 0x1c9   : > { %676 = vst.msk [vmem:[%s174_s5 + $0x38] sm:$0xff] %vm377_vm1, %v731_v21  ;;  %v574_v22 = vpop.f32.mrb[7].mxu1 }
 0x1ca   : > { %675 = vst.msk [vmem:[%s174_s5 + $0x30] sm:$0xff] %vm377_vm1, %v574_v22 }
 0x1cb PF: > { %s13_s12 = sadd.s32 1, %s746_s12  }
 0x1cc   : > { %p10_p4 = scmp.ge.s32.totalorder %s13_s12, 4  }
 0x1ce   :  { %12 = sbr.rel (!%p10_p4) target bundleno = 1 (0x1), region = 64 }

</bundles_post_ra>
